<compile_context>
chip_gen: v5e
topology: v5e:2x2
jax: 0.10.0
libtpu: 0.0.40
codegen_flags: <defaults>
</compile_context>

<pallas_src>
import functools

import numpy as np
import jax
import jax.numpy as jnp
from jax.experimental import pallas as pl
from jax.experimental.pallas import tpu as pltpu


_SMEM = pl.BlockSpec(memory_space=pltpu.MemorySpace.SMEM)
_VMEM = pl.BlockSpec(memory_space=pltpu.MemorySpace.VMEM)


# ----------------------------------------------------------------------------
# Polyphase tap table for ConvTranspose2d(1, 1, K=2s, stride=s, padding=s//2)
# ----------------------------------------------------------------------------
def _phase_taps(s):
    """Per output phase r: out[q*s + r] = w[k1]*x[q] + w[k2]*x[q + d2]."""
    taps = []
    half = s // 2
    for r in range(s):
        k1 = r + half
        d2 = -1 if r < half else 1
        k2 = k1 - s * d2
        taps.append((k1, k2, d2))
    return taps


# ----------------------------------------------------------------------------
# In-kernel polyphase transposed-conv body (shared by all pallas_calls)
# ----------------------------------------------------------------------------
def _deconv_phases_body(xpad_ref, w_ref, b_ref, out_ref, *, s, h, w):
    """Polyphase ConvTranspose2d(1,1,K=2s,stride=s,padding=s//2).

    xpad_ref: (B, h+2, w+2) VMEM ref, compact input with a 1-px zero border.
    w_ref:    (K*K,) SMEM flat weights (PyTorch layout, w[kh*K + kw]).
    b_ref:    (1,)   SMEM bias.
    out_ref:  (s*s, B, h, w) VMEM; plane r*s+c holds output rows q*s+r,
              columns qw*s+c (interleaved back to (B, h*s, w*s) by the caller).
    """
    K = 2 * s
    # The 9 (+/-1) shifted windows of the compact input; zero border gives the
    # correct boundary behaviour of the transposed conv.
    shifted = {}
    for dh in (-1, 0, 1):
        for dw in (-1, 0, 1):
            shifted[(dh, dw)] = xpad_ref[:, 1 + dh:1 + dh + h, 1 + dw:1 + dw + w]
    bias = b_ref[0]
    taps = _phase_taps(s)
    for r in range(s):
        kh1, kh2, dh = taps[r]
        for c in range(s):
            kw1, kw2, dw = taps[c]
            out_ref[r * s + c] = (
                bias
                + w_ref[kh1 * K + kw1] * shifted[(0, 0)]
                + w_ref[kh1 * K + kw2] * shifted[(0, dw)]
                + w_ref[kh2 * K + kw1] * shifted[(dh, 0)]
                + w_ref[kh2 * K + kw2] * shifted[(dh, dw)])


# ----------------------------------------------------------------------------
# Pallas call 1 / 3: one or more independent transposed-conv branches
# ----------------------------------------------------------------------------
def _deconv_branches_call(xs_padded, w_flats, biases, strides):
    """Run several independent polyphase ConvTranspose2d branches in ONE call.

    xs_padded[i]: (B, h_i + 2, w_i + 2) zero-bordered compact input.
    Returns a list of phase-plane arrays (s_i*s_i, B, h_i, w_i).
    """
    n = len(xs_padded)
    shapes = [(xp.shape[0], xp.shape[1] - 2, xp.shape[2] - 2) for xp in xs_padded]

    def kernel(*refs):
        for i in range(n):
            w_ref = refs[3 * i]
            b_ref = refs[3 * i + 1]
            x_ref = refs[3 * i + 2]
            out_ref = refs[3 * n + i]
            _, h, w = shapes[i]
            _deconv_phases_body(x_ref, w_ref, b_ref, out_ref,
                                s=strides[i], h=h, w=w)

    in_specs, args, out_shapes = [], [], []
    for i in range(n):
        in_specs += [_SMEM, _SMEM, _VMEM]
        args += [w_flats[i], biases[i], xs_padded[i]]
        b, h, w = shapes[i]
        s = strides[i]
        out_shapes.append(jax.ShapeDtypeStruct((s * s, b, h, w), jnp.float32))

    outs = pl.pallas_call(
        kernel,
        out_shape=tuple(out_shapes),
        in_specs=in_specs,
        out_specs=tuple([_VMEM] * n),
    )(*args)
    if not isinstance(outs, (list, tuple)):
        outs = (outs,)
    return list(outs)


# ----------------------------------------------------------------------------
# Pallas call 2: fused 1x1 channel mix + polyphase transposed conv
# ----------------------------------------------------------------------------
def _mix_deconv_call(x, ups, mix_w, mix_b, w_flat, bias, s):
    """out_phases = ConvT(conv1x1(cat([x] + ups)))  in one kernel.

    x, ups[i]: (B, H, W); mix_w: (len(ups)+1,); w_flat: (K*K,), K = 2*s.
    Returns phase planes (s*s, B, H, W).
    """
    B, H, W = x.shape
    n = len(ups)

    def kernel(*refs):
        mixw_ref, mixb_ref, decw_ref, decb_ref = refs[:4]
        x_ref = refs[4]
        up_refs = refs[5:5 + n]
        out_ref = refs[5 + n]
        mpad_ref = refs[6 + n]          # scratch (B, H+2, W+2)

        # 1x1 channel mix (channel 0 = x, then the upconv branches, cat order).
        m = mixw_ref[0] * x_ref[...]
        for i in range(n):
            m = m + mixw_ref[i + 1] * up_refs[i][...]
        m = m + mixb_ref[0]

        # Zero-bordered copy of the mix result, then polyphase deconv taps.
        mpad_ref[...] = jnp.zeros_like(mpad_ref)
        mpad_ref[:, 1:1 + H, 1:1 + W] = m
        _deconv_phases_body(mpad_ref, decw_ref, decb_ref, out_ref,
                            s=s, h=H, w=W)

    return pl.pallas_call(
        kernel,
        out_shape=jax.ShapeDtypeStruct((s * s, B, H, W), jnp.float32),
        in_specs=[_SMEM, _SMEM, _SMEM, _SMEM] + [_VMEM] * (1 + n),
        out_specs=_VMEM,
        scratch_shapes=[pltpu.VMEM((B, H + 2, W + 2), jnp.float32)],
    )(mix_w, mix_b, w_flat, bias, x, *ups)


# ----------------------------------------------------------------------------
# XLA glue: interleave phase planes back to spatial layout; 1-px zero pad
# ----------------------------------------------------------------------------
def _interleave_phases(phases, s):
    """(s*s, B, h, w) with plane index r*s+c  ->  (B, h*s, w*s)."""
    _, B, h, w = phases.shape
    y = phases.reshape(s, s, B, h, w).transpose(2, 3, 0, 4, 1)
    return y.reshape(B, h * s, w * s)


def _pad1(a):
    return jnp.pad(a, ((0, 0), (1, 1), (1, 1)))


# ----------------------------------------------------------------------------
# ConcatLayer: parameters + forward
# ----------------------------------------------------------------------------
def init_concat_layer(key, list_k, k, scale=True):
    keys = jax.random.split(key, 2 * len(list_k) + 6)
    it = iter(keys)

    def u(kk, shape, fan_in):
        bound = 1.0 / np.sqrt(float(fan_in))
        return jax.random.uniform(kk, shape, jnp.float32, -bound, bound)

    params = {"upconv": []}
    for kk in list_k:
        w = u(next(it), (kk, kk), kk * kk)
        b = u(next(it), (1,), kk * kk)
        params["upconv"].append((w, b))
    l = len(list_k)
    params["conv_w"] = u(next(it), (l + 1,), l + 1)     # Conv2d(l+1, 1, 1, 1)
    params["conv_b"] = u(next(it), (1,), l + 1)
    if scale:
        params["deconv_w"] = u(next(it), (2 * k, 2 * k), 4 * k * k)
        params["deconv_b"] = u(next(it), (1,), 4 * k * k)
    params["last_w"] = u(next(it), (4, 4), 16)          # ConvTranspose2d(1,1,4,2,1)
    params["last_b"] = u(next(it), (1,), 16)
    return params


def concat_layer_forward(params, x, list_x, list_k, k, scale=True):
    # x: (B, 1, H, W); list_x[i]: (B, 1, H/(list_k[i]//2), W/(list_k[i]//2))
    for kk in list_k:
        assert kk % 4 == 0, "polyphase path needs list_k[i] % 4 == 0"
    if scale:
        assert k % 2 == 0, "polyphase path needs even k"

    x2 = x[:, 0]
    B, H, W = x2.shape

    # ---- call 1: all upconv side branches, fused in one pallas_call --------
    ups = []
    strides = [kk // 2 for kk in list_k]
    if list_x:
        xs_padded, ws, bs = [], [], []
        for i, elem in enumerate(list_x):
            w_i, b_i = params["upconv"][i]
            xs_padded.append(_pad1(elem[:, 0]))
            ws.append(w_i.reshape(-1))
            bs.append(b_i)
        phase_list = _deconv_branches_call(xs_padded, ws, bs, strides)
        for i, ph in enumerate(phase_list):
            up = _interleave_phases(ph, strides[i])
            assert up.shape == (B, H, W), up.shape
            ups.append(up)

    # ---- call 2: 1x1 channel mix + (deconv if scale else last_deconv) ------
    if scale:
        s2, w2, b2 = k, params["deconv_w"], params["deconv_b"]
    else:
        s2, w2, b2 = 2, params["last_w"], params["last_b"]
    phases2 = _mix_deconv_call(x2, ups, params["conv_w"], params["conv_b"],
                               w2.reshape(-1), b2, s2)
    out = _interleave_phases(phases2, s2)

    # ---- call 3 (only if scale): last_deconv --------------------------------
    if scale:
        phases3 = _deconv_branches_call(
            [_pad1(out)], [params["last_w"].reshape(-1)], [params["last_b"]], [2])[0]
        out = _interleave_phases(phases3, 2)

    return out[:, None]                                  # back to NCHW (C=1)


# ----------------------------------------------------------------------------
# Pure-JAX reference (lax.conv_general_dilated) for correctness check
# ----------------------------------------------------------------------------
def _ref_conv_transpose(x, w, b, s, p):
    K = w.shape[0]
    wf = w[::-1, ::-1]
    y = jax.lax.conv_general_dilated(
        x[:, None], wf[None, None],
        window_strides=(1, 1),
        padding=[(K - 1 - p, K - 1 - p)] * 2,
        lhs_dilation=(s, s),
        dimension_numbers=("NCHW", "OIHW", "NCHW"),
        precision=jax.lax.Precision.HIGHEST)
    return y[:, 0] + b[0]


def _ref_forward(params, x, list_x, list_k, k, scale=True):
    elems = [x[:, 0]]
    for i, elem in enumerate(list_x):
        w, b = params["upconv"][i]
        elems.append(_ref_conv_transpose(elem[:, 0], w, b,
                                         list_k[i] // 2, list_k[i] // 4))
    cat = jnp.stack(elems, axis=1)
    out = jnp.einsum("bchw,c->bhw", cat, params["conv_w"],
                     precision=jax.lax.Precision.HIGHEST) + params["conv_b"][0]
    if scale:
        out = _ref_conv_transpose(out, params["deconv_w"], params["deconv_b"],
                                  k, k // 2)
    out = _ref_conv_transpose(out, params["last_w"], params["last_b"], 2, 1)
    return out[:, None]


# ----------------------------------------------------------------------------
if __name__ == "__main__":
    list_k = [4, 8]       # two side branches, upsample factors 2 and 4
    k = 2                 # deconv scale factor
    B, H, W = 2, 16, 16

    key = jax.random.PRNGKey(0)
    kx, k0, k1, kp = jax.random.split(key, 4)
    x = jax.random.normal(kx, (B, 1, H, W), jnp.float32)
    list_x = [
        jax.random.normal(k0, (B, 1, H // (list_k[0] // 2), W // (list_k[0] // 2)),
                          jnp.float32),
        jax.random.normal(k1, (B, 1, H // (list_k[1] // 2), W // (list_k[1] // 2)),
                          jnp.float32),
    ]
    params = init_concat_layer(kp, list_k, k, scale=True)

    fwd = jax.jit(functools.partial(concat_layer_forward,
                                    list_k=tuple(list_k), k=k, scale=True))
    out = jax.block_until_ready(fwd(params, x, list_x))
    assert out.shape == (B, 1, 4 * H, 4 * W), out.shape

    ref = jax.block_until_ready(
        _ref_forward(params, x, list_x, list_k, k, scale=True))
    if not np.allclose(np.asarray(out), np.asarray(ref), atol=1e-4, rtol=1e-4):
        raise AssertionError("Pallas output does not match reference")

    print("KERNEL_OK")
</pallas_src>

<mosaic_0001>
module attributes {stable_mosaic.version = 11 : i64} {
  func.func @kernel(%arg0: memref<16xf32, #tpu.memory_space<smem>>, %arg1: memref<1xf32, #tpu.memory_space<smem>>, %arg2: memref<2x10x10xf32, #tpu.memory_space<vmem>>, %arg3: memref<64xf32, #tpu.memory_space<smem>>, %arg4: memref<1xf32, #tpu.memory_space<smem>>, %arg5: memref<2x6x6xf32, #tpu.memory_space<vmem>>, %arg6: memref<4x2x8x8xf32, #tpu.memory_space<vmem>>, %arg7: memref<16x2x4x4xf32, #tpu.memory_space<vmem>>) attributes {dimension_semantics = [], scalar_prefetch = 0 : i64, scratch_operands = 0 : i64, tpu.core_type = #tpu.core_type<tc>} {
    %c0 = arith.constant 0 : index
    %c0_0 = arith.constant 0 : index
    %c0_1 = arith.constant 0 : index
    %0 = vector.load %arg2[%c0, %c0_0, %c0_1] : memref<2x10x10xf32, #tpu.memory_space<vmem>>, vector<2x8x8xf32>
    %c0_2 = arith.constant 0 : index
    %c0_3 = arith.constant 0 : index
    %c1 = arith.constant 1 : index
    %1 = vector.load %arg2[%c0_2, %c0_3, %c1] : memref<2x10x10xf32, #tpu.memory_space<vmem>>, vector<2x8x8xf32>
    %c0_4 = arith.constant 0 : index
    %c0_5 = arith.constant 0 : index
    %c2 = arith.constant 2 : index
    %2 = vector.load %arg2[%c0_4, %c0_5, %c2] : memref<2x10x10xf32, #tpu.memory_space<vmem>>, vector<2x8x8xf32>
    %c0_6 = arith.constant 0 : index
    %c1_7 = arith.constant 1 : index
    %c0_8 = arith.constant 0 : index
    %3 = vector.load %arg2[%c0_6, %c1_7, %c0_8] : memref<2x10x10xf32, #tpu.memory_space<vmem>>, vector<2x8x8xf32>
    %c0_9 = arith.constant 0 : index
    %c1_10 = arith.constant 1 : index
    %c1_11 = arith.constant 1 : index
    %4 = vector.load %arg2[%c0_9, %c1_10, %c1_11] : memref<2x10x10xf32, #tpu.memory_space<vmem>>, vector<2x8x8xf32>
    %c0_12 = arith.constant 0 : index
    %c1_13 = arith.constant 1 : index
    %c2_14 = arith.constant 2 : index
    %5 = vector.load %arg2[%c0_12, %c1_13, %c2_14] : memref<2x10x10xf32, #tpu.memory_space<vmem>>, vector<2x8x8xf32>
    %c0_15 = arith.constant 0 : index
    %c2_16 = arith.constant 2 : index
    %c0_17 = arith.constant 0 : index
    %6 = vector.load %arg2[%c0_15, %c2_16, %c0_17] : memref<2x10x10xf32, #tpu.memory_space<vmem>>, vector<2x8x8xf32>
    %c0_18 = arith.constant 0 : index
    %c2_19 = arith.constant 2 : index
    %c1_20 = arith.constant 1 : index
    %7 = vector.load %arg2[%c0_18, %c2_19, %c1_20] : memref<2x10x10xf32, #tpu.memory_space<vmem>>, vector<2x8x8xf32>
    %c0_21 = arith.constant 0 : index
    %c2_22 = arith.constant 2 : index
    %c2_23 = arith.constant 2 : index
    %8 = vector.load %arg2[%c0_21, %c2_22, %c2_23] : memref<2x10x10xf32, #tpu.memory_space<vmem>>, vector<2x8x8xf32>
    %c0_24 = arith.constant 0 : index
    %9 = memref.load %arg1[%c0_24] : memref<1xf32, #tpu.memory_space<smem>>
    %c5 = arith.constant 5 : index
    %10 = memref.load %arg0[%c5] : memref<16xf32, #tpu.memory_space<smem>>
    %11 = vector.broadcast %10 : f32 to vector<2x8x8xf32>
    %12 = arith.mulf %11, %4 : vector<2x8x8xf32>
    %13 = vector.broadcast %9 : f32 to vector<2x8x8xf32>
    %14 = arith.addf %13, %12 : vector<2x8x8xf32>
    %c7 = arith.constant 7 : index
    %15 = memref.load %arg0[%c7] : memref<16xf32, #tpu.memory_space<smem>>
    %16 = vector.broadcast %15 : f32 to vector<2x8x8xf32>
    %17 = arith.mulf %16, %3 : vector<2x8x8xf32>
    %18 = arith.addf %14, %17 : vector<2x8x8xf32>
    %c13 = arith.constant 13 : index
    %19 = memref.load %arg0[%c13] : memref<16xf32, #tpu.memory_space<smem>>
    %20 = vector.broadcast %19 : f32 to vector<2x8x8xf32>
    %21 = arith.mulf %20, %1 : vector<2x8x8xf32>
    %22 = arith.addf %18, %21 : vector<2x8x8xf32>
    %c15 = arith.constant 15 : index
    %23 = memref.load %arg0[%c15] : memref<16xf32, #tpu.memory_space<smem>>
    %24 = vector.broadcast %23 : f32 to vector<2x8x8xf32>
    %25 = arith.mulf %24, %0 : vector<2x8x8xf32>
    %26 = arith.addf %22, %25 : vector<2x8x8xf32>
    %c0_25 = arith.constant 0 : index
    %c0_26 = arith.constant 0 : index
    %c0_27 = arith.constant 0 : index
    %c0_28 = arith.constant 0 : index
    %27 = vector.load %arg6[%c0_25, %c0_26, %c0_27, %c0_28] : memref<4x2x8x8xf32, #tpu.memory_space<vmem>>, vector<1x2x8x8xf32>
    %28 = vector.shape_cast %27 : vector<1x2x8x8xf32> to vector<2x8x8xf32>
    %29 = vector.shape_cast %26 : vector<2x8x8xf32> to vector<1x2x8x8xf32>
    tpu.vector_store %arg6[%c0_25, %c0_26, %c0_27, %c0_28], %29 {strides = array<i32>} : memref<4x2x8x8xf32, #tpu.memory_space<vmem>>, vector<1x2x8x8xf32>,
    %c6 = arith.constant 6 : index
    %30 = memref.load %arg0[%c6] : memref<16xf32, #tpu.memory_space<smem>>
    %31 = vector.broadcast %30 : f32 to vector<2x8x8xf32>
    %32 = arith.mulf %31, %4 : vector<2x8x8xf32>
    %33 = vector.broadcast %9 : f32 to vector<2x8x8xf32>
    %34 = arith.addf %33, %32 : vector<2x8x8xf32>
    %c4 = arith.constant 4 : index
    %35 = memref.load %arg0[%c4] : memref<16xf32, #tpu.memory_space<smem>>
    %36 = vector.broadcast %35 : f32 to vector<2x8x8xf32>
    %37 = arith.mulf %36, %5 : vector<2x8x8xf32>
    %38 = arith.addf %34, %37 : vector<2x8x8xf32>
    %c14 = arith.constant 14 : index
    %39 = memref.load %arg0[%c14] : memref<16xf32, #tpu.memory_space<smem>>
    %40 = vector.broadcast %39 : f32 to vector<2x8x8xf32>
    %41 = arith.mulf %40, %1 : vector<2x8x8xf32>
    %42 = arith.addf %38, %41 : vector<2x8x8xf32>
    %c12 = arith.constant 12 : index
    %43 = memref.load %arg0[%c12] : memref<16xf32, #tpu.memory_space<smem>>
    %44 = vector.broadcast %43 : f32 to vector<2x8x8xf32>
    %45 = arith.mulf %44, %2 : vector<2x8x8xf32>
    %46 = arith.addf %42, %45 : vector<2x8x8xf32>
    %c1_29 = arith.constant 1 : index
    %c0_30 = arith.constant 0 : index
    %c0_31 = arith.constant 0 : index
    %c0_32 = arith.constant 0 : index
    %47 = vector.load %arg6[%c1_29, %c0_30, %c0_31, %c0_32] : memref<4x2x8x8xf32, #tpu.memory_space<vmem>>, vector<1x2x8x8xf32>
    %48 = vector.shape_cast %47 : vector<1x2x8x8xf32> to vector<2x8x8xf32>
    %49 = vector.shape_cast %46 : vector<2x8x8xf32> to vector<1x2x8x8xf32>
    tpu.vector_store %arg6[%c1_29, %c0_30, %c0_31, %c0_32], %49 {strides = array<i32>} : memref<4x2x8x8xf32, #tpu.memory_space<vmem>>, vector<1x2x8x8xf32>,
    %c9 = arith.constant 9 : index
    %50 = memref.load %arg0[%c9] : memref<16xf32, #tpu.memory_space<smem>>
    %51 = vector.broadcast %50 : f32 to vector<2x8x8xf32>
    %52 = arith.mulf %51, %4 : vector<2x8x8xf32>
    %53 = vector.broadcast %9 : f32 to vector<2x8x8xf32>
    %54 = arith.addf %53, %52 : vector<2x8x8xf32>
    %c11 = arith.constant 11 : index
    %55 = memref.load %arg0[%c11] : memref<16xf32, #tpu.memory_space<smem>>
    %56 = vector.broadcast %55 : f32 to vector<2x8x8xf32>
    %57 = arith.mulf %56, %3 : vector<2x8x8xf32>
    %58 = arith.addf %54, %57 : vector<2x8x8xf32>
    %c1_33 = arith.constant 1 : index
    %59 = memref.load %arg0[%c1_33] : memref<16xf32, #tpu.memory_space<smem>>
    %60 = vector.broadcast %59 : f32 to vector<2x8x8xf32>
    %61 = arith.mulf %60, %7 : vector<2x8x8xf32>
    %62 = arith.addf %58, %61 : vector<2x8x8xf32>
    %c3 = arith.constant 3 : index
    %63 = memref.load %arg0[%c3] : memref<16xf32, #tpu.memory_space<smem>>
    %64 = vector.broadcast %63 : f32 to vector<2x8x8xf32>
    %65 = arith.mulf %64, %6 : vector<2x8x8xf32>
    %66 = arith.addf %62, %65 : vector<2x8x8xf32>
    %c2_34 = arith.constant 2 : index
    %c0_35 = arith.constant 0 : index
    %c0_36 = arith.constant 0 : index
    %c0_37 = arith.constant 0 : index
    %67 = vector.load %arg6[%c2_34, %c0_35, %c0_36, %c0_37] : memref<4x2x8x8xf32, #tpu.memory_space<vmem>>, vector<1x2x8x8xf32>
    %68 = vector.shape_cast %67 : vector<1x2x8x8xf32> to vector<2x8x8xf32>
    %69 = vector.shape_cast %66 : vector<2x8x8xf32> to vector<1x2x8x8xf32>
    tpu.vector_store %arg6[%c2_34, %c0_35, %c0_36, %c0_37], %69 {strides = array<i32>} : memref<4x2x8x8xf32, #tpu.memory_space<vmem>>, vector<1x2x8x8xf32>,
    %c10 = arith.constant 10 : index
    %70 = memref.load %arg0[%c10] : memref<16xf32, #tpu.memory_space<smem>>
    %71 = vector.broadcast %70 : f32 to vector<2x8x8xf32>
    %72 = arith.mulf %71, %4 : vector<2x8x8xf32>
    %73 = vector.broadcast %9 : f32 to vector<2x8x8xf32>
    %74 = arith.addf %73, %72 : vector<2x8x8xf32>
    %c8 = arith.constant 8 : index
    %75 = memref.load %arg0[%c8] : memref<16xf32, #tpu.memory_space<smem>>
    %76 = vector.broadcast %75 : f32 to vector<2x8x8xf32>
    %77 = arith.mulf %76, %5 : vector<2x8x8xf32>
    %78 = arith.addf %74, %77 : vector<2x8x8xf32>
    %c2_38 = arith.constant 2 : index
    %79 = memref.load %arg0[%c2_38] : memref<16xf32, #tpu.memory_space<smem>>
    %80 = vector.broadcast %79 : f32 to vector<2x8x8xf32>
    %81 = arith.mulf %80, %7 : vector<2x8x8xf32>
    %82 = arith.addf %78, %81 : vector<2x8x8xf32>
    %c0_39 = arith.constant 0 : index
    %83 = memref.load %arg0[%c0_39] : memref<16xf32, #tpu.memory_space<smem>>
    %84 = vector.broadcast %83 : f32 to vector<2x8x8xf32>
    %85 = arith.mulf %84, %8 : vector<2x8x8xf32>
    %86 = arith.addf %82, %85 : vector<2x8x8xf32>
    %c3_40 = arith.constant 3 : index
    %c0_41 = arith.constant 0 : index
    %c0_42 = arith.constant 0 : index
    %c0_43 = arith.constant 0 : index
    %87 = vector.load %arg6[%c3_40, %c0_41, %c0_42, %c0_43] : memref<4x2x8x8xf32, #tpu.memory_space<vmem>>, vector<1x2x8x8xf32>
    %88 = vector.shape_cast %87 : vector<1x2x8x8xf32> to vector<2x8x8xf32>
    %89 = vector.shape_cast %86 : vector<2x8x8xf32> to vector<1x2x8x8xf32>
    tpu.vector_store %arg6[%c3_40, %c0_41, %c0_42, %c0_43], %89 {strides = array<i32>} : memref<4x2x8x8xf32, #tpu.memory_space<vmem>>, vector<1x2x8x8xf32>,
    %c0_44 = arith.constant 0 : index
    %c0_45 = arith.constant 0 : index
    %c0_46 = arith.constant 0 : index
    %90 = vector.load %arg5[%c0_44, %c0_45, %c0_46] : memref<2x6x6xf32, #tpu.memory_space<vmem>>, vector<2x4x4xf32>
    %c0_47 = arith.constant 0 : index
    %c0_48 = arith.constant 0 : index
    %c1_49 = arith.constant 1 : index
    %91 = vector.load %arg5[%c0_47, %c0_48, %c1_49] : memref<2x6x6xf32, #tpu.memory_space<vmem>>, vector<2x4x4xf32>
    %c0_50 = arith.constant 0 : index
    %c0_51 = arith.constant 0 : index
    %c2_52 = arith.constant 2 : index
    %92 = vector.load %arg5[%c0_50, %c0_51, %c2_52] : memref<2x6x6xf32, #tpu.memory_space<vmem>>, vector<2x4x4xf32>
    %c0_53 = arith.constant 0 : index
    %c1_54 = arith.constant 1 : index
    %c0_55 = arith.constant 0 : index
    %93 = vector.load %arg5[%c0_53, %c1_54, %c0_55] : memref<2x6x6xf32, #tpu.memory_space<vmem>>, vector<2x4x4xf32>
    %c0_56 = arith.constant 0 : index
    %c1_57 = arith.constant 1 : index
    %c1_58 = arith.constant 1 : index
    %94 = vector.load %arg5[%c0_56, %c1_57, %c1_58] : memref<2x6x6xf32, #tpu.memory_space<vmem>>, vector<2x4x4xf32>
    %c0_59 = arith.constant 0 : index
    %c1_60 = arith.constant 1 : index
    %c2_61 = arith.constant 2 : index
    %95 = vector.load %arg5[%c0_59, %c1_60, %c2_61] : memref<2x6x6xf32, #tpu.memory_space<vmem>>, vector<2x4x4xf32>
    %c0_62 = arith.constant 0 : index
    %c2_63 = arith.constant 2 : index
    %c0_64 = arith.constant 0 : index
    %96 = vector.load %arg5[%c0_62, %c2_63, %c0_64] : memref<2x6x6xf32, #tpu.memory_space<vmem>>, vector<2x4x4xf32>
    %c0_65 = arith.constant 0 : index
    %c2_66 = arith.constant 2 : index
    %c1_67 = arith.constant 1 : index
    %97 = vector.load %arg5[%c0_65, %c2_66, %c1_67] : memref<2x6x6xf32, #tpu.memory_space<vmem>>, vector<2x4x4xf32>
    %c0_68 = arith.constant 0 : index
    %c2_69 = arith.constant 2 : index
    %c2_70 = arith.constant 2 : index
    %98 = vector.load %arg5[%c0_68, %c2_69, %c2_70] : memref<2x6x6xf32, #tpu.memory_space<vmem>>, vector<2x4x4xf32>
    %c0_71 = arith.constant 0 : index
    %99 = memref.load %arg4[%c0_71] : memref<1xf32, #tpu.memory_space<smem>>
    %c18 = arith.constant 18 : index
    %100 = memref.load %arg3[%c18] : memref<64xf32, #tpu.memory_space<smem>>
    %101 = vector.broadcast %100 : f32 to vector<2x4x4xf32>
    %102 = arith.mulf %101, %94 : vector<2x4x4xf32>
    %103 = vector.broadcast %99 : f32 to vector<2x4x4xf32>
    %104 = arith.addf %103, %102 : vector<2x4x4xf32>
    %c22 = arith.constant 22 : index
    %105 = memref.load %arg3[%c22] : memref<64xf32, #tpu.memory_space<smem>>
    %106 = vector.broadcast %105 : f32 to vector<2x4x4xf32>
    %107 = arith.mulf %106, %93 : vector<2x4x4xf32>
    %108 = arith.addf %104, %107 : vector<2x4x4xf32>
    %c50 = arith.constant 50 : index
    %109 = memref.load %arg3[%c50] : memref<64xf32, #tpu.memory_space<smem>>
    %110 = vector.broadcast %109 : f32 to vector<2x4x4xf32>
    %111 = arith.mulf %110, %91 : vector<2x4x4xf32>
    %112 = arith.addf %108, %111 : vector<2x4x4xf32>
    %c54 = arith.constant 54 : index
    %113 = memref.load %arg3[%c54] : memref<64xf32, #tpu.memory_space<smem>>
    %114 = vector.broadcast %113 : f32 to vector<2x4x4xf32>
    %115 = arith.mulf %114, %90 : vector<2x4x4xf32>
    %116 = arith.addf %112, %115 : vector<2x4x4xf32>
    %c0_72 = arith.constant 0 : index
    %c0_73 = arith.constant 0 : index
    %c0_74 = arith.constant 0 : index
    %c0_75 = arith.constant 0 : index
    %117 = vector.load %arg7[%c0_72, %c0_73, %c0_74, %c0_75] : memref<16x2x4x4xf32, #tpu.memory_space<vmem>>, vector<1x2x4x4xf32>
    %118 = vector.shape_cast %117 : vector<1x2x4x4xf32> to vector<2x4x4xf32>
    %119 = vector.shape_cast %116 : vector<2x4x4xf32> to vector<1x2x4x4xf32>
    tpu.vector_store %arg7[%c0_72, %c0_73, %c0_74, %c0_75], %119 {strides = array<i32>} : memref<16x2x4x4xf32, #tpu.memory_space<vmem>>, vector<1x2x4x4xf32>,
    %c19 = arith.constant 19 : index
    %120 = memref.load %arg3[%c19] : memref<64xf32, #tpu.memory_space<smem>>
    %121 = vector.broadcast %120 : f32 to vector<2x4x4xf32>
    %122 = arith.mulf %121, %94 : vector<2x4x4xf32>
    %123 = vector.broadcast %99 : f32 to vector<2x4x4xf32>
    %124 = arith.addf %123, %122 : vector<2x4x4xf32>
    %c23 = arith.constant 23 : index
    %125 = memref.load %arg3[%c23] : memref<64xf32, #tpu.memory_space<smem>>
    %126 = vector.broadcast %125 : f32 to vector<2x4x4xf32>
    %127 = arith.mulf %126, %93 : vector<2x4x4xf32>
    %128 = arith.addf %124, %127 : vector<2x4x4xf32>
    %c51 = arith.constant 51 : index
    %129 = memref.load %arg3[%c51] : memref<64xf32, #tpu.memory_space<smem>>
    %130 = vector.broadcast %129 : f32 to vector<2x4x4xf32>
    %131 = arith.mulf %130, %91 : vector<2x4x4xf32>
    %132 = arith.addf %128, %131 : vector<2x4x4xf32>
    %c55 = arith.constant 55 : index
    %133 = memref.load %arg3[%c55] : memref<64xf32, #tpu.memory_space<smem>>
    %134 = vector.broadcast %133 : f32 to vector<2x4x4xf32>
    %135 = arith.mulf %134, %90 : vector<2x4x4xf32>
    %136 = arith.addf %132, %135 : vector<2x4x4xf32>
    %c1_76 = arith.constant 1 : index
    %c0_77 = arith.constant 0 : index
    %c0_78 = arith.constant 0 : index
    %c0_79 = arith.constant 0 : index
    %137 = vector.load %arg7[%c1_76, %c0_77, %c0_78, %c0_79] : memref<16x2x4x4xf32, #tpu.memory_space<vmem>>, vector<1x2x4x4xf32>
    %138 = vector.shape_cast %137 : vector<1x2x4x4xf32> to vector<2x4x4xf32>
    %139 = vector.shape_cast %136 : vector<2x4x4xf32> to vector<1x2x4x4xf32>
    tpu.vector_store %arg7[%c1_76, %c0_77, %c0_78, %c0_79], %139 {strides = array<i32>} : memref<16x2x4x4xf32, #tpu.memory_space<vmem>>, vector<1x2x4x4xf32>,
    %c20 = arith.constant 20 : index
    %140 = memref.load %arg3[%c20] : memref<64xf32, #tpu.memory_space<smem>>
    %141 = vector.broadcast %140 : f32 to vector<2x4x4xf32>
    %142 = arith.mulf %141, %94 : vector<2x4x4xf32>
    %143 = vector.broadcast %99 : f32 to vector<2x4x4xf32>
    %144 = arith.addf %143, %142 : vector<2x4x4xf32>
    %c16 = arith.constant 16 : index
    %145 = memref.load %arg3[%c16] : memref<64xf32, #tpu.memory_space<smem>>
    %146 = vector.broadcast %145 : f32 to vector<2x4x4xf32>
    %147 = arith.mulf %146, %95 : vector<2x4x4xf32>
    %148 = arith.addf %144, %147 : vector<2x4x4xf32>
    %c52 = arith.constant 52 : index
    %149 = memref.load %arg3[%c52] : memref<64xf32, #tpu.memory_space<smem>>
    %150 = vector.broadcast %149 : f32 to vector<2x4x4xf32>
    %151 = arith.mulf %150, %91 : vector<2x4x4xf32>
    %152 = arith.addf %148, %151 : vector<2x4x4xf32>
    %c48 = arith.constant 48 : index
    %153 = memref.load %arg3[%c48] : memref<64xf32, #tpu.memory_space<smem>>
    %154 = vector.broadcast %153 : f32 to vector<2x4x4xf32>
    %155 = arith.mulf %154, %92 : vector<2x4x4xf32>
    %156 = arith.addf %152, %155 : vector<2x4x4xf32>
    %c2_80 = arith.constant 2 : index
    %c0_81 = arith.constant 0 : index
    %c0_82 = arith.constant 0 : index
    %c0_83 = arith.constant 0 : index
    %157 = vector.load %arg7[%c2_80, %c0_81, %c0_82, %c0_83] : memref<16x2x4x4xf32, #tpu.memory_space<vmem>>, vector<1x2x4x4xf32>
    %158 = vector.shape_cast %157 : vector<1x2x4x4xf32> to vector<2x4x4xf32>
    %159 = vector.shape_cast %156 : vector<2x4x4xf32> to vector<1x2x4x4xf32>
    tpu.vector_store %arg7[%c2_80, %c0_81, %c0_82, %c0_83], %159 {strides = array<i32>} : memref<16x2x4x4xf32, #tpu.memory_space<vmem>>, vector<1x2x4x4xf32>,
    %c21 = arith.constant 21 : index
    %160 = memref.load %arg3[%c21] : memref<64xf32, #tpu.memory_space<smem>>
    %161 = vector.broadcast %160 : f32 to vector<2x4x4xf32>
    %162 = arith.mulf %161, %94 : vector<2x4x4xf32>
    %163 = vector.broadcast %99 : f32 to vector<2x4x4xf32>
    %164 = arith.addf %163, %162 : vector<2x4x4xf32>
    %c17 = arith.constant 17 : index
    %165 = memref.load %arg3[%c17] : memref<64xf32, #tpu.memory_space<smem>>
    %166 = vector.broadcast %165 : f32 to vector<2x4x4xf32>
    %167 = arith.mulf %166, %95 : vector<2x4x4xf32>
    %168 = arith.addf %164, %167 : vector<2x4x4xf32>
    %c53 = arith.constant 53 : index
    %169 = memref.load %arg3[%c53] : memref<64xf32, #tpu.memory_space<smem>>
    %170 = vector.broadcast %169 : f32 to vector<2x4x4xf32>
    %171 = arith.mulf %170, %91 : vector<2x4x4xf32>
    %172 = arith.addf %168, %171 : vector<2x4x4xf32>
    %c49 = arith.constant 49 : index
    %173 = memref.load %arg3[%c49] : memref<64xf32, #tpu.memory_space<smem>>
    %174 = vector.broadcast %173 : f32 to vector<2x4x4xf32>
    %175 = arith.mulf %174, %92 : vector<2x4x4xf32>
    %176 = arith.addf %172, %175 : vector<2x4x4xf32>
    %c3_84 = arith.constant 3 : index
    %c0_85 = arith.constant 0 : index
    %c0_86 = arith.constant 0 : index
    %c0_87 = arith.constant 0 : index
    %177 = vector.load %arg7[%c3_84, %c0_85, %c0_86, %c0_87] : memref<16x2x4x4xf32, #tpu.memory_space<vmem>>, vector<1x2x4x4xf32>
    %178 = vector.shape_cast %177 : vector<1x2x4x4xf32> to vector<2x4x4xf32>
    %179 = vector.shape_cast %176 : vector<2x4x4xf32> to vector<1x2x4x4xf32>
    tpu.vector_store %arg7[%c3_84, %c0_85, %c0_86, %c0_87], %179 {strides = array<i32>} : memref<16x2x4x4xf32, #tpu.memory_space<vmem>>, vector<1x2x4x4xf32>,
    %c26 = arith.constant 26 : index
    %180 = memref.load %arg3[%c26] : memref<64xf32, #tpu.memory_space<smem>>
    %181 = vector.broadcast %180 : f32 to vector<2x4x4xf32>
    %182 = arith.mulf %181, %94 : vector<2x4x4xf32>
    %183 = vector.broadcast %99 : f32 to vector<2x4x4xf32>
    %184 = arith.addf %183, %182 : vector<2x4x4xf32>
    %c30 = arith.constant 30 : index
    %185 = memref.load %arg3[%c30] : memref<64xf32, #tpu.memory_space<smem>>
    %186 = vector.broadcast %185 : f32 to vector<2x4x4xf32>
    %187 = arith.mulf %186, %93 : vector<2x4x4xf32>
    %188 = arith.addf %184, %187 : vector<2x4x4xf32>
    %c58 = arith.constant 58 : index
    %189 = memref.load %arg3[%c58] : memref<64xf32, #tpu.memory_space<smem>>
    %190 = vector.broadcast %189 : f32 to vector<2x4x4xf32>
    %191 = arith.mulf %190, %91 : vector<2x4x4xf32>
    %192 = arith.addf %188, %191 : vector<2x4x4xf32>
    %c62 = arith.constant 62 : index
    %193 = memref.load %arg3[%c62] : memref<64xf32, #tpu.memory_space<smem>>
    %194 = vector.broadcast %193 : f32 to vector<2x4x4xf32>
    %195 = arith.mulf %194, %90 : vector<2x4x4xf32>
    %196 = arith.addf %192, %195 : vector<2x4x4xf32>
    %c4_88 = arith.constant 4 : index
    %c0_89 = arith.constant 0 : index
    %c0_90 = arith.constant 0 : index
    %c0_91 = arith.constant 0 : index
    %197 = vector.load %arg7[%c4_88, %c0_89, %c0_90, %c0_91] : memref<16x2x4x4xf32, #tpu.memory_space<vmem>>, vector<1x2x4x4xf32>
    %198 = vector.shape_cast %197 : vector<1x2x4x4xf32> to vector<2x4x4xf32>
    %199 = vector.shape_cast %196 : vector<2x4x4xf32> to vector<1x2x4x4xf32>
    tpu.vector_store %arg7[%c4_88, %c0_89, %c0_90, %c0_91], %199 {strides = array<i32>} : memref<16x2x4x4xf32, #tpu.memory_space<vmem>>, vector<1x2x4x4xf32>,
    %c27 = arith.constant 27 : index
    %200 = memref.load %arg3[%c27] : memref<64xf32, #tpu.memory_space<smem>>
    %201 = vector.broadcast %200 : f32 to vector<2x4x4xf32>
    %202 = arith.mulf %201, %94 : vector<2x4x4xf32>
    %203 = vector.broadcast %99 : f32 to vector<2x4x4xf32>
    %204 = arith.addf %203, %202 : vector<2x4x4xf32>
    %c31 = arith.constant 31 : index
    %205 = memref.load %arg3[%c31] : memref<64xf32, #tpu.memory_space<smem>>
    %206 = vector.broadcast %205 : f32 to vector<2x4x4xf32>
    %207 = arith.mulf %206, %93 : vector<2x4x4xf32>
    %208 = arith.addf %204, %207 : vector<2x4x4xf32>
    %c59 = arith.constant 59 : index
    %209 = memref.load %arg3[%c59] : memref<64xf32, #tpu.memory_space<smem>>
    %210 = vector.broadcast %209 : f32 to vector<2x4x4xf32>
    %211 = arith.mulf %210, %91 : vector<2x4x4xf32>
    %212 = arith.addf %208, %211 : vector<2x4x4xf32>
    %c63 = arith.constant 63 : index
    %213 = memref.load %arg3[%c63] : memref<64xf32, #tpu.memory_space<smem>>
    %214 = vector.broadcast %213 : f32 to vector<2x4x4xf32>
    %215 = arith.mulf %214, %90 : vector<2x4x4xf32>
    %216 = arith.addf %212, %215 : vector<2x4x4xf32>
    %c5_92 = arith.constant 5 : index
    %c0_93 = arith.constant 0 : index
    %c0_94 = arith.constant 0 : index
    %c0_95 = arith.constant 0 : index
    %217 = vector.load %arg7[%c5_92, %c0_93, %c0_94, %c0_95] : memref<16x2x4x4xf32, #tpu.memory_space<vmem>>, vector<1x2x4x4xf32>
    %218 = vector.shape_cast %217 : vector<1x2x4x4xf32> to vector<2x4x4xf32>
    %219 = vector.shape_cast %216 : vector<2x4x4xf32> to vector<1x2x4x4xf32>
    tpu.vector_store %arg7[%c5_92, %c0_93, %c0_94, %c0_95], %219 {strides = array<i32>} : memref<16x2x4x4xf32, #tpu.memory_space<vmem>>, vector<1x2x4x4xf32>,
    %c28 = arith.constant 28 : index
    %220 = memref.load %arg3[%c28] : memref<64xf32, #tpu.memory_space<smem>>
    %221 = vector.broadcast %220 : f32 to vector<2x4x4xf32>
    %222 = arith.mulf %221, %94 : vector<2x4x4xf32>
    %223 = vector.broadcast %99 : f32 to vector<2x4x4xf32>
    %224 = arith.addf %223, %222 : vector<2x4x4xf32>
    %c24 = arith.constant 24 : index
    %225 = memref.load %arg3[%c24] : memref<64xf32, #tpu.memory_space<smem>>
    %226 = vector.broadcast %225 : f32 to vector<2x4x4xf32>
    %227 = arith.mulf %226, %95 : vector<2x4x4xf32>
    %228 = arith.addf %224, %227 : vector<2x4x4xf32>
    %c60 = arith.constant 60 : index
    %229 = memref.load %arg3[%c60] : memref<64xf32, #tpu.memory_space<smem>>
    %230 = vector.broadcast %229 : f32 to vector<2x4x4xf32>
    %231 = arith.mulf %230, %91 : vector<2x4x4xf32>
    %232 = arith.addf %228, %231 : vector<2x4x4xf32>
    %c56 = arith.constant 56 : index
    %233 = memref.load %arg3[%c56] : memref<64xf32, #tpu.memory_space<smem>>
    %234 = vector.broadcast %233 : f32 to vector<2x4x4xf32>
    %235 = arith.mulf %234, %92 : vector<2x4x4xf32>
    %236 = arith.addf %232, %235 : vector<2x4x4xf32>
    %c6_96 = arith.constant 6 : index
    %c0_97 = arith.constant 0 : index
    %c0_98 = arith.constant 0 : index
    %c0_99 = arith.constant 0 : index
    %237 = vector.load %arg7[%c6_96, %c0_97, %c0_98, %c0_99] : memref<16x2x4x4xf32, #tpu.memory_space<vmem>>, vector<1x2x4x4xf32>
    %238 = vector.shape_cast %237 : vector<1x2x4x4xf32> to vector<2x4x4xf32>
    %239 = vector.shape_cast %236 : vector<2x4x4xf32> to vector<1x2x4x4xf32>
    tpu.vector_store %arg7[%c6_96, %c0_97, %c0_98, %c0_99], %239 {strides = array<i32>} : memref<16x2x4x4xf32, #tpu.memory_space<vmem>>, vector<1x2x4x4xf32>,
    %c29 = arith.constant 29 : index
    %240 = memref.load %arg3[%c29] : memref<64xf32, #tpu.memory_space<smem>>
    %241 = vector.broadcast %240 : f32 to vector<2x4x4xf32>
    %242 = arith.mulf %241, %94 : vector<2x4x4xf32>
    %243 = vector.broadcast %99 : f32 to vector<2x4x4xf32>
    %244 = arith.addf %243, %242 : vector<2x4x4xf32>
    %c25 = arith.constant 25 : index
    %245 = memref.load %arg3[%c25] : memref<64xf32, #tpu.memory_space<smem>>
    %246 = vector.broadcast %245 : f32 to vector<2x4x4xf32>
    %247 = arith.mulf %246, %95 : vector<2x4x4xf32>
    %248 = arith.addf %244, %247 : vector<2x4x4xf32>
    %c61 = arith.constant 61 : index
    %249 = memref.load %arg3[%c61] : memref<64xf32, #tpu.memory_space<smem>>
    %250 = vector.broadcast %249 : f32 to vector<2x4x4xf32>
    %251 = arith.mulf %250, %91 : vector<2x4x4xf32>
    %252 = arith.addf %248, %251 : vector<2x4x4xf32>
    %c57 = arith.constant 57 : index
    %253 = memref.load %arg3[%c57] : memref<64xf32, #tpu.memory_space<smem>>
    %254 = vector.broadcast %253 : f32 to vector<2x4x4xf32>
    %255 = arith.mulf %254, %92 : vector<2x4x4xf32>
    %256 = arith.addf %252, %255 : vector<2x4x4xf32>
    %c7_100 = arith.constant 7 : index
    %c0_101 = arith.constant 0 : index
    %c0_102 = arith.constant 0 : index
    %c0_103 = arith.constant 0 : index
    %257 = vector.load %arg7[%c7_100, %c0_101, %c0_102, %c0_103] : memref<16x2x4x4xf32, #tpu.memory_space<vmem>>, vector<1x2x4x4xf32>
    %258 = vector.shape_cast %257 : vector<1x2x4x4xf32> to vector<2x4x4xf32>
    %259 = vector.shape_cast %256 : vector<2x4x4xf32> to vector<1x2x4x4xf32>
    tpu.vector_store %arg7[%c7_100, %c0_101, %c0_102, %c0_103], %259 {strides = array<i32>} : memref<16x2x4x4xf32, #tpu.memory_space<vmem>>, vector<1x2x4x4xf32>,
    %c34 = arith.constant 34 : index
    %260 = memref.load %arg3[%c34] : memref<64xf32, #tpu.memory_space<smem>>
    %261 = vector.broadcast %260 : f32 to vector<2x4x4xf32>
    %262 = arith.mulf %261, %94 : vector<2x4x4xf32>
    %263 = vector.broadcast %99 : f32 to vector<2x4x4xf32>
    %264 = arith.addf %263, %262 : vector<2x4x4xf32>
    %c38 = arith.constant 38 : index
    %265 = memref.load %arg3[%c38] : memref<64xf32, #tpu.memory_space<smem>>
    %266 = vector.broadcast %265 : f32 to vector<2x4x4xf32>
    %267 = arith.mulf %266, %93 : vector<2x4x4xf32>
    %268 = arith.addf %264, %267 : vector<2x4x4xf32>
    %c2_104 = arith.constant 2 : index
    %269 = memref.load %arg3[%c2_104] : memref<64xf32, #tpu.memory_space<smem>>
    %270 = vector.broadcast %269 : f32 to vector<2x4x4xf32>
    %271 = arith.mulf %270, %97 : vector<2x4x4xf32>
    %272 = arith.addf %268, %271 : vector<2x4x4xf32>
    %c6_105 = arith.constant 6 : index
    %273 = memref.load %arg3[%c6_105] : memref<64xf32, #tpu.memory_space<smem>>
    %274 = vector.broadcast %273 : f32 to vector<2x4x4xf32>
    %275 = arith.mulf %274, %96 : vector<2x4x4xf32>
    %276 = arith.addf %272, %275 : vector<2x4x4xf32>
    %c8_106 = arith.constant 8 : index
    %c0_107 = arith.constant 0 : index
    %c0_108 = arith.constant 0 : index
    %c0_109 = arith.constant 0 : index
    %277 = vector.load %arg7[%c8_106, %c0_107, %c0_108, %c0_109] : memref<16x2x4x4xf32, #tpu.memory_space<vmem>>, vector<1x2x4x4xf32>
    %278 = vector.shape_cast %277 : vector<1x2x4x4xf32> to vector<2x4x4xf32>
    %279 = vector.shape_cast %276 : vector<2x4x4xf32> to vector<1x2x4x4xf32>
    tpu.vector_store %arg7[%c8_106, %c0_107, %c0_108, %c0_109], %279 {strides = array<i32>} : memref<16x2x4x4xf32, #tpu.memory_space<vmem>>, vector<1x2x4x4xf32>,
    %c35 = arith.constant 35 : index
    %280 = memref.load %arg3[%c35] : memref<64xf32, #tpu.memory_space<smem>>
    %281 = vector.broadcast %280 : f32 to vector<2x4x4xf32>
    %282 = arith.mulf %281, %94 : vector<2x4x4xf32>
    %283 = vector.broadcast %99 : f32 to vector<2x4x4xf32>
    %284 = arith.addf %283, %282 : vector<2x4x4xf32>
    %c39 = arith.constant 39 : index
    %285 = memref.load %arg3[%c39] : memref<64xf32, #tpu.memory_space<smem>>
    %286 = vector.broadcast %285 : f32 to vector<2x4x4xf32>
    %287 = arith.mulf %286, %93 : vector<2x4x4xf32>
    %288 = arith.addf %284, %287 : vector<2x4x4xf32>
    %c3_110 = arith.constant 3 : index
    %289 = memref.load %arg3[%c3_110] : memref<64xf32, #tpu.memory_space<smem>>
    %290 = vector.broadcast %289 : f32 to vector<2x4x4xf32>
    %291 = arith.mulf %290, %97 : vector<2x4x4xf32>
    %292 = arith.addf %288, %291 : vector<2x4x4xf32>
    %c7_111 = arith.constant 7 : index
    %293 = memref.load %arg3[%c7_111] : memref<64xf32, #tpu.memory_space<smem>>
    %294 = vector.broadcast %293 : f32 to vector<2x4x4xf32>
    %295 = arith.mulf %294, %96 : vector<2x4x4xf32>
    %296 = arith.addf %292, %295 : vector<2x4x4xf32>
    %c9_112 = arith.constant 9 : index
    %c0_113 = arith.constant 0 : index
    %c0_114 = arith.constant 0 : index
    %c0_115 = arith.constant 0 : index
    %297 = vector.load %arg7[%c9_112, %c0_113, %c0_114, %c0_115] : memref<16x2x4x4xf32, #tpu.memory_space<vmem>>, vector<1x2x4x4xf32>
    %298 = vector.shape_cast %297 : vector<1x2x4x4xf32> to vector<2x4x4xf32>
    %299 = vector.shape_cast %296 : vector<2x4x4xf32> to vector<1x2x4x4xf32>
    tpu.vector_store %arg7[%c9_112, %c0_113, %c0_114, %c0_115], %299 {strides = array<i32>} : memref<16x2x4x4xf32, #tpu.memory_space<vmem>>, vector<1x2x4x4xf32>,
    %c36 = arith.constant 36 : index
    %300 = memref.load %arg3[%c36] : memref<64xf32, #tpu.memory_space<smem>>
    %301 = vector.broadcast %300 : f32 to vector<2x4x4xf32>
    %302 = arith.mulf %301, %94 : vector<2x4x4xf32>
    %303 = vector.broadcast %99 : f32 to vector<2x4x4xf32>
    %304 = arith.addf %303, %302 : vector<2x4x4xf32>
    %c32 = arith.constant 32 : index
    %305 = memref.load %arg3[%c32] : memref<64xf32, #tpu.memory_space<smem>>
    %306 = vector.broadcast %305 : f32 to vector<2x4x4xf32>
    %307 = arith.mulf %306, %95 : vector<2x4x4xf32>
    %308 = arith.addf %304, %307 : vector<2x4x4xf32>
    %c4_116 = arith.constant 4 : index
    %309 = memref.load %arg3[%c4_116] : memref<64xf32, #tpu.memory_space<smem>>
    %310 = vector.broadcast %309 : f32 to vector<2x4x4xf32>
    %311 = arith.mulf %310, %97 : vector<2x4x4xf32>
    %312 = arith.addf %308, %311 : vector<2x4x4xf32>
    %c0_117 = arith.constant 0 : index
    %313 = memref.load %arg3[%c0_117] : memref<64xf32, #tpu.memory_space<smem>>
    %314 = vector.broadcast %313 : f32 to vector<2x4x4xf32>
    %315 = arith.mulf %314, %98 : vector<2x4x4xf32>
    %316 = arith.addf %312, %315 : vector<2x4x4xf32>
    %c10_118 = arith.constant 10 : index
    %c0_119 = arith.constant 0 : index
    %c0_120 = arith.constant 0 : index
    %c0_121 = arith.constant 0 : index
    %317 = vector.load %arg7[%c10_118, %c0_119, %c0_120, %c0_121] : memref<16x2x4x4xf32, #tpu.memory_space<vmem>>, vector<1x2x4x4xf32>
    %318 = vector.shape_cast %317 : vector<1x2x4x4xf32> to vector<2x4x4xf32>
    %319 = vector.shape_cast %316 : vector<2x4x4xf32> to vector<1x2x4x4xf32>
    tpu.vector_store %arg7[%c10_118, %c0_119, %c0_120, %c0_121], %319 {strides = array<i32>} : memref<16x2x4x4xf32, #tpu.memory_space<vmem>>, vector<1x2x4x4xf32>,
    %c37 = arith.constant 37 : index
    %320 = memref.load %arg3[%c37] : memref<64xf32, #tpu.memory_space<smem>>
    %321 = vector.broadcast %320 : f32 to vector<2x4x4xf32>
    %322 = arith.mulf %321, %94 : vector<2x4x4xf32>
    %323 = vector.broadcast %99 : f32 to vector<2x4x4xf32>
    %324 = arith.addf %323, %322 : vector<2x4x4xf32>
    %c33 = arith.constant 33 : index
    %325 = memref.load %arg3[%c33] : memref<64xf32, #tpu.memory_space<smem>>
    %326 = vector.broadcast %325 : f32 to vector<2x4x4xf32>
    %327 = arith.mulf %326, %95 : vector<2x4x4xf32>
    %328 = arith.addf %324, %327 : vector<2x4x4xf32>
    %c5_122 = arith.constant 5 : index
    %329 = memref.load %arg3[%c5_122] : memref<64xf32, #tpu.memory_space<smem>>
    %330 = vector.broadcast %329 : f32 to vector<2x4x4xf32>
    %331 = arith.mulf %330, %97 : vector<2x4x4xf32>
    %332 = arith.addf %328, %331 : vector<2x4x4xf32>
    %c1_123 = arith.constant 1 : index
    %333 = memref.load %arg3[%c1_123] : memref<64xf32, #tpu.memory_space<smem>>
    %334 = vector.broadcast %333 : f32 to vector<2x4x4xf32>
    %335 = arith.mulf %334, %98 : vector<2x4x4xf32>
    %336 = arith.addf %332, %335 : vector<2x4x4xf32>
    %c11_124 = arith.constant 11 : index
    %c0_125 = arith.constant 0 : index
    %c0_126 = arith.constant 0 : index
    %c0_127 = arith.constant 0 : index
    %337 = vector.load %arg7[%c11_124, %c0_125, %c0_126, %c0_127] : memref<16x2x4x4xf32, #tpu.memory_space<vmem>>, vector<1x2x4x4xf32>
    %338 = vector.shape_cast %337 : vector<1x2x4x4xf32> to vector<2x4x4xf32>
    %339 = vector.shape_cast %336 : vector<2x4x4xf32> to vector<1x2x4x4xf32>
    tpu.vector_store %arg7[%c11_124, %c0_125, %c0_126, %c0_127], %339 {strides = array<i32>} : memref<16x2x4x4xf32, #tpu.memory_space<vmem>>, vector<1x2x4x4xf32>,
    %c42 = arith.constant 42 : index
    %340 = memref.load %arg3[%c42] : memref<64xf32, #tpu.memory_space<smem>>
    %341 = vector.broadcast %340 : f32 to vector<2x4x4xf32>
    %342 = arith.mulf %341, %94 : vector<2x4x4xf32>
    %343 = vector.broadcast %99 : f32 to vector<2x4x4xf32>
    %344 = arith.addf %343, %342 : vector<2x4x4xf32>
    %c46 = arith.constant 46 : index
    %345 = memref.load %arg3[%c46] : memref<64xf32, #tpu.memory_space<smem>>
    %346 = vector.broadcast %345 : f32 to vector<2x4x4xf32>
    %347 = arith.mulf %346, %93 : vector<2x4x4xf32>
    %348 = arith.addf %344, %347 : vector<2x4x4xf32>
    %c10_128 = arith.constant 10 : index
    %349 = memref.load %arg3[%c10_128] : memref<64xf32, #tpu.memory_space<smem>>
    %350 = vector.broadcast %349 : f32 to vector<2x4x4xf32>
    %351 = arith.mulf %350, %97 : vector<2x4x4xf32>
    %352 = arith.addf %348, %351 : vector<2x4x4xf32>
    %c14_129 = arith.constant 14 : index
    %353 = memref.load %arg3[%c14_129] : memref<64xf32, #tpu.memory_space<smem>>
    %354 = vector.broadcast %353 : f32 to vector<2x4x4xf32>
    %355 = arith.mulf %354, %96 : vector<2x4x4xf32>
    %356 = arith.addf %352, %355 : vector<2x4x4xf32>
    %c12_130 = arith.constant 12 : index
    %c0_131 = arith.constant 0 : index
    %c0_132 = arith.constant 0 : index
    %c0_133 = arith.constant 0 : index
    %357 = vector.load %arg7[%c12_130, %c0_131, %c0_132, %c0_133] : memref<16x2x4x4xf32, #tpu.memory_space<vmem>>, vector<1x2x4x4xf32>
    %358 = vector.shape_cast %357 : vector<1x2x4x4xf32> to vector<2x4x4xf32>
    %359 = vector.shape_cast %356 : vector<2x4x4xf32> to vector<1x2x4x4xf32>
    tpu.vector_store %arg7[%c12_130, %c0_131, %c0_132, %c0_133], %359 {strides = array<i32>} : memref<16x2x4x4xf32, #tpu.memory_space<vmem>>, vector<1x2x4x4xf32>,
    %c43 = arith.constant 43 : index
    %360 = memref.load %arg3[%c43] : memref<64xf32, #tpu.memory_space<smem>>
    %361 = vector.broadcast %360 : f32 to vector<2x4x4xf32>
    %362 = arith.mulf %361, %94 : vector<2x4x4xf32>
    %363 = vector.broadcast %99 : f32 to vector<2x4x4xf32>
    %364 = arith.addf %363, %362 : vector<2x4x4xf32>
    %c47 = arith.constant 47 : index
    %365 = memref.load %arg3[%c47] : memref<64xf32, #tpu.memory_space<smem>>
    %366 = vector.broadcast %365 : f32 to vector<2x4x4xf32>
    %367 = arith.mulf %366, %93 : vector<2x4x4xf32>
    %368 = arith.addf %364, %367 : vector<2x4x4xf32>
    %c11_134 = arith.constant 11 : index
    %369 = memref.load %arg3[%c11_134] : memref<64xf32, #tpu.memory_space<smem>>
    %370 = vector.broadcast %369 : f32 to vector<2x4x4xf32>
    %371 = arith.mulf %370, %97 : vector<2x4x4xf32>
    %372 = arith.addf %368, %371 : vector<2x4x4xf32>
    %c15_135 = arith.constant 15 : index
    %373 = memref.load %arg3[%c15_135] : memref<64xf32, #tpu.memory_space<smem>>
    %374 = vector.broadcast %373 : f32 to vector<2x4x4xf32>
    %375 = arith.mulf %374, %96 : vector<2x4x4xf32>
    %376 = arith.addf %372, %375 : vector<2x4x4xf32>
    %c13_136 = arith.constant 13 : index
    %c0_137 = arith.constant 0 : index
    %c0_138 = arith.constant 0 : index
    %c0_139 = arith.constant 0 : index
    %377 = vector.load %arg7[%c13_136, %c0_137, %c0_138, %c0_139] : memref<16x2x4x4xf32, #tpu.memory_space<vmem>>, vector<1x2x4x4xf32>
    %378 = vector.shape_cast %377 : vector<1x2x4x4xf32> to vector<2x4x4xf32>
    %379 = vector.shape_cast %376 : vector<2x4x4xf32> to vector<1x2x4x4xf32>
    tpu.vector_store %arg7[%c13_136, %c0_137, %c0_138, %c0_139], %379 {strides = array<i32>} : memref<16x2x4x4xf32, #tpu.memory_space<vmem>>, vector<1x2x4x4xf32>,
    %c44 = arith.constant 44 : index
    %380 = memref.load %arg3[%c44] : memref<64xf32, #tpu.memory_space<smem>>
    %381 = vector.broadcast %380 : f32 to vector<2x4x4xf32>
    %382 = arith.mulf %381, %94 : vector<2x4x4xf32>
    %383 = vector.broadcast %99 : f32 to vector<2x4x4xf32>
    %384 = arith.addf %383, %382 : vector<2x4x4xf32>
    %c40 = arith.constant 40 : index
    %385 = memref.load %arg3[%c40] : memref<64xf32, #tpu.memory_space<smem>>
    %386 = vector.broadcast %385 : f32 to vector<2x4x4xf32>
    %387 = arith.mulf %386, %95 : vector<2x4x4xf32>
    %388 = arith.addf %384, %387 : vector<2x4x4xf32>
    %c12_140 = arith.constant 12 : index
    %389 = memref.load %arg3[%c12_140] : memref<64xf32, #tpu.memory_space<smem>>
    %390 = vector.broadcast %389 : f32 to vector<2x4x4xf32>
    %391 = arith.mulf %390, %97 : vector<2x4x4xf32>
    %392 = arith.addf %388, %391 : vector<2x4x4xf32>
    %c8_141 = arith.constant 8 : index
    %393 = memref.load %arg3[%c8_141] : memref<64xf32, #tpu.memory_space<smem>>
    %394 = vector.broadcast %393 : f32 to vector<2x4x4xf32>
    %395 = arith.mulf %394, %98 : vector<2x4x4xf32>
    %396 = arith.addf %392, %395 : vector<2x4x4xf32>
    %c14_142 = arith.constant 14 : index
    %c0_143 = arith.constant 0 : index
    %c0_144 = arith.constant 0 : index
    %c0_145 = arith.constant 0 : index
    %397 = vector.load %arg7[%c14_142, %c0_143, %c0_144, %c0_145] : memref<16x2x4x4xf32, #tpu.memory_space<vmem>>, vector<1x2x4x4xf32>
    %398 = vector.shape_cast %397 : vector<1x2x4x4xf32> to vector<2x4x4xf32>
    %399 = vector.shape_cast %396 : vector<2x4x4xf32> to vector<1x2x4x4xf32>
    tpu.vector_store %arg7[%c14_142, %c0_143, %c0_144, %c0_145], %399 {strides = array<i32>} : memref<16x2x4x4xf32, #tpu.memory_space<vmem>>, vector<1x2x4x4xf32>,
    %c45 = arith.constant 45 : index
    %400 = memref.load %arg3[%c45] : memref<64xf32, #tpu.memory_space<smem>>
    %401 = vector.broadcast %400 : f32 to vector<2x4x4xf32>
    %402 = arith.mulf %401, %94 : vector<2x4x4xf32>
    %403 = vector.broadcast %99 : f32 to vector<2x4x4xf32>
    %404 = arith.addf %403, %402 : vector<2x4x4xf32>
    %c41 = arith.constant 41 : index
    %405 = memref.load %arg3[%c41] : memref<64xf32, #tpu.memory_space<smem>>
    %406 = vector.broadcast %405 : f32 to vector<2x4x4xf32>
    %407 = arith.mulf %406, %95 : vector<2x4x4xf32>
    %408 = arith.addf %404, %407 : vector<2x4x4xf32>
    %c13_146 = arith.constant 13 : index
    %409 = memref.load %arg3[%c13_146] : memref<64xf32, #tpu.memory_space<smem>>
    %410 = vector.broadcast %409 : f32 to vector<2x4x4xf32>
    %411 = arith.mulf %410, %97 : vector<2x4x4xf32>
    %412 = arith.addf %408, %411 : vector<2x4x4xf32>
    %c9_147 = arith.constant 9 : index
    %413 = memref.load %arg3[%c9_147] : memref<64xf32, #tpu.memory_space<smem>>
    %414 = vector.broadcast %413 : f32 to vector<2x4x4xf32>
    %415 = arith.mulf %414, %98 : vector<2x4x4xf32>
    %416 = arith.addf %412, %415 : vector<2x4x4xf32>
    %c15_148 = arith.constant 15 : index
    %c0_149 = arith.constant 0 : index
    %c0_150 = arith.constant 0 : index
    %c0_151 = arith.constant 0 : index
    %417 = vector.load %arg7[%c15_148, %c0_149, %c0_150, %c0_151] : memref<16x2x4x4xf32, #tpu.memory_space<vmem>>, vector<1x2x4x4xf32>
    %418 = vector.shape_cast %417 : vector<1x2x4x4xf32> to vector<2x4x4xf32>
    %419 = vector.shape_cast %416 : vector<2x4x4xf32> to vector<1x2x4x4xf32>
    tpu.vector_store %arg7[%c15_148, %c0_149, %c0_150, %c0_151], %419 {strides = array<i32>} : memref<16x2x4x4xf32, #tpu.memory_space<vmem>>, vector<1x2x4x4xf32>,
    return
  }
}

module attributes {stable_mosaic.version = 11 : i64} {
  func.func @kernel(%arg0: memref<3xf32, #tpu.memory_space<smem>>, %arg1: memref<1xf32, #tpu.memory_space<smem>>, %arg2: memref<16xf32, #tpu.memory_space<smem>>, %arg3: memref<1xf32, #tpu.memory_space<smem>>, %arg4: memref<2x16x16xf32, #tpu.memory_space<vmem>>, %arg5: memref<2x16x16xf32, #tpu.memory_space<vmem>>, %arg6: memref<2x16x16xf32, #tpu.memory_space<vmem>>, %arg7: memref<4x2x16x16xf32, #tpu.memory_space<vmem>>, %arg8: memref<2x18x18xf32, #tpu.memory_space<vmem>>) attributes {dimension_semantics = [], scalar_prefetch = 0 : i64, scratch_operands = 1 : i64, tpu.core_type = #tpu.core_type<tc>} {
    %c0 = arith.constant 0 : index
    %0 = memref.load %arg0[%c0] : memref<3xf32, #tpu.memory_space<smem>>
    %c0_0 = arith.constant 0 : index
    %c0_1 = arith.constant 0 : index
    %c0_2 = arith.constant 0 : index
    %1 = vector.load %arg4[%c0_0, %c0_1, %c0_2] : memref<2x16x16xf32, #tpu.memory_space<vmem>>, vector<2x16x16xf32>
    %2 = vector.broadcast %0 : f32 to vector<2x16x16xf32>
    %3 = arith.mulf %2, %1 : vector<2x16x16xf32>
    %c1 = arith.constant 1 : index
    %4 = memref.load %arg0[%c1] : memref<3xf32, #tpu.memory_space<smem>>
    %c0_3 = arith.constant 0 : index
    %c0_4 = arith.constant 0 : index
    %c0_5 = arith.constant 0 : index
    %5 = vector.load %arg5[%c0_3, %c0_4, %c0_5] : memref<2x16x16xf32, #tpu.memory_space<vmem>>, vector<2x16x16xf32>
    %6 = vector.broadcast %4 : f32 to vector<2x16x16xf32>
    %7 = arith.mulf %6, %5 : vector<2x16x16xf32>
    %8 = arith.addf %3, %7 : vector<2x16x16xf32>
    %c2 = arith.constant 2 : index
    %9 = memref.load %arg0[%c2] : memref<3xf32, #tpu.memory_space<smem>>
    %c0_6 = arith.constant 0 : index
    %c0_7 = arith.constant 0 : index
    %c0_8 = arith.constant 0 : index
    %10 = vector.load %arg6[%c0_6, %c0_7, %c0_8] : memref<2x16x16xf32, #tpu.memory_space<vmem>>, vector<2x16x16xf32>
    %11 = vector.broadcast %9 : f32 to vector<2x16x16xf32>
    %12 = arith.mulf %11, %10 : vector<2x16x16xf32>
    %13 = arith.addf %8, %12 : vector<2x16x16xf32>
    %c0_9 = arith.constant 0 : index
    %14 = memref.load %arg1[%c0_9] : memref<1xf32, #tpu.memory_space<smem>>
    %15 = vector.broadcast %14 : f32 to vector<2x16x16xf32>
    %16 = arith.addf %13, %15 : vector<2x16x16xf32>
    %cst = arith.constant 0.000000e+00 : f32
    %17 = vector.broadcast %cst : f32 to vector<2x18x18xf32>
    %c0_10 = arith.constant 0 : index
    %c0_11 = arith.constant 0 : index
    %c0_12 = arith.constant 0 : index
    %18 = vector.load %arg8[%c0_10, %c0_11, %c0_12] : memref<2x18x18xf32, #tpu.memory_space<vmem>>, vector<2x18x18xf32>
    tpu.vector_store %arg8[%c0_10, %c0_11, %c0_12], %17 {strides = array<i32>} : memref<2x18x18xf32, #tpu.memory_space<vmem>>, vector<2x18x18xf32>,
    %c0_13 = arith.constant 0 : index
    %c1_14 = arith.constant 1 : index
    %c1_15 = arith.constant 1 : index
    %19 = vector.load %arg8[%c0_13, %c1_14, %c1_15] : memref<2x18x18xf32, #tpu.memory_space<vmem>>, vector<2x16x16xf32>
    tpu.vector_store %arg8[%c0_13, %c1_14, %c1_15], %16 {strides = array<i32>} : memref<2x18x18xf32, #tpu.memory_space<vmem>>, vector<2x16x16xf32>,
    %c0_16 = arith.constant 0 : index
    %c0_17 = arith.constant 0 : index
    %c0_18 = arith.constant 0 : index
    %20 = vector.load %arg8[%c0_16, %c0_17, %c0_18] : memref<2x18x18xf32, #tpu.memory_space<vmem>>, vector<2x16x16xf32>
    %c0_19 = arith.constant 0 : index
    %c0_20 = arith.constant 0 : index
    %c1_21 = arith.constant 1 : index
    %21 = vector.load %arg8[%c0_19, %c0_20, %c1_21] : memref<2x18x18xf32, #tpu.memory_space<vmem>>, vector<2x16x16xf32>
    %c0_22 = arith.constant 0 : index
    %c0_23 = arith.constant 0 : index
    %c2_24 = arith.constant 2 : index
    %22 = vector.load %arg8[%c0_22, %c0_23, %c2_24] : memref<2x18x18xf32, #tpu.memory_space<vmem>>, vector<2x16x16xf32>
    %c0_25 = arith.constant 0 : index
    %c1_26 = arith.constant 1 : index
    %c0_27 = arith.constant 0 : index
    %23 = vector.load %arg8[%c0_25, %c1_26, %c0_27] : memref<2x18x18xf32, #tpu.memory_space<vmem>>, vector<2x16x16xf32>
    %c0_28 = arith.constant 0 : index
    %c1_29 = arith.constant 1 : index
    %c1_30 = arith.constant 1 : index
    %24 = vector.load %arg8[%c0_28, %c1_29, %c1_30] : memref<2x18x18xf32, #tpu.memory_space<vmem>>, vector<2x16x16xf32>
    %c0_31 = arith.constant 0 : index
    %c1_32 = arith.constant 1 : index
    %c2_33 = arith.constant 2 : index
    %25 = vector.load %arg8[%c0_31, %c1_32, %c2_33] : memref<2x18x18xf32, #tpu.memory_space<vmem>>, vector<2x16x16xf32>
    %c0_34 = arith.constant 0 : index
    %c2_35 = arith.constant 2 : index
    %c0_36 = arith.constant 0 : index
    %26 = vector.load %arg8[%c0_34, %c2_35, %c0_36] : memref<2x18x18xf32, #tpu.memory_space<vmem>>, vector<2x16x16xf32>
    %c0_37 = arith.constant 0 : index
    %c2_38 = arith.constant 2 : index
    %c1_39 = arith.constant 1 : index
    %27 = vector.load %arg8[%c0_37, %c2_38, %c1_39] : memref<2x18x18xf32, #tpu.memory_space<vmem>>, vector<2x16x16xf32>
    %c0_40 = arith.constant 0 : index
    %c2_41 = arith.constant 2 : index
    %c2_42 = arith.constant 2 : index
    %28 = vector.load %arg8[%c0_40, %c2_41, %c2_42] : memref<2x18x18xf32, #tpu.memory_space<vmem>>, vector<2x16x16xf32>
    %c0_43 = arith.constant 0 : index
    %29 = memref.load %arg3[%c0_43] : memref<1xf32, #tpu.memory_space<smem>>
    %c5 = arith.constant 5 : index
    %30 = memref.load %arg2[%c5] : memref<16xf32, #tpu.memory_space<smem>>
    %31 = vector.broadcast %30 : f32 to vector<2x16x16xf32>
    %32 = arith.mulf %31, %24 : vector<2x16x16xf32>
    %33 = vector.broadcast %29 : f32 to vector<2x16x16xf32>
    %34 = arith.addf %33, %32 : vector<2x16x16xf32>
    %c7 = arith.constant 7 : index
    %35 = memref.load %arg2[%c7] : memref<16xf32, #tpu.memory_space<smem>>
    %36 = vector.broadcast %35 : f32 to vector<2x16x16xf32>
    %37 = arith.mulf %36, %23 : vector<2x16x16xf32>
    %38 = arith.addf %34, %37 : vector<2x16x16xf32>
    %c13 = arith.constant 13 : index
    %39 = memref.load %arg2[%c13] : memref<16xf32, #tpu.memory_space<smem>>
    %40 = vector.broadcast %39 : f32 to vector<2x16x16xf32>
    %41 = arith.mulf %40, %21 : vector<2x16x16xf32>
    %42 = arith.addf %38, %41 : vector<2x16x16xf32>
    %c15 = arith.constant 15 : index
    %43 = memref.load %arg2[%c15] : memref<16xf32, #tpu.memory_space<smem>>
    %44 = vector.broadcast %43 : f32 to vector<2x16x16xf32>
    %45 = arith.mulf %44, %20 : vector<2x16x16xf32>
    %46 = arith.addf %42, %45 : vector<2x16x16xf32>
    %c0_44 = arith.constant 0 : index
    %c0_45 = arith.constant 0 : index
    %c0_46 = arith.constant 0 : index
    %c0_47 = arith.constant 0 : index
    %47 = vector.load %arg7[%c0_44, %c0_45, %c0_46, %c0_47] : memref<4x2x16x16xf32, #tpu.memory_space<vmem>>, vector<1x2x16x16xf32>
    %48 = vector.shape_cast %47 : vector<1x2x16x16xf32> to vector<2x16x16xf32>
    %49 = vector.shape_cast %46 : vector<2x16x16xf32> to vector<1x2x16x16xf32>
    tpu.vector_store %arg7[%c0_44, %c0_45, %c0_46, %c0_47], %49 {strides = array<i32>} : memref<4x2x16x16xf32, #tpu.memory_space<vmem>>, vector<1x2x16x16xf32>,
    %c6 = arith.constant 6 : index
    %50 = memref.load %arg2[%c6] : memref<16xf32, #tpu.memory_space<smem>>
    %51 = vector.broadcast %50 : f32 to vector<2x16x16xf32>
    %52 = arith.mulf %51, %24 : vector<2x16x16xf32>
    %53 = vector.broadcast %29 : f32 to vector<2x16x16xf32>
    %54 = arith.addf %53, %52 : vector<2x16x16xf32>
    %c4 = arith.constant 4 : index
    %55 = memref.load %arg2[%c4] : memref<16xf32, #tpu.memory_space<smem>>
    %56 = vector.broadcast %55 : f32 to vector<2x16x16xf32>
    %57 = arith.mulf %56, %25 : vector<2x16x16xf32>
    %58 = arith.addf %54, %57 : vector<2x16x16xf32>
    %c14 = arith.constant 14 : index
    %59 = memref.load %arg2[%c14] : memref<16xf32, #tpu.memory_space<smem>>
    %60 = vector.broadcast %59 : f32 to vector<2x16x16xf32>
    %61 = arith.mulf %60, %21 : vector<2x16x16xf32>
    %62 = arith.addf %58, %61 : vector<2x16x16xf32>
    %c12 = arith.constant 12 : index
    %63 = memref.load %arg2[%c12] : memref<16xf32, #tpu.memory_space<smem>>
    %64 = vector.broadcast %63 : f32 to vector<2x16x16xf32>
    %65 = arith.mulf %64, %22 : vector<2x16x16xf32>
    %66 = arith.addf %62, %65 : vector<2x16x16xf32>
    %c1_48 = arith.constant 1 : index
    %c0_49 = arith.constant 0 : index
    %c0_50 = arith.constant 0 : index
    %c0_51 = arith.constant 0 : index
    %67 = vector.load %arg7[%c1_48, %c0_49, %c0_50, %c0_51] : memref<4x2x16x16xf32, #tpu.memory_space<vmem>>, vector<1x2x16x16xf32>
    %68 = vector.shape_cast %67 : vector<1x2x16x16xf32> to vector<2x16x16xf32>
    %69 = vector.shape_cast %66 : vector<2x16x16xf32> to vector<1x2x16x16xf32>
    tpu.vector_store %arg7[%c1_48, %c0_49, %c0_50, %c0_51], %69 {strides = array<i32>} : memref<4x2x16x16xf32, #tpu.memory_space<vmem>>, vector<1x2x16x16xf32>,
    %c9 = arith.constant 9 : index
    %70 = memref.load %arg2[%c9] : memref<16xf32, #tpu.memory_space<smem>>
    %71 = vector.broadcast %70 : f32 to vector<2x16x16xf32>
    %72 = arith.mulf %71, %24 : vector<2x16x16xf32>
    %73 = vector.broadcast %29 : f32 to vector<2x16x16xf32>
    %74 = arith.addf %73, %72 : vector<2x16x16xf32>
    %c11 = arith.constant 11 : index
    %75 = memref.load %arg2[%c11] : memref<16xf32, #tpu.memory_space<smem>>
    %76 = vector.broadcast %75 : f32 to vector<2x16x16xf32>
    %77 = arith.mulf %76, %23 : vector<2x16x16xf32>
    %78 = arith.addf %74, %77 : vector<2x16x16xf32>
    %c1_52 = arith.constant 1 : index
    %79 = memref.load %arg2[%c1_52] : memref<16xf32, #tpu.memory_space<smem>>
    %80 = vector.broadcast %79 : f32 to vector<2x16x16xf32>
    %81 = arith.mulf %80, %27 : vector<2x16x16xf32>
    %82 = arith.addf %78, %81 : vector<2x16x16xf32>
    %c3 = arith.constant 3 : index
    %83 = memref.load %arg2[%c3] : memref<16xf32, #tpu.memory_space<smem>>
    %84 = vector.broadcast %83 : f32 to vector<2x16x16xf32>
    %85 = arith.mulf %84, %26 : vector<2x16x16xf32>
    %86 = arith.addf %82, %85 : vector<2x16x16xf32>
    %c2_53 = arith.constant 2 : index
    %c0_54 = arith.constant 0 : index
    %c0_55 = arith.constant 0 : index
    %c0_56 = arith.constant 0 : index
    %87 = vector.load %arg7[%c2_53, %c0_54, %c0_55, %c0_56] : memref<4x2x16x16xf32, #tpu.memory_space<vmem>>, vector<1x2x16x16xf32>
    %88 = vector.shape_cast %87 : vector<1x2x16x16xf32> to vector<2x16x16xf32>
    %89 = vector.shape_cast %86 : vector<2x16x16xf32> to vector<1x2x16x16xf32>
    tpu.vector_store %arg7[%c2_53, %c0_54, %c0_55, %c0_56], %89 {strides = array<i32>} : memref<4x2x16x16xf32, #tpu.memory_space<vmem>>, vector<1x2x16x16xf32>,
    %c10 = arith.constant 10 : index
    %90 = memref.load %arg2[%c10] : memref<16xf32, #tpu.memory_space<smem>>
    %91 = vector.broadcast %90 : f32 to vector<2x16x16xf32>
    %92 = arith.mulf %91, %24 : vector<2x16x16xf32>
    %93 = vector.broadcast %29 : f32 to vector<2x16x16xf32>
    %94 = arith.addf %93, %92 : vector<2x16x16xf32>
    %c8 = arith.constant 8 : index
    %95 = memref.load %arg2[%c8] : memref<16xf32, #tpu.memory_space<smem>>
    %96 = vector.broadcast %95 : f32 to vector<2x16x16xf32>
    %97 = arith.mulf %96, %25 : vector<2x16x16xf32>
    %98 = arith.addf %94, %97 : vector<2x16x16xf32>
    %c2_57 = arith.constant 2 : index
    %99 = memref.load %arg2[%c2_57] : memref<16xf32, #tpu.memory_space<smem>>
    %100 = vector.broadcast %99 : f32 to vector<2x16x16xf32>
    %101 = arith.mulf %100, %27 : vector<2x16x16xf32>
    %102 = arith.addf %98, %101 : vector<2x16x16xf32>
    %c0_58 = arith.constant 0 : index
    %103 = memref.load %arg2[%c0_58] : memref<16xf32, #tpu.memory_space<smem>>
    %104 = vector.broadcast %103 : f32 to vector<2x16x16xf32>
    %105 = arith.mulf %104, %28 : vector<2x16x16xf32>
    %106 = arith.addf %102, %105 : vector<2x16x16xf32>
    %c3_59 = arith.constant 3 : index
    %c0_60 = arith.constant 0 : index
    %c0_61 = arith.constant 0 : index
    %c0_62 = arith.constant 0 : index
    %107 = vector.load %arg7[%c3_59, %c0_60, %c0_61, %c0_62] : memref<4x2x16x16xf32, #tpu.memory_space<vmem>>, vector<1x2x16x16xf32>
    %108 = vector.shape_cast %107 : vector<1x2x16x16xf32> to vector<2x16x16xf32>
    %109 = vector.shape_cast %106 : vector<2x16x16xf32> to vector<1x2x16x16xf32>
    tpu.vector_store %arg7[%c3_59, %c0_60, %c0_61, %c0_62], %109 {strides = array<i32>} : memref<4x2x16x16xf32, #tpu.memory_space<vmem>>, vector<1x2x16x16xf32>,
    return
  }
}

module attributes {stable_mosaic.version = 11 : i64} {
  func.func @kernel(%arg0: memref<16xf32, #tpu.memory_space<smem>>, %arg1: memref<1xf32, #tpu.memory_space<smem>>, %arg2: memref<2x34x34xf32, #tpu.memory_space<vmem>>, %arg3: memref<4x2x32x32xf32, #tpu.memory_space<vmem>>) attributes {dimension_semantics = [], scalar_prefetch = 0 : i64, scratch_operands = 0 : i64, tpu.core_type = #tpu.core_type<tc>} {
    %c0 = arith.constant 0 : index
    %c0_0 = arith.constant 0 : index
    %c0_1 = arith.constant 0 : index
    %0 = vector.load %arg2[%c0, %c0_0, %c0_1] : memref<2x34x34xf32, #tpu.memory_space<vmem>>, vector<2x32x32xf32>
    %c0_2 = arith.constant 0 : index
    %c0_3 = arith.constant 0 : index
    %c1 = arith.constant 1 : index
    %1 = vector.load %arg2[%c0_2, %c0_3, %c1] : memref<2x34x34xf32, #tpu.memory_space<vmem>>, vector<2x32x32xf32>
    %c0_4 = arith.constant 0 : index
    %c0_5 = arith.constant 0 : index
    %c2 = arith.constant 2 : index
    %2 = vector.load %arg2[%c0_4, %c0_5, %c2] : memref<2x34x34xf32, #tpu.memory_space<vmem>>, vector<2x32x32xf32>
    %c0_6 = arith.constant 0 : index
    %c1_7 = arith.constant 1 : index
    %c0_8 = arith.constant 0 : index
    %3 = vector.load %arg2[%c0_6, %c1_7, %c0_8] : memref<2x34x34xf32, #tpu.memory_space<vmem>>, vector<2x32x32xf32>
    %c0_9 = arith.constant 0 : index
    %c1_10 = arith.constant 1 : index
    %c1_11 = arith.constant 1 : index
    %4 = vector.load %arg2[%c0_9, %c1_10, %c1_11] : memref<2x34x34xf32, #tpu.memory_space<vmem>>, vector<2x32x32xf32>
    %c0_12 = arith.constant 0 : index
    %c1_13 = arith.constant 1 : index
    %c2_14 = arith.constant 2 : index
    %5 = vector.load %arg2[%c0_12, %c1_13, %c2_14] : memref<2x34x34xf32, #tpu.memory_space<vmem>>, vector<2x32x32xf32>
    %c0_15 = arith.constant 0 : index
    %c2_16 = arith.constant 2 : index
    %c0_17 = arith.constant 0 : index
    %6 = vector.load %arg2[%c0_15, %c2_16, %c0_17] : memref<2x34x34xf32, #tpu.memory_space<vmem>>, vector<2x32x32xf32>
    %c0_18 = arith.constant 0 : index
    %c2_19 = arith.constant 2 : index
    %c1_20 = arith.constant 1 : index
    %7 = vector.load %arg2[%c0_18, %c2_19, %c1_20] : memref<2x34x34xf32, #tpu.memory_space<vmem>>, vector<2x32x32xf32>
    %c0_21 = arith.constant 0 : index
    %c2_22 = arith.constant 2 : index
    %c2_23 = arith.constant 2 : index
    %8 = vector.load %arg2[%c0_21, %c2_22, %c2_23] : memref<2x34x34xf32, #tpu.memory_space<vmem>>, vector<2x32x32xf32>
    %c0_24 = arith.constant 0 : index
    %9 = memref.load %arg1[%c0_24] : memref<1xf32, #tpu.memory_space<smem>>
    %c5 = arith.constant 5 : index
    %10 = memref.load %arg0[%c5] : memref<16xf32, #tpu.memory_space<smem>>
    %11 = vector.broadcast %10 : f32 to vector<2x32x32xf32>
    %12 = arith.mulf %11, %4 : vector<2x32x32xf32>
    %13 = vector.broadcast %9 : f32 to vector<2x32x32xf32>
    %14 = arith.addf %13, %12 : vector<2x32x32xf32>
    %c7 = arith.constant 7 : index
    %15 = memref.load %arg0[%c7] : memref<16xf32, #tpu.memory_space<smem>>
    %16 = vector.broadcast %15 : f32 to vector<2x32x32xf32>
    %17 = arith.mulf %16, %3 : vector<2x32x32xf32>
    %18 = arith.addf %14, %17 : vector<2x32x32xf32>
    %c13 = arith.constant 13 : index
    %19 = memref.load %arg0[%c13] : memref<16xf32, #tpu.memory_space<smem>>
    %20 = vector.broadcast %19 : f32 to vector<2x32x32xf32>
    %21 = arith.mulf %20, %1 : vector<2x32x32xf32>
    %22 = arith.addf %18, %21 : vector<2x32x32xf32>
    %c15 = arith.constant 15 : index
    %23 = memref.load %arg0[%c15] : memref<16xf32, #tpu.memory_space<smem>>
    %24 = vector.broadcast %23 : f32 to vector<2x32x32xf32>
    %25 = arith.mulf %24, %0 : vector<2x32x32xf32>
    %26 = arith.addf %22, %25 : vector<2x32x32xf32>
    %c0_25 = arith.constant 0 : index
    %c0_26 = arith.constant 0 : index
    %c0_27 = arith.constant 0 : index
    %c0_28 = arith.constant 0 : index
    %27 = vector.load %arg3[%c0_25, %c0_26, %c0_27, %c0_28] : memref<4x2x32x32xf32, #tpu.memory_space<vmem>>, vector<1x2x32x32xf32>
    %28 = vector.shape_cast %27 : vector<1x2x32x32xf32> to vector<2x32x32xf32>
    %29 = vector.shape_cast %26 : vector<2x32x32xf32> to vector<1x2x32x32xf32>
    tpu.vector_store %arg3[%c0_25, %c0_26, %c0_27, %c0_28], %29 {strides = array<i32>} : memref<4x2x32x32xf32, #tpu.memory_space<vmem>>, vector<1x2x32x32xf32>,
    %c6 = arith.constant 6 : index
    %30 = memref.load %arg0[%c6] : memref<16xf32, #tpu.memory_space<smem>>
    %31 = vector.broadcast %30 : f32 to vector<2x32x32xf32>
    %32 = arith.mulf %31, %4 : vector<2x32x32xf32>
    %33 = vector.broadcast %9 : f32 to vector<2x32x32xf32>
    %34 = arith.addf %33, %32 : vector<2x32x32xf32>
    %c4 = arith.constant 4 : index
    %35 = memref.load %arg0[%c4] : memref<16xf32, #tpu.memory_space<smem>>
    %36 = vector.broadcast %35 : f32 to vector<2x32x32xf32>
    %37 = arith.mulf %36, %5 : vector<2x32x32xf32>
    %38 = arith.addf %34, %37 : vector<2x32x32xf32>
    %c14 = arith.constant 14 : index
    %39 = memref.load %arg0[%c14] : memref<16xf32, #tpu.memory_space<smem>>
    %40 = vector.broadcast %39 : f32 to vector<2x32x32xf32>
    %41 = arith.mulf %40, %1 : vector<2x32x32xf32>
    %42 = arith.addf %38, %41 : vector<2x32x32xf32>
    %c12 = arith.constant 12 : index
    %43 = memref.load %arg0[%c12] : memref<16xf32, #tpu.memory_space<smem>>
    %44 = vector.broadcast %43 : f32 to vector<2x32x32xf32>
    %45 = arith.mulf %44, %2 : vector<2x32x32xf32>
    %46 = arith.addf %42, %45 : vector<2x32x32xf32>
    %c1_29 = arith.constant 1 : index
    %c0_30 = arith.constant 0 : index
    %c0_31 = arith.constant 0 : index
    %c0_32 = arith.constant 0 : index
    %47 = vector.load %arg3[%c1_29, %c0_30, %c0_31, %c0_32] : memref<4x2x32x32xf32, #tpu.memory_space<vmem>>, vector<1x2x32x32xf32>
    %48 = vector.shape_cast %47 : vector<1x2x32x32xf32> to vector<2x32x32xf32>
    %49 = vector.shape_cast %46 : vector<2x32x32xf32> to vector<1x2x32x32xf32>
    tpu.vector_store %arg3[%c1_29, %c0_30, %c0_31, %c0_32], %49 {strides = array<i32>} : memref<4x2x32x32xf32, #tpu.memory_space<vmem>>, vector<1x2x32x32xf32>,
    %c9 = arith.constant 9 : index
    %50 = memref.load %arg0[%c9] : memref<16xf32, #tpu.memory_space<smem>>
    %51 = vector.broadcast %50 : f32 to vector<2x32x32xf32>
    %52 = arith.mulf %51, %4 : vector<2x32x32xf32>
    %53 = vector.broadcast %9 : f32 to vector<2x32x32xf32>
    %54 = arith.addf %53, %52 : vector<2x32x32xf32>
    %c11 = arith.constant 11 : index
    %55 = memref.load %arg0[%c11] : memref<16xf32, #tpu.memory_space<smem>>
    %56 = vector.broadcast %55 : f32 to vector<2x32x32xf32>
    %57 = arith.mulf %56, %3 : vector<2x32x32xf32>
    %58 = arith.addf %54, %57 : vector<2x32x32xf32>
    %c1_33 = arith.constant 1 : index
    %59 = memref.load %arg0[%c1_33] : memref<16xf32, #tpu.memory_space<smem>>
    %60 = vector.broadcast %59 : f32 to vector<2x32x32xf32>
    %61 = arith.mulf %60, %7 : vector<2x32x32xf32>
    %62 = arith.addf %58, %61 : vector<2x32x32xf32>
    %c3 = arith.constant 3 : index
    %63 = memref.load %arg0[%c3] : memref<16xf32, #tpu.memory_space<smem>>
    %64 = vector.broadcast %63 : f32 to vector<2x32x32xf32>
    %65 = arith.mulf %64, %6 : vector<2x32x32xf32>
    %66 = arith.addf %62, %65 : vector<2x32x32xf32>
    %c2_34 = arith.constant 2 : index
    %c0_35 = arith.constant 0 : index
    %c0_36 = arith.constant 0 : index
    %c0_37 = arith.constant 0 : index
    %67 = vector.load %arg3[%c2_34, %c0_35, %c0_36, %c0_37] : memref<4x2x32x32xf32, #tpu.memory_space<vmem>>, vector<1x2x32x32xf32>
    %68 = vector.shape_cast %67 : vector<1x2x32x32xf32> to vector<2x32x32xf32>
    %69 = vector.shape_cast %66 : vector<2x32x32xf32> to vector<1x2x32x32xf32>
    tpu.vector_store %arg3[%c2_34, %c0_35, %c0_36, %c0_37], %69 {strides = array<i32>} : memref<4x2x32x32xf32, #tpu.memory_space<vmem>>, vector<1x2x32x32xf32>,
    %c10 = arith.constant 10 : index
    %70 = memref.load %arg0[%c10] : memref<16xf32, #tpu.memory_space<smem>>
    %71 = vector.broadcast %70 : f32 to vector<2x32x32xf32>
    %72 = arith.mulf %71, %4 : vector<2x32x32xf32>
    %73 = vector.broadcast %9 : f32 to vector<2x32x32xf32>
    %74 = arith.addf %73, %72 : vector<2x32x32xf32>
    %c8 = arith.constant 8 : index
    %75 = memref.load %arg0[%c8] : memref<16xf32, #tpu.memory_space<smem>>
    %76 = vector.broadcast %75 : f32 to vector<2x32x32xf32>
    %77 = arith.mulf %76, %5 : vector<2x32x32xf32>
    %78 = arith.addf %74, %77 : vector<2x32x32xf32>
    %c2_38 = arith.constant 2 : index
    %79 = memref.load %arg0[%c2_38] : memref<16xf32, #tpu.memory_space<smem>>
    %80 = vector.broadcast %79 : f32 to vector<2x32x32xf32>
    %81 = arith.mulf %80, %7 : vector<2x32x32xf32>
    %82 = arith.addf %78, %81 : vector<2x32x32xf32>
    %c0_39 = arith.constant 0 : index
    %83 = memref.load %arg0[%c0_39] : memref<16xf32, #tpu.memory_space<smem>>
    %84 = vector.broadcast %83 : f32 to vector<2x32x32xf32>
    %85 = arith.mulf %84, %8 : vector<2x32x32xf32>
    %86 = arith.addf %82, %85 : vector<2x32x32xf32>
    %c3_40 = arith.constant 3 : index
    %c0_41 = arith.constant 0 : index
    %c0_42 = arith.constant 0 : index
    %c0_43 = arith.constant 0 : index
    %87 = vector.load %arg3[%c3_40, %c0_41, %c0_42, %c0_43] : memref<4x2x32x32xf32, #tpu.memory_space<vmem>>, vector<1x2x32x32xf32>
    %88 = vector.shape_cast %87 : vector<1x2x32x32xf32> to vector<2x32x32xf32>
    %89 = vector.shape_cast %86 : vector<2x32x32xf32> to vector<1x2x32x32xf32>
    tpu.vector_store %arg3[%c3_40, %c0_41, %c0_42, %c0_43], %89 {strides = array<i32>} : memref<4x2x32x32xf32, #tpu.memory_space<vmem>>, vector<1x2x32x32xf32>,
    return
  }
}

</mosaic_0001>

<bundles_post_ra>
// kernel: concat_layer_forward.4
= control target key start
LH: loop header
LB: loop body
LE: loop exit
PB: predicated region body
PF: predicated region fallthrough
CT: control target
= control target key end

     0   :  { %14 = vsyncpa [#allocation7], 0  ;;  %s966_s0 = inlined_call_operand.hbm [shape: f32[3], index: 0, kind: input, shape index: {}]   ;;  %s967_s1 = inlined_call_operand.<no memory space> [shape: f32[1], index: 1, kind: input, shape index: {}]   ;;  %s968_s2 = inlined_call_operand.vmem [shape: f32[16], index: 2, kind: input, shape index: {}]   ;;  %s969_s3 = inlined_call_operand.<no memory space> [shape: f32[1], index: 3, kind: input, shape index: {}]   ;;  %s970_s4 = inlined_call_operand.hbm [shape: f32[2,16,16], index: 4, kind: input, shape index: {}]   ;;  %s971_s5 = inlined_call_operand.vmem [shape: f32[2,16,16], index: 5, kind: input, shape index: {}]   ;;  %s972_s6 = inlined_call_operand.vmem [shape: f32[2,16,16], index: 6, kind: input, shape index: {}]   ;;  %s973_s7 = inlined_call_operand.vmem [shape: f32[4,2,16,16], index: 7, kind: output, shape index: {}]  }
   0x1   :  { %15 = vsyncpa [#allocation8], 0  ;;  %s22_s26 = sshll.u32 %s966_s0, 4  ;;  %s23_s26 = int_to_ptr.hbm [resolvable:$true] %s22_s26 }
   0x2   :  { %16 = vsyncpa [#allocation6], 0  ;;  %s33_s29 = sshll.u32 %s968_s2, 4  ;;  %s626_s30 = smov [#allocation5]   ;;  %s34_s29 = int_to_ptr.vmem [resolvable:$true] %s33_s29 }
   0x3   :  { %25 = dma.hbm_to_smem %s23_s26, 16, %s626_s30, [#allocation7]  }
   0x4   :  { %s627_s8 = smov [#allocation9]   ;;  %s43_s11 = sshll.u32 %s970_s4, 4  ;;  %s44_s11 = int_to_ptr.hbm [resolvable:$true] %s43_s11 }
   0x5   :  { %36 = dma.vmem_to_smem %s34_s29, 16, %s627_s8, [#allocation8]  }
   0x6   :  { %s628_s12 = smov [#allocation10]   ;;  %s629_s0 = smov 128  }
   0x7   :  { %s45_s13 = sshll.u32 %s628_s12, 4  ;;  %s630_s14 = smov 8   ;;  %s46_s13 = int_to_ptr.vmem [resolvable:$true] %s45_s13 }
   0x8   :  { %51 = dma.hbm_to_vmem [thread:$0]  %s44_s11, 512, %s46_s13, [#allocation6], %s629_s0, %s629_s0, %s630_s14  }
   0x9   :  { %620 = dma.done.wait [#allocation7], 16  }
   0xa   :  { %621 = vsyncadd [#allocation7], 4294967280 }
   0xb   :  { %622 = dma.done.wait [#allocation8], 16  }
   0xc   :  { %623 = vsyncadd [#allocation8], 4294967280 }
   0xd   :  { %624 = dma.done.wait [#allocation6], 512  }
   0xe   :  { %625 = vsyncadd [#allocation6], 4294966784 }
   0xf   :  { %68 = sfence }
  0x10   :  { %s69_s2 = sld [smem:[#allocation5]]  ;;  %vm113_vm0 = vcmask 146432   ;;  %v631_v0 = vmov 0.0   ;;  %v72_v1 = vld [vmem:[#allocation10 + $0x10] sm:$0xff]  ;;  %v70_v2 = vld [vmem:[#allocation10] sm:$0xff]  ;;  %v73_v3 = vld [vmem:[#allocation10 + $0x18] sm:$0xff]  ;;  %v108_v28 = vstv %s967_s1  ;;  %v731_v51 = vstv %s969_s3 }
  0x11   :  { %s535_s15 = sld [smem:[#allocation5 + $0x1]]  ;;  %118 = vst.msk [vmem:[#allocation2 + $0x18] sm:$0xff] %vm113_vm0, %v631_v0  ;;  %v82_v4 = vld [vmem:[%s971_s5 + $0x10] sm:$0xff]  ;;  %v80_v5 = vld [vmem:[%s971_s5] sm:$0xff]  ;;  %v83_v6 = vld [vmem:[%s971_s5 + $0x18] sm:$0xff]  ;;  %s632_s10 = smov 1  }
  0x12   :  { %s536_s16 = sld [smem:[#allocation5 + $0x2]]  ;;  %119 = vst.msk [vmem:[#allocation2 + $0x20] sm:$0xff] %vm113_vm0, %v631_v0  ;;  %v96_v8 = vld [vmem:[%s972_s6 + $0x10] sm:$0xff]  ;;  %v94_v9 = vld [vmem:[%s972_s6] sm:$0xff]  ;;  %v71_v10 = vld [vmem:[#allocation10 + $0x8] sm:$0xff]  ;;  %vm116_vm1 = vcmask 140288  }
  0x13   :  { %114 = vst.msk [vmem:[#allocation2] sm:$0xff] %vm113_vm0, %v631_v0  ;;  %v81_v15 = vld [vmem:[%s971_s5 + $0x8] sm:$0xff]  ;;  %v97_v20 = vld [vmem:[%s972_s6 + $0x18] sm:$0xff]  ;;  %vm137_vm2 = vcmask 138248   ;;  %s538_s1 = sld [smem:[#allocation9 + $0x7]]  ;;  %vm244_vm3 = vcmask 130048  }
  0x14   :  { %115 = vst.msk [vmem:[#allocation2 + $0x8] sm:$0xff] %vm113_vm0, %v631_v0  ;;  %v95_v24 = vld [vmem:[%s972_s6 + $0x8] sm:$0xff]  ;;  %s549_s6 = sld [smem:[#allocation9 + $0x9]] }
  0x15   :  { %120 = vst.msk [vmem:[#allocation2 + $0x28] sm:$0x3] %vm116_vm1, %v631_v0  ;;  %s540_s11 = sld [smem:[#allocation9 + $0xf]] }
  0x16   :  { %v74_v7 = vstv %s69_s2  ;;  %117 = vst.msk [vmem:[#allocation2 + $0x10] sm:$0x3] %vm116_vm1, %v631_v0  ;;  %s557_s12 = sld [smem:[#allocation9 + $0xa]]  ;;  %s633_s2 = smov 127  }
  0x17   :  { %v77_v11 = vmul.f32 %v74_v7, %v72_v1  ;;  %v84_v12 = vstv %s535_s15  ;;  %v75_v13 = vmul.f32 %v74_v7, %v70_v2  ;;  %v78_v14 = vmul.f32 %v74_v7, %v73_v3  ;;  %s542_s14 = sld [smem:[#allocation9 + $0x4]] }
  0x18   :  { %v87_v16 = vmul.f32 %v84_v12, %v82_v4  ;;  %v98_v17 = vstv %s536_s16  ;;  %v85_v18 = vmul.f32 %v84_v12, %v80_v5  ;;  %v88_v19 = vmul.f32 %v84_v12, %v83_v6  ;;  %s544_s3 = sld [smem:[#allocation9 + $0xc]] }
  0x19   :  { %v101_v21 = vmul.f32 %v98_v17, %v96_v8  ;;  %v99_v22 = vmul.f32 %v98_v17, %v94_v9  ;;  %v76_v23 = vmul.f32 %v74_v7, %v71_v10  ;;  %v86_v27 = vmul.f32 %v84_v12, %v81_v15  ;;  %s550_s15 = sld [smem:[#allocation9 + $0xb]] }
  0x1a   :  { %v91_v25 = vadd.f32 %v87_v16, %v77_v11  ;;  %v89_v26 = vadd.f32 %v85_v18, %v75_v13  ;;  %v92_v29 = vadd.f32 %v88_v19, %v78_v14  ;;  %v102_v30 = vmul.f32 %v98_v17, %v97_v20  ;;  %s558_s16 = sld [smem:[#allocation9 + $0x8]] }
  0x1b   :  { %v90_v33 = vadd.f32 %v86_v27, %v76_v23  ;;  %v100_v34 = vmul.f32 %v98_v17, %v95_v24  ;;  %v167_v43 = vstv %s538_s1  ;;  %v724_v50 = vstv %s549_s6  ;;  %s552_s4 = sld [smem:[#allocation9 + $0x3]] }
  0x1c   :  { %v105_v31 = vadd.f32 %v101_v21, %v91_v25  ;;  %v103_v32 = vadd.f32 %v99_v22, %v89_v26  ;;  %v106_v37 = vadd.f32 %v102_v30, %v92_v29  ;;  %v203_v58 = vstv %s540_s11  ;;  %s481_s17 = sld [smem:[#allocation9]] }
  0x1d   :  { %v104_v38 = vadd.f32 %v100_v34, %v90_v33  ;;  %v436_v61 = vstv %s557_s12  ;;  %v260_v63 = vstv %s542_s14  ;;  %s537_s18 = sld [smem:[#allocation9 + $0x5]] }
  0x1e   :  { %v111_v35 = vadd.f32 %v108_v28, %v105_v31  ;;  %v109_v36 = vadd.f32 %v108_v28, %v103_v32  ;;  %v112_v39 = vadd.f32 %v108_v28, %v106_v37  ;;  %v296_v18 = vstv %s544_s3  ;;  %s539_s19 = sld [smem:[#allocation9 + $0xd]] }
  0x1f   :  { %v110_v40 = vadd.f32 %v108_v28, %v104_v38  ;;  %v353_v22 = vstv %s550_s15  ;;  %s541_s20 = sld [smem:[#allocation9 + $0x6]] }
  0x20   :  { %129 = vrot.lane.b32.xlu1 %v111_v35, %s632_s10  ;;  %125 = vrot.lane.b32.xlu0 %v109_v36, %s632_s10  ;;  %v446_v28 = vstv %s558_s16  ;;  %s543_s21 = sld [smem:[#allocation9 + $0xe]] }
  0x21   :  { %v389_v34 = vstv %s552_s4  ;;  %s551_s22 = sld [smem:[#allocation9 + $0x1]] }
  0x22   :  { %v482_v38 = vstv %s481_s17  ;;  %s559_s23 = sld [smem:[#allocation9 + $0x2]] }
  0x28   :  { %131 = vrot.lane.b32.xlu1 %v112_v39, %s632_s10  ;;  %127 = vrot.lane.b32.xlu0 %v110_v40, %s632_s10 }
  0x92   :  { %v130_v41 = vpop.permute.xlu1 %129  ;;  %v126_v42 = vpop.permute.xlu0 %125 }
  0x93   :  { %140 = vst.msk [vmem:[#allocation2 + $0x19] sm:$0xff] %vm137_vm2, %v130_v41 }
  0x94   :  { %138 = vst.msk [vmem:[#allocation2 + $0x1] sm:$0xff] %vm137_vm2, %v126_v42 }
  0x9a   :  { %v132_v44 = vpop.permute.xlu1 %131  ;;  %v128_v45 = vpop.permute.xlu0 %127  ;;  %v718_v46 = vld [vmem:[#allocation2 + $0x19] sm:$0xff] }
  0x9b   :  { %141 = vst.msk [vmem:[#allocation2 + $0x21] sm:$0xff] %vm137_vm2, %v132_v44  ;;  %v170_v47 = vmul.f32 %v167_v43, %v718_v46  ;;  %v721_v48 = vld [vmem:[#allocation2 + $0x1] sm:$0xff]  ;;  %v346_v52 = vmul.f32 %v724_v50, %v718_v46  ;;  %v750_v62 = vld [vmem:[#allocation2 + $0x18] sm:$0xff]  ;;  %v439_v0 = vmul.f32 %v436_v61, %v718_v46  ;;  %v263_v5 = vmul.f32 %v260_v63, %v718_v46 }
  0x9c   :  { %139 = vst.msk [vmem:[#allocation2 + $0x9] sm:$0xff] %vm137_vm2, %v128_v45  ;;  %v168_v49 = vmul.f32 %v167_v43, %v721_v48  ;;  %v437_v1 = vmul.f32 %v436_v61, %v721_v48  ;;  %v754_v2 = vld [vmem:[#allocation2] sm:$0xff]  ;;  %v206_v4 = vmul.f32 %v203_v58, %v750_v62  ;;  %v261_v17 = vmul.f32 %v260_v63, %v721_v48 }
  0x9d   :  { %180 = vrot.lane.b32.xlu0 %v170_v47, %s632_s10  ;;  %v736_v53 = vadd.f32 %v346_v52, %v731_v51  ;;  %v204_v8 = vmul.f32 %v203_v58, %v754_v2  ;;  %v768_v10 = vadd.f32 %v439_v0, %v731_v51  ;;  %v354_v24 = vmul.f32 %v353_v22, %v721_v48 }
  0x9e   :  { %176 = vrot.lane.b32.xlu2 %v168_v49, %s632_s10  ;;  %v771_v11 = vadd.f32 %v437_v1, %v731_v51  ;;  %v299_v25 = vmul.f32 %v296_v18, %v750_v62  ;;  %v297_v26 = vmul.f32 %v296_v18, %v754_v2  ;;  %v449_v31 = vmul.f32 %v446_v28, %v718_v46 }
  0x9f   :  { %v447_v33 = vmul.f32 %v446_v28, %v721_v48  ;;  %v356_v35 = vmul.f32 %v353_v22, %v718_v46 }
  0xa2   :  { %v738_v54 = vld [vmem:[#allocation2 + $0x21] sm:$0xff] }
  0xa3   :  { %v171_v55 = vmul.f32 %v167_v43, %v738_v54  ;;  %v741_v56 = vld [vmem:[#allocation2 + $0x9] sm:$0xff]  ;;  %v347_v6 = vmul.f32 %v724_v50, %v738_v54  ;;  %v440_v14 = vmul.f32 %v436_v61, %v738_v54  ;;  %v786_v16 = vld [vmem:[#allocation2 + $0x20] sm:$0xff]  ;;  %v264_v21 = vmul.f32 %v260_v63, %v738_v54 }
  0xa4   :  { %v743_v57 = vld [vmem:[#allocation2 + $0x8] sm:$0xff]  ;;  %v169_v59 = vmul.f32 %v167_v43, %v741_v56  ;;  %v438_v3 = vmul.f32 %v436_v61, %v741_v56  ;;  %v345_v7 = vmul.f32 %v724_v50, %v741_v56  ;;  %v207_v19 = vmul.f32 %v203_v58, %v786_v16  ;;  %v828_v42 = vld [vmem:[#allocation2 + $0x1a] sm:$0xff] }
  0xa5   :  { %v205_v60 = vmul.f32 %v203_v58, %v743_v57  ;;  %182 = vrot.lane.b32.xlu1 %v171_v55, %s632_s10  ;;  %v775_v12 = vadd.f32 %v347_v6, %v731_v51  ;;  %v784_v15 = vadd.f32 %v440_v14, %v731_v51  ;;  %v298_v20 = vmul.f32 %v296_v18, %v743_v57  ;;  %v812_v32 = vld [vmem:[#allocation2 + $0xa] sm:$0xff]  ;;  %v820_v37 = vld [vmem:[#allocation2 + $0x2] sm:$0xff] }
  0xa6   :  { %178 = vrot.lane.b32.xlu2 %v169_v59, %s632_s10  ;;  %v765_v9 = vadd.f32 %v438_v3, %v731_v51  ;;  %v778_v13 = vadd.f32 %v345_v7, %v731_v51  ;;  %v262_v23 = vmul.f32 %v260_v63, %v741_v56  ;;  %v357_v27 = vmul.f32 %v353_v22, %v738_v54  ;;  %v830_v43 = vld [vmem:[#allocation2 + $0x22] sm:$0xff] }
  0xa7   :  { %214 = vrot.lane.b32.xlu0 %v205_v60, %s632_s10  ;;  %v355_v29 = vmul.f32 %v353_v22, %v741_v56  ;;  %v300_v30 = vmul.f32 %v296_v18, %v786_v16  ;;  %v391_v36 = vmul.f32 %v389_v34, %v812_v32  ;;  %v450_v39 = vmul.f32 %v446_v28, %v738_v54 }
  0xa8   :  { %v448_v40 = vmul.f32 %v446_v28, %v741_v56  ;;  %v483_v41 = vmul.f32 %v482_v38, %v820_v37  ;;  %v392_v44 = vmul.f32 %v389_v34, %v828_v42  ;;  %v390_v45 = vmul.f32 %v389_v34, %v820_v37 }
  0xa9   :  { %v486_v47 = vmul.f32 %v482_v38, %v830_v43  ;;  %v484_v49 = vmul.f32 %v482_v38, %v812_v32  ;;  %v393_v52 = vmul.f32 %v389_v34, %v830_v43  ;;  %v156_v55 = vstv %s537_s18 }
  0xaa   :  { %v157_v58 = vmul.f32 %v156_v55, %v721_v48  ;;  %v485_v59 = vmul.f32 %v482_v38, %v828_v42  ;;  %v193_v63 = vstv %s539_s19  ;;  %v158_v3 = vmul.f32 %v156_v55, %v741_v56 }
  0xab   :  { %v194_v1 = vmul.f32 %v193_v63, %v754_v2  ;;  %v197_v34 = vmul.f32 %v193_v63, %v786_v16  ;;  %v286_v38 = vstv %s543_s21 }
  0xac   :  { %v162_v60 = vadd.f32 %v731_v51, %v157_v58 }
  0xad   :  { %216 = vrot.lane.b32.xlu1 %v206_v4, %s632_s10 }
  0xae   :  { %212 = vrot.lane.b32.xlu2 %v204_v8, %s632_s10  ;;  %v195_v8 = vmul.f32 %v193_v63, %v743_v57 }
  0xaf   :  { %273 = vrot.lane.b32.xlu0 %v263_v5, %s633_s2  ;;  %v163_v5 = vadd.f32 %v731_v51, %v158_v3  ;;  %v287_v3 = vmul.f32 %v286_v38, %v754_v2 }
  0xb5   :  { %269 = vrot.lane.b32.xlu1 %v261_v17, %s633_s2 }
  0xb6   :  { %218 = vrot.lane.b32.xlu2 %v207_v19, %s632_s10  ;;  %v159_v19 = vmul.f32 %v156_v55, %v718_v46 }
  0xb7   :  { %307 = vrot.lane.b32.xlu0 %v298_v20, %s633_s2 }
  0xb8   :  { %v164_v20 = vadd.f32 %v731_v51, %v159_v19 }
  0xbd   :  { %275 = vrot.lane.b32.xlu1 %v264_v21, %s633_s2 }
  0xbe   :  { %271 = vrot.lane.b32.xlu2 %v262_v23, %s633_s2 }
  0xbf   :  { %362 = vrot.lane.b32.xlu0 %v354_v24, %s632_s10  ;;  %v196_v24 = vmul.f32 %v193_v63, %v750_v62 }
  0xc5   :  { %309 = vrot.lane.b32.xlu1 %v299_v25, %s633_s2  ;;  %v160_v25 = vmul.f32 %v156_v55, %v738_v54 }
  0xc6   :  { %305 = vrot.lane.b32.xlu2 %v297_v26, %s633_s2  ;;  %v250_v26 = vstv %s541_s20 }
  0xc7   :  { %368 = vrot.lane.b32.xlu0 %v357_v27, %s632_s10  ;;  %v252_v28 = vmul.f32 %v250_v26, %v741_v56  ;;  %v253_v56 = vmul.f32 %v250_v26, %v718_v46 }
  0xcd   :  { %364 = vrot.lane.b32.xlu1 %v355_v29, %s632_s10  ;;  %v165_v29 = vadd.f32 %v731_v51, %v160_v25 }
  0xce   :  { %311 = vrot.lane.b32.xlu2 %v300_v30, %s633_s2 }
  0xcf   :  { %459 = vrot.lane.b32.xlu0 %v449_v31, %s633_s2  ;;  %v256_v31 = vadd.f32 %v252_v28, %v731_v51 }
  0xd5   :  { %455 = vrot.lane.b32.xlu1 %v447_v33, %s633_s2 }
  0xd6   :  { %366 = vrot.lane.b32.xlu2 %v356_v35, %s632_s10 }
  0xd7   :  { %400 = vrot.lane.b32.xlu0 %v391_v36, %s632_s10 }
  0xdd   :  { %461 = vrot.lane.b32.xlu1 %v450_v39, %s633_s2 }
  0xde   :  { %457 = vrot.lane.b32.xlu2 %v448_v40, %s633_s2 }
  0xdf   :  { %491 = vrot.lane.b32.xlu0 %v483_v41, %s633_s2  ;;  %v288_v41 = vmul.f32 %v286_v38, %v743_v57  ;;  %v251_v57 = vmul.f32 %v250_v26, %v721_v48 }
  0xe1   :  { %v255_v46 = vadd.f32 %v251_v57, %v731_v51 }
  0xe5   :  { %402 = vrot.lane.b32.xlu1 %v392_v44, %s632_s10 }
  0xe6   :  { %398 = vrot.lane.b32.xlu2 %v390_v45, %s632_s10 }
  0xe7   :  { %497 = vrot.lane.b32.xlu0 %v486_v47, %s633_s2 }
  0xed   :  { %493 = vrot.lane.b32.xlu1 %v484_v49, %s633_s2 }
  0xee   :  { %404 = vrot.lane.b32.xlu2 %v393_v52, %s632_s10  ;;  %v257_v52 = vadd.f32 %v253_v56, %v731_v51 }
  0xf6   :  { %495 = vrot.lane.b32.xlu2 %v485_v59, %s633_s2 }
  0xf8   :  { %v177_v61 = vpop.permute.xlu2 %176 }
  0xf9   :  { %v188_v0 = vadd.f32 %v177_v61, %v162_v60  ;;  %v289_v61 = vmul.f32 %v286_v38, %v750_v62  ;;  %v344_v62 = vmul.f32 %v724_v50, %v721_v48 }
  0xfb   :  { %v198_v4 = vadd.f32 %v194_v1, %v188_v0  ;;  %v348_v2 = vadd.f32 %v344_v62, %v731_v51 }
 0x100   :  { %v179_v6 = vpop.permute.xlu2 %178 }
 0x101   :  { %v189_v7 = vadd.f32 %v179_v6, %v163_v5 }
 0x103   :  { %v199_v14 = vadd.f32 %v195_v8, %v189_v7  ;;  %v254_v8 = vmul.f32 %v250_v26, %v738_v54 }
 0x108   :  { %v213_v17 = vpop.permute.xlu2 %212 }
 0x109   :  { %v224_v18 = vadd.f32 %v213_v17, %v198_v4  ;;  %v258_v17 = vadd.f32 %v254_v8, %v731_v51 }
 0x10b   :  { %232 = vrot.lane.b32.xlu0 %v224_v18, %s633_s2  ;;  %v379_v18 = vstv %s551_s22 }
 0x10c   :  { %v380_v48 = vmul.f32 %v379_v18, %v820_v37  ;;  %v382_v50 = vmul.f32 %v379_v18, %v828_v42  ;;  %v381_v56 = vmul.f32 %v379_v18, %v812_v32 }
 0x10f   :  { %v181_v21 = vpop.permute.xlu0 %180 }
 0x110   :  { %v219_v22 = vpop.permute.xlu2 %218  ;;  %v190_v23 = vadd.f32 %v181_v21, %v164_v20  ;;  %v290_v20 = vmul.f32 %v286_v38, %v786_v16 }
 0x112   :  { %v200_v27 = vadd.f32 %v196_v24, %v190_v23 }
 0x117   :  { %v183_v30 = vpop.permute.xlu1 %182 }
 0x118   :  { %v191_v33 = vadd.f32 %v183_v30, %v165_v29  ;;  %v272_v35 = vpop.permute.xlu2 %271 }
 0x119   :  { %v215_v36 = vpop.permute.xlu0 %214  ;;  %v282_v39 = vadd.f32 %v272_v35, %v256_v31  ;;  %v472_v31 = vstv %s559_s23 }
 0x11a   :  { %v225_v40 = vadd.f32 %v215_v36, %v199_v14  ;;  %v201_v44 = vadd.f32 %v197_v34, %v191_v33  ;;  %v383_v34 = vmul.f32 %v379_v18, %v830_v43  ;;  %v474_v35 = vmul.f32 %v472_v31, %v812_v32 }
 0x11b   :  { %v292_v45 = vadd.f32 %v288_v41, %v282_v39 }
 0x11c   :  { %234 = vrot.lane.b32.xlu1 %v225_v40, %s633_s2  ;;  %v227_v47 = vadd.f32 %v219_v22, %v201_v44 }
 0x11e   :  { %238 = vrot.lane.b32.xlu0 %v227_v47, %s633_s2 }
 0x11f   :  { %v217_v49 = vpop.permute.xlu1 %216 }
 0x120   :  { %v226_v55 = vadd.f32 %v217_v49, %v200_v27  ;;  %v306_v58 = vpop.permute.xlu2 %305 }
 0x121   :  { %v274_v59 = vpop.permute.xlu0 %273 }
 0x122   :  { %v283_v60 = vadd.f32 %v274_v59, %v257_v52  ;;  %236 = vrot.lane.b32.xlu2 %v226_v55, %s633_s2 }
 0x124   :  { %v293_v63 = vadd.f32 %v289_v61, %v283_v60 }
 0x127   :  { %v270_v0 = vpop.permute.xlu1 %269 }
 0x128   :  { %v281_v1 = vadd.f32 %v270_v0, %v255_v46  ;;  %v312_v4 = vpop.permute.xlu2 %311  ;;  %v476_v46 = vmul.f32 %v472_v31, %v830_v43 }
 0x129   :  { %v308_v5 = vpop.permute.xlu0 %307 }
 0x12a   :  { %v318_v6 = vadd.f32 %v308_v5, %v292_v45  ;;  %v291_v7 = vadd.f32 %v287_v3, %v281_v1 }
 0x12c   :  { %327 = vrot.lane.b32.xlu2 %v318_v6, %s633_s2  ;;  %v317_v14 = vadd.f32 %v306_v58, %v291_v7 }
 0x12e   :  { %325 = vrot.lane.b32.xlu1 %v317_v14, %s633_s2 }
 0x12f   :  { %v276_v19 = vpop.permute.xlu1 %275 }
 0x130   :  { %v284_v21 = vadd.f32 %v276_v19, %v258_v17  ;;  %v367_v22 = vpop.permute.xlu2 %366 }
 0x131   :  { %v363_v23 = vpop.permute.xlu0 %362  ;;  %v376_v54 = vadd.f32 %v367_v22, %v736_v53 }
 0x132   :  { %v374_v24 = vadd.f32 %v363_v23, %v348_v2  ;;  %v294_v25 = vadd.f32 %v290_v20, %v284_v21 }
 0x133   :  { %v386_v27 = vadd.f32 %v382_v50, %v376_v54 }
 0x134   :  { %v384_v26 = vadd.f32 %v380_v48, %v374_v24  ;;  %v320_v28 = vadd.f32 %v312_v4, %v294_v25 }
 0x136   :  { %331 = vrot.lane.b32.xlu1 %v320_v28, %s633_s2 }
 0x137   :  { %v310_v51 = vpop.permute.xlu1 %309 }
 0x138   :  { %v319_v29 = vadd.f32 %v310_v51, %v293_v63  ;;  %v458_v16 = vpop.permute.xlu2 %457 }
 0x139   :  { %v369_v30 = vpop.permute.xlu0 %368  ;;  %v468_v33 = vadd.f32 %v458_v16, %v765_v9 }
 0x13a   :  { %v377_v53 = vadd.f32 %v369_v30, %v775_v12  ;;  %329 = vrot.lane.b32.xlu0 %v319_v29, %s633_s2  ;;  %v475_v12 = vmul.f32 %v472_v31, %v828_v42 }
 0x13b   :  { %v478_v38 = vadd.f32 %v474_v35, %v468_v33 }
 0x13c   :  { %v387_v36 = vadd.f32 %v383_v34, %v377_v53 }
 0x13f   :  { %v365_v39 = vpop.permute.xlu1 %364 }
 0x140   :  { %v375_v40 = vadd.f32 %v365_v39, %v778_v13  ;;  %v399_v41 = vpop.permute.xlu2 %398  ;;  %v473_v13 = vmul.f32 %v472_v31, %v820_v37 }
 0x141   :  { %v460_v44 = vpop.permute.xlu0 %459  ;;  %v410_v45 = vadd.f32 %v399_v41, %v384_v26 }
 0x142   :  { %v469_v9 = vadd.f32 %v460_v44, %v768_v10  ;;  %v385_v47 = vadd.f32 %v381_v56, %v375_v40 }
 0x143   :  { %418 = vrot.lane.b32.xlu2 %v410_v45, %s633_s2 }
 0x144   :  { %v479_v49 = vadd.f32 %v475_v12, %v469_v9 }
 0x147   :  { %v456_v52 = vpop.permute.xlu1 %455 }
 0x148   :  { %v467_v55 = vadd.f32 %v456_v52, %v771_v11  ;;  %v405_v58 = vpop.permute.xlu2 %404 }
 0x149   :  { %v401_v59 = vpop.permute.xlu0 %400  ;;  %v413_v60 = vadd.f32 %v405_v58, %v387_v36 }
 0x14a   :  { %v411_v61 = vadd.f32 %v401_v59, %v385_v47  ;;  %v477_v57 = vadd.f32 %v473_v13, %v467_v55 }
 0x14b   :  { %424 = vrot.lane.b32.xlu2 %v413_v60, %s633_s2 }
 0x14c   :  { %420 = vrot.lane.b32.xlu0 %v411_v61, %s633_s2 }
 0x14f   :  { %v462_v10 = vpop.permute.xlu1 %461 }
 0x150   :  { %v470_v32 = vadd.f32 %v462_v10, %v784_v15  ;;  %v496_v42 = vpop.permute.xlu2 %495 }
 0x151   :  { %v492_v63 = vpop.permute.xlu0 %491  ;;  %v505_v0 = vadd.f32 %v496_v42, %v479_v49 }
 0x152   :  { %v503_v11 = vadd.f32 %v492_v63, %v477_v57  ;;  %v480_v1 = vadd.f32 %v476_v46, %v470_v32 }
 0x153   :  { %515 = vrot.lane.b32.xlu2 %v505_v0, %s633_s2 }
 0x154   :  { %511 = vrot.lane.b32.xlu0 %v503_v11, %s633_s2 }
 0x157   :  { %v403_v37 = vpop.permute.xlu1 %402 }
 0x158   :  { %v412_v3 = vadd.f32 %v403_v37, %v386_v27 }
 0x159   :  { %v498_v4 = vpop.permute.xlu0 %497 }
 0x15a   :  { %v506_v5 = vadd.f32 %v498_v4, %v480_v1  ;;  %422 = vrot.lane.b32.xlu1 %v412_v3, %s633_s2 }
 0x15c   :  { %517 = vrot.lane.b32.xlu0 %v506_v5, %s633_s2 }
 0x15f   :  { %v494_v15 = vpop.permute.xlu1 %493 }
 0x160   :  { %v504_v6 = vadd.f32 %v494_v15, %v478_v38 }
 0x162   :  { %513 = vrot.lane.b32.xlu1 %v504_v6, %s633_s2 }
 0x17c   :  { %v237_v43 = vpop.permute.xlu2 %236 }
 0x17d   :  { %247 = vst.msk [vmem:[%s973_s7 + $0x10] sm:$0xff] %vm244_vm3, %v237_v43  ;;  %v233_v7 = vpop.permute.xlu0 %232 }
 0x17e   :  { %245 = vst.msk [vmem:[%s973_s7] sm:$0xff] %vm244_vm3, %v233_v7 }
 0x186   :  { %v328_v8 = vpop.permute.xlu2 %327 }
 0x187   :  { %546 = vst.msk [vmem:[%s973_s7 + $0x28] sm:$0xff] %vm244_vm3, %v328_v8 }
 0x18e   :  { %v235_v62 = vpop.permute.xlu1 %234 }
 0x18f   :  { %246 = vst.msk [vmem:[%s973_s7 + $0x8] sm:$0xff] %vm244_vm3, %v235_v62 }
 0x190   :  { %v239_v14 = vpop.permute.xlu0 %238 }
 0x191   :  { %248 = vst.msk [vmem:[%s973_s7 + $0x18] sm:$0xff] %vm244_vm3, %v239_v14 }
 0x19d   :  { %v419_v17 = vpop.permute.xlu2 %418 }
 0x19e   :  { %553 = vst.msk [vmem:[%s973_s7 + $0x40] sm:$0xff] %vm244_vm3, %v419_v17 }
 0x1a0   :  { %v326_v18 = vpop.permute.xlu1 %325 }
 0x1a1   :  { %545 = vst.msk [vmem:[%s973_s7 + $0x20] sm:$0xff] %vm244_vm3, %v326_v18 }
 0x1a5   :  { %v425_v19 = vpop.permute.xlu2 %424 }
 0x1a6   :  { %556 = vst.msk [vmem:[%s973_s7 + $0x58] sm:$0xff] %vm244_vm3, %v425_v19 }
 0x1a8   :  { %v332_v2 = vpop.permute.xlu1 %331 }
 0x1a9   :  { %548 = vst.msk [vmem:[%s973_s7 + $0x38] sm:$0xff] %vm244_vm3, %v332_v2 }
 0x1ac   :  { %v330_v20 = vpop.permute.xlu0 %329 }
 0x1ad   :  { %v516_v21 = vpop.permute.xlu2 %515  ;;  %547 = vst.msk [vmem:[%s973_s7 + $0x30] sm:$0xff] %vm244_vm3, %v330_v20 }
 0x1ae   :  { %562 = vst.msk [vmem:[%s973_s7 + $0x70] sm:$0xff] %vm244_vm3, %v516_v21 }
 0x1be   :  { %v421_v22 = vpop.permute.xlu0 %420 }
 0x1bf   :  { %554 = vst.msk [vmem:[%s973_s7 + $0x48] sm:$0xff] %vm244_vm3, %v421_v22 }
 0x1c6   :  { %v512_v23 = vpop.permute.xlu0 %511 }
 0x1c7   :  { %560 = vst.msk [vmem:[%s973_s7 + $0x60] sm:$0xff] %vm244_vm3, %v512_v23 }
 0x1cc   :  { %v423_v54 = vpop.permute.xlu1 %422 }
 0x1cd   :  { %555 = vst.msk [vmem:[%s973_s7 + $0x50] sm:$0xff] %vm244_vm3, %v423_v54 }
 0x1ce   :  { %v518_v24 = vpop.permute.xlu0 %517 }
 0x1cf   :  { %563 = vst.msk [vmem:[%s973_s7 + $0x78] sm:$0xff] %vm244_vm3, %v518_v24 }
 0x1d4   :  { %v514_v48 = vpop.permute.xlu1 %513 }
 0x1d5   :  { %561 = vst.msk [vmem:[%s973_s7 + $0x68] sm:$0xff] %vm244_vm3, %v514_v48 }
 0x1d6   :  { %532 = vsyncpa [#allocation6], 1 }
 0x1d7   :  { %533 = vsyncpa [#allocation7], 1 }
 0x1d8   :  { %534 = vsyncpa [#allocation8], 1 }

// kernel: concat_layer_forward.3
= control target key start
LH: loop header
LB: loop body
LE: loop exit
PB: predicated region body
PF: predicated region fallthrough
CT: control target
= control target key end

     0   :  { %15 = vsyncpa [#allocation5], 0  ;;  %s2023_s0 = inlined_call_operand.vmem [shape: f32[16], index: 0, kind: input, shape index: {}]   ;;  %s2024_s1 = inlined_call_operand.<no memory space> [shape: f32[1], index: 1, kind: input, shape index: {}]   ;;  %s2025_s2 = inlined_call_operand.vmem [shape: f32[2,10,10], index: 2, kind: input, shape index: {}]   ;;  %s2026_s3 = inlined_call_operand.vmem [shape: f32[64], index: 3, kind: input, shape index: {}]   ;;  %s2027_s4 = inlined_call_operand.<no memory space> [shape: f32[1], index: 4, kind: input, shape index: {}]   ;;  %s2028_s5 = inlined_call_operand.vmem [shape: f32[2,6,6], index: 5, kind: input, shape index: {}]   ;;  %s2029_s6 = inlined_call_operand.vmem [shape: f32[4,2,8,8], index: 6, kind: output, shape index: {0}]   ;;  %s2030_s7 = inlined_call_operand.vmem [shape: f32[16,2,4,4], index: 7, kind: output, shape index: {1}]  }
   0x1   :  { %s22_s26 = sshll.u32 %s2023_s0, 4  ;;  %s23_s26 = int_to_ptr.vmem [resolvable:$true] %s22_s26 }
   0x2   :  { %16 = vsyncpa [#allocation7], 0  ;;  %s35_s29 = sshll.u32 %s2026_s3, 4  ;;  %s1246_s30 = smov [#allocation4]   ;;  %s36_s29 = int_to_ptr.vmem [resolvable:$true] %s35_s29 }
   0x3   :  { %25 = dma.vmem_to_smem %s23_s26, 16, %s1246_s30, [#allocation5]  }
   0x4   :  { %s1247_s8 = smov [#allocation6]  }
   0x5   :  { %38 = dma.vmem_to_smem %s36_s29, 16, %s1247_s8, [#allocation7]  }
   0x6   :  { %1242 = dma.done.wait [#allocation5], 16  }
   0x7   :  { %1243 = vsyncadd [#allocation5], 4294967280 }
   0x8   :  { %1244 = dma.done.wait [#allocation7], 16  }
   0x9   :  { %1245 = vsyncadd [#allocation7], 4294967280 }
   0xa   :  { %51 = sfence }
   0xb   :  { %s1099_s9 = sld [smem:[#allocation4 + $0x7]]  ;;  %v1299_v0 = vld [vmem:[%s2025_s2 + $0x1] sm:$0xff]  ;;  %s1248_s14 = smov 1   ;;  %v1312_v6 = vld [vmem:[%s2025_s2 + $0x11] sm:$0xff]  ;;  %v1355_v25 = vld [vmem:[%s2028_s5 + $0x9] sm:$0xf]  ;;  %v1442_v63 = vstv %s2024_s1 }
   0xc   :  { %s1101_s10 = sld [smem:[#allocation4 + $0xf]]  ;;  %v1304_v1 = vld [vmem:[%s2025_s2] sm:$0xff]  ;;  %v1318_v7 = vld [vmem:[%s2025_s2 + $0x10] sm:$0xff]  ;;  %s1249_s20 = smov 127   ;;  %v1408_v46 = vld [vmem:[%s2028_s5 + $0x8] sm:$0xf] }
   0xd   :  { %s1105_s3 = sld [smem:[#allocation4 + $0xc]]  ;;  %v1336_v19 = vld [vmem:[%s2025_s2 + $0x2] sm:$0xff]  ;;  %v1349_v24 = vld [vmem:[%s2025_s2 + $0x12] sm:$0xff]  ;;  %vm108_vm0 = vcmask 64512   ;;  %vm320_vm1 = vcmask 27648  }
   0xe   :  { %s1103_s17 = sld [smem:[#allocation4 + $0x4]]  ;;  %v1375_v33 = vld [vmem:[%s2028_s5] sm:$0xf] }
   0xf   :  { %s1109_s21 = sld [smem:[#allocation4 + $0xb]]  ;;  %v1394_v40 = vld [vmem:[%s2028_s5 + $0x1] sm:$0xf] }
  0x10   :  { %s1111_s22 = sld [smem:[#allocation4 + $0x3]] }
  0x11   :  { %v67_v2 = vstv %s1099_s9  ;;  %s1115_s23 = sld [smem:[#allocation4 + $0x8]] }
  0x12   :  { %v68_v3 = vmul.f32 %v67_v2, %v1299_v0  ;;  %v87_v4 = vstv %s1101_s10  ;;  %v69_v8 = vmul.f32 %v67_v2, %v1312_v6  ;;  %s1342_s26 = sld [smem:[#allocation6 + $0x16]] }
  0x13   :  { %v88_v5 = vmul.f32 %v87_v4, %v1304_v1  ;;  %v89_v9 = vmul.f32 %v87_v4, %v1318_v7  ;;  %v138_v10 = vstv %s1105_s3  ;;  %s239_s27 = sld [smem:[#allocation4]] }
  0x14   :  { %72 = vrot.lane.b32.xlu0 %v68_v3, %s1248_s14  ;;  %v139_v11 = vmul.f32 %v138_v10, %v1304_v1  ;;  %v118_v12 = vstv %s1103_s17  ;;  %v140_v15 = vmul.f32 %v138_v10, %v1318_v7  ;;  %s1360_s9 = sld [smem:[#allocation6 + $0x36]] }
  0x15   :  { %92 = vrot.lane.b32.xlu1 %v88_v5, %s1248_s14  ;;  %v119_v13 = vmul.f32 %v118_v12, %v1299_v0  ;;  %v120_v14 = vmul.f32 %v118_v12, %v1312_v6  ;;  %v169_v16 = vstv %s1109_s21  ;;  %s1363_s2 = sld [smem:[#allocation6 + $0x17]] }
  0x16   :  { %143 = vrot.lane.b32.xlu2 %v139_v11, %s1249_s20  ;;  %v171_v17 = vmul.f32 %v169_v16, %v1312_v6  ;;  %v189_v18 = vstv %s1111_s22  ;;  %v170_v21 = vmul.f32 %v169_v16, %v1299_v0  ;;  %s1369_s10 = sld [smem:[#allocation6 + $0x37]] }
  0x17   :  { %v190_v20 = vmul.f32 %v189_v18, %v1336_v19  ;;  %v220_v22 = vstv %s1115_s23  ;;  %v191_v26 = vmul.f32 %v189_v18, %v1349_v24  ;;  %s1385_s12 = sld [smem:[#allocation6 + $0x30]] }
  0x18   :  { %v222_v23 = vmul.f32 %v220_v22, %v1312_v6  ;;  %v279_v27 = vstv %s1342_s26  ;;  %v221_v31 = vmul.f32 %v220_v22, %v1299_v0  ;;  %s1388_s13 = sld [smem:[#allocation6 + $0x10]] }
  0x19   :  { %v281_v28 = vmul.f32 %v279_v27, %v1355_v25  ;;  %v240_v29 = vstv %s239_s27  ;;  %v280_v41 = vmul.f32 %v279_v27, %v1394_v40  ;;  %s1399_s16 = sld [smem:[#allocation6 + $0x31]] }
  0x1a   :  { %v241_v30 = vmul.f32 %v240_v29, %v1336_v19  ;;  %v299_v32 = vstv %s1360_s9  ;;  %v242_v37 = vmul.f32 %v240_v29, %v1349_v24  ;;  %s1414_s19 = sld [smem:[#allocation6 + $0x3e]] }
  0x1b   :  { %v330_v34 = vstv %s1363_s2  ;;  %v300_v35 = vmul.f32 %v299_v32, %v1375_v33  ;;  %v301_v47 = vmul.f32 %v299_v32, %v1408_v46  ;;  %s1136_s21 = sld [smem:[#allocation6 + $0x11]] }
  0x1c   :  { %74 = vrot.lane.b32.xlu0 %v69_v8, %s1248_s14  ;;  %v332_v36 = vmul.f32 %v330_v34, %v1355_v25  ;;  %v350_v38 = vstv %s1369_s10  ;;  %v331_v50 = vmul.f32 %v330_v34, %v1394_v40  ;;  %s1427_s22 = sld [smem:[#allocation6 + $0x1e]] }
  0x1d   :  { %94 = vrot.lane.b32.xlu1 %v89_v9, %s1248_s14  ;;  %v351_v39 = vmul.f32 %v350_v38, %v1375_v33  ;;  %v401_v42 = vstv %s1385_s12  ;;  %v352_v55 = vmul.f32 %v350_v38, %v1408_v46  ;;  %s1098_s23 = sld [smem:[#allocation4 + $0x5]] }
  0x1e   :  { %194 = vrot.lane.b32.xlu2 %v190_v20, %s1248_s14  ;;  %v381_v43 = vstv %s1388_s13  ;;  %v402_v44 = vmul.f32 %v401_v42, %v1375_v33  ;;  %v403_v59 = vmul.f32 %v401_v42, %v1408_v46  ;;  %s1100_s24 = sld [smem:[#allocation4 + $0xd]] }
  0x1f   :  { %v383_v45 = vmul.f32 %v381_v43, %v1355_v25  ;;  %v452_v48 = vstv %s1399_s16  ;;  %v382_v56 = vmul.f32 %v381_v43, %v1394_v40  ;;  %s1102_s27 = sld [smem:[#allocation4 + $0x6]] }
  0x20   :  { %v453_v49 = vmul.f32 %v452_v48, %v1375_v33  ;;  %v503_v51 = vstv %s1414_s19  ;;  %v454_v11 = vmul.f32 %v452_v48, %v1408_v46  ;;  %s1104_s28 = sld [smem:[#allocation4 + $0xe]] }
  0x21   :  { %v504_v52 = vmul.f32 %v503_v51, %v1375_v33  ;;  %v432_v53 = vstv %s1136_s21  ;;  %s1108_s1 = sld [smem:[#allocation4 + $0x9]] }
  0x22   :  { %v434_v54 = vmul.f32 %v432_v53, %v1355_v25  ;;  %v483_v57 = vstv %s1427_s22  ;;  %v433_v62 = vmul.f32 %v432_v53, %v1394_v40  ;;  %s1110_s29 = sld [smem:[#allocation4 + $0x1]] }
  0x23   :  { %v485_v58 = vmul.f32 %v483_v57, %v1355_v25  ;;  %v60_v60 = vstv %s1098_s23  ;;  %v484_v22 = vmul.f32 %v483_v57, %v1394_v40  ;;  %s1114_s30 = sld [smem:[#allocation4 + $0xa]] }
  0x24   :  { %123 = vrot.lane.b32.xlu0 %v119_v13, %s1249_s20  ;;  %v61_v61 = vmul.f32 %v60_v60, %v1299_v0  ;;  %v81_v2 = vstv %s1100_s24  ;;  %v62_v10 = vmul.f32 %v60_v60, %v1312_v6  ;;  %s1116_s8 = sld [smem:[#allocation4 + $0x2]] }
  0x25   :  { %125 = vrot.lane.b32.xlu1 %v120_v14, %s1249_s20  ;;  %v82_v4 = vmul.f32 %v81_v2, %v1304_v1  ;;  %v83_v16 = vmul.f32 %v81_v2, %v1318_v7  ;;  %s1119_s9 = sld [smem:[#allocation6 + $0x12]] }
  0x26   :  { %245 = vrot.lane.b32.xlu2 %v241_v30, %s1249_s20  ;;  %v64_v3 = vadd.f32 %v1442_v63, %v61_v61  ;;  %v65_v14 = vadd.f32 %v1442_v63, %v62_v10  ;;  %v132_v27 = vstv %s1104_s28  ;;  %s1121_s2 = sld [smem:[#allocation6 + $0x32]] }
  0x27   :  { %s1123_s0 = sld [smem:[#allocation6 + $0x13]] }
  0x28   :  { %s1497_s12 = sld [smem:[#allocation6 + $0x1f]] }
  0x29   :  { %s1129_s13 = sld [smem:[#allocation6 + $0x14]] }
  0x2a   :  { %s1131_s3 = sld [smem:[#allocation6 + $0x34]] }
  0x2b   :  { %s1135_s15 = sld [smem:[#allocation6 + $0x15]] }
  0x2c   :  { %145 = vrot.lane.b32.xlu0 %v140_v15, %s1249_s20  ;;  %v112_v15 = vstv %s1102_s27  ;;  %s1137_s18 = sld [smem:[#allocation6 + $0x35]] }
  0x2d   :  { %176 = vrot.lane.b32.xlu1 %v171_v17, %s1248_s14  ;;  %s1525_s19 = sld [smem:[#allocation6 + $0x3f]] }
  0x2e   :  { %304 = vrot.lane.b32.xlu2 %v300_v35, %s1248_s14  ;;  %s1141_s23 = sld [smem:[#allocation6 + $0x1a]] }
  0x2f   :  { %s1143_s24 = sld [smem:[#allocation6 + $0x3a]] }
  0x30   :  { %s1607_s21 = sld [smem:[#allocation6 + $0x38]] }
  0x31   :  { %s1609_s22 = sld [smem:[#allocation6 + $0x1b]] }
  0x32   :  { %s1149_s27 = sld [smem:[#allocation6 + $0x3b]] }
  0x33   :  { %s1653_s10 = sld [smem:[#allocation6 + $0x39]] }
  0x34   :  { %174 = vrot.lane.b32.xlu0 %v170_v21, %s1248_s14  ;;  %v113_v21 = vmul.f32 %v112_v15, %v1299_v0  ;;  %s1153_s11 = sld [smem:[#allocation6 + $0x1c]] }
  0x35   :  { %227 = vrot.lane.b32.xlu1 %v222_v23, %s1249_s20  ;;  %v114_v23 = vmul.f32 %v112_v15, %v1312_v6  ;;  %s1679_s16 = sld [smem:[#allocation6 + $0x6]] }
  0x36   :  { %355 = vrot.lane.b32.xlu2 %v351_v39, %s1248_s14  ;;  %v115_v29 = vadd.f32 %v113_v21, %v1442_v63  ;;  %v505_v39 = vmul.f32 %v503_v51, %v1408_v46  ;;  %s1159_s17 = sld [smem:[#allocation6 + $0x1d]] }
  0x37   :  { %v116_v30 = vadd.f32 %v114_v23, %v1442_v63  ;;  %s1720_s28 = sld [smem:[#allocation6 + $0x7]] }
  0x38   :  { %s1177_s25 = sld [smem:[#allocation6 + $0x24]] }
  0x39   :  { %s1179_s26 = sld [smem:[#allocation6 + $0x4]] }
  0x3c   :  { %196 = vrot.lane.b32.xlu0 %v191_v26, %s1248_s14 }
  0x3d   :  { %286 = vrot.lane.b32.xlu1 %v281_v28, %s1248_s14 }
  0x3e   :  { %406 = vrot.lane.b32.xlu2 %v402_v44, %s1249_s20  ;;  %v163_v44 = vstv %s1108_s1  ;;  %s1165_s1 = sld [smem:[#allocation6 + $0x22]] }
  0x3f   :  { %v165_v48 = vmul.f32 %v163_v44, %v1312_v6 }
  0x41   :  { %v167_v51 = vadd.f32 %v165_v48, %v1442_v63 }
  0x44   :  { %225 = vrot.lane.b32.xlu0 %v221_v31, %s1249_s20  ;;  %v133_v31 = vmul.f32 %v132_v27, %v1304_v1 }
  0x45   :  { %337 = vrot.lane.b32.xlu1 %v332_v36, %s1248_s14  ;;  %v134_v36 = vmul.f32 %v132_v27, %v1318_v7  ;;  %v183_v7 = vstv %s1110_s29  ;;  %s1631_s29 = sld [smem:[#allocation6 + $0x19]] }
  0x46   :  { %457 = vrot.lane.b32.xlu2 %v453_v49, %s1249_s20  ;;  %v184_v53 = vmul.f32 %v183_v7, %v1336_v19  ;;  %v185_v57 = vmul.f32 %v183_v7, %v1349_v24 }
  0x4c   :  { %247 = vrot.lane.b32.xlu0 %v242_v37, %s1249_s20 }
  0x4d   :  { %388 = vrot.lane.b32.xlu1 %v383_v45, %s1249_s20 }
  0x4e   :  { %508 = vrot.lane.b32.xlu2 %v504_v52, %s1248_s14 }
  0x54   :  { %284 = vrot.lane.b32.xlu0 %v280_v41, %s1248_s14 }
  0x55   :  { %439 = vrot.lane.b32.xlu1 %v434_v54, %s1249_s20 }
  0x5c   :  { %306 = vrot.lane.b32.xlu0 %v301_v47, %s1248_s14  ;;  %v164_v47 = vmul.f32 %v163_v44, %v1299_v0 }
  0x5d   :  { %490 = vrot.lane.b32.xlu1 %v485_v58, %s1248_s14 }
  0x5e   :  { %v166_v49 = vadd.f32 %v164_v47, %v1442_v63 }
  0x64   :  { %335 = vrot.lane.b32.xlu0 %v331_v50, %s1248_s14 }
  0x6c   :  { %357 = vrot.lane.b32.xlu0 %v352_v55, %s1248_s14 }
  0x70   :  { %v144_v37 = vpop.permute.xlu2 %143 }
  0x74   :  { %386 = vrot.lane.b32.xlu0 %v382_v56, %s1249_s20 }
  0x78   :  { %v195_v50 = vpop.permute.xlu2 %194 }
  0x7c   :  { %408 = vrot.lane.b32.xlu0 %v403_v59, %s1249_s20 }
  0x80   :  { %v246_v61 = vpop.permute.xlu2 %245 }
  0x84   :  { %437 = vrot.lane.b32.xlu0 %v433_v62, %s1249_s20  ;;  %v214_v62 = vstv %s1114_s30 }
  0x86   :  { %v73_v5 = vpop.permute.xlu0 %72 }
  0x87   :  { %v78_v8 = vadd.f32 %v73_v5, %v64_v3  ;;  %v93_v9 = vpop.permute.xlu1 %92  ;;  %v216_v5 = vmul.f32 %v214_v62, %v1312_v6 }
  0x89   :  { %v84_v12 = vadd.f32 %v82_v4, %v78_v8  ;;  %v215_v4 = vmul.f32 %v214_v62, %v1299_v0  ;;  %v234_v8 = vstv %s1116_s8  ;;  %v218_v10 = vadd.f32 %v216_v5, %v1442_v63  ;;  %s1195_s8 = sld [smem:[#allocation6 + $0x2f]] }
  0x8a   :  { %v395_v5 = vstv %s1131_s3  ;;  %s1765_s3 = sld [smem:[#allocation6 + $0x21]] }
  0x8b   :  { %v98_v13 = vadd.f32 %v93_v9, %v84_v12  ;;  %v217_v9 = vadd.f32 %v215_v4, %v1442_v63  ;;  %v235_v12 = vmul.f32 %v234_v8, %v1336_v19 }
  0x8c   :  { %459 = vrot.lane.b32.xlu0 %v454_v11, %s1249_s20 }
  0x8d   :  { %102 = vrot.lane.b32.xlu2 %v98_v13, %s1249_s20  ;;  %v305_v13 = vpop.permute.xlu2 %304 }
  0x8e   :  { %v75_v17 = vpop.permute.xlu0 %74 }
  0x8f   :  { %v79_v18 = vadd.f32 %v75_v17, %v65_v14  ;;  %v95_v20 = vpop.permute.xlu1 %94  ;;  %v236_v17 = vmul.f32 %v234_v8, %v1349_v24  ;;  %v293_v24 = vstv %s1121_s2  ;;  %s1203_s2 = sld [smem:[#allocation6 + $0x8]] }
  0x91   :  { %v85_v26 = vadd.f32 %v83_v16, %v79_v18 }
  0x93   :  { %v99_v28 = vadd.f32 %v95_v20, %v85_v26  ;;  %v272_v20 = vstv %s1119_s9  ;;  %v1486_v26 = vstv %s2027_s4  ;;  %s1125_s4 = sld [smem:[#allocation6 + $0x33]] }
  0x94   :  { %488 = vrot.lane.b32.xlu0 %v484_v22, %s1248_s14  ;;  %v273_v63 = vmul.f32 %v272_v20, %v1394_v40  ;;  %v274_v19 = vmul.f32 %v272_v20, %v1355_v25  ;;  %s1185_s9 = sld [smem:[#allocation6 + $0x1]] }
  0x95   :  { %104 = vrot.lane.b32.xlu2 %v99_v28, %s1249_s20  ;;  %v356_v23 = vpop.permute.xlu2 %355 }
  0x96   :  { %v124_v32 = vpop.permute.xlu0 %123  ;;  %v276_v27 = vadd.f32 %v1486_v26, %v273_v63  ;;  %v277_v28 = vadd.f32 %v1486_v26, %v274_v19  ;;  %v446_v19 = vstv %s1137_s18  ;;  %s1599_s18 = sld [smem:[#allocation6 + $0x18]] }
  0x97   :  { %v129_v34 = vadd.f32 %v124_v32, %v115_v29  ;;  %v126_v35 = vpop.permute.xlu1 %125 }
  0x98   :  { %v130_v38 = vadd.f32 %v126_v35, %v116_v30  ;;  %v294_v30 = vmul.f32 %v293_v24, %v1375_v33  ;;  %v295_v35 = vmul.f32 %v293_v24, %v1408_v46 }
  0x99   :  { %v135_v41 = vadd.f32 %v133_v31, %v129_v34 }
  0x9a   :  { %v136_v43 = vadd.f32 %v134_v36, %v130_v38 }
  0x9b   :  { %v149_v42 = vadd.f32 %v144_v37, %v135_v41  ;;  %v324_v41 = vstv %s1123_s0  ;;  %s1155_s0 = sld [smem:[#allocation6 + $0x3c]] }
  0x9c   :  { %510 = vrot.lane.b32.xlu0 %v505_v39, %s1248_s14  ;;  %v325_v44 = vmul.f32 %v324_v41, %v1394_v40 }
  0x9d   :  { %153 = vrot.lane.b32.xlu1 %v149_v42, %s1249_s20  ;;  %v407_v37 = vpop.permute.xlu2 %406 }
  0x9e   :  { %v146_v45 = vpop.permute.xlu0 %145  ;;  %v327_v47 = vadd.f32 %v325_v44, %v1486_v26 }
  0x9f   :  { %v150_v1 = vadd.f32 %v146_v45, %v136_v43  ;;  %v177_v52 = vpop.permute.xlu1 %176  ;;  %v326_v45 = vmul.f32 %v324_v41, %v1355_v25 }
  0xa0   :  { %v181_v56 = vadd.f32 %v177_v52, %v167_v51 }
  0xa1   :  { %155 = vrot.lane.b32.xlu2 %v150_v1, %s1249_s20  ;;  %v344_v1 = vstv %s1125_s4  ;;  %v328_v7 = vadd.f32 %v326_v45, %v1486_v26  ;;  %s1753_s4 = sld [smem:[#allocation6 + $0x3]] }
  0xa2   :  { %v187_v60 = vadd.f32 %v185_v57, %v181_v56  ;;  %v534_v56 = vstv %s1497_s12  ;;  %s1900_s12 = sld [smem:[#allocation6 + $0xb]] }
  0xa5   :  { %v1500_v48 = vpop.permute.xlu2 %457 }
  0xa6   :  { %v175_v54 = vpop.permute.xlu0 %174 }
  0xa7   :  { %v180_v55 = vadd.f32 %v175_v54, %v166_v49  ;;  %v228_v11 = vpop.permute.xlu1 %227  ;;  %v346_v54 = vmul.f32 %v344_v1, %v1408_v46 }
  0xa8   :  { %v232_v16 = vadd.f32 %v228_v11, %v218_v10  ;;  %v396_v11 = vmul.f32 %v395_v5, %v1375_v33 }
  0xa9   :  { %v186_v58 = vadd.f32 %v184_v53, %v180_v55 }
  0xaa   :  { %v238_v18 = vadd.f32 %v236_v17, %v232_v16  ;;  %v397_v16 = vmul.f32 %v395_v5, %v1408_v46 }
  0xab   :  { %v200_v59 = vadd.f32 %v195_v50, %v186_v58  ;;  %v345_v50 = vmul.f32 %v344_v1, %v1375_v33 }
  0xad   :  { %204 = vrot.lane.b32.xlu1 %v200_v59, %s1249_s20  ;;  %v535_v59 = vmul.f32 %v534_v56, %v1394_v40 }
  0xae   :  { %v197_v2 = vpop.permute.xlu0 %196 }
  0xaf   :  { %v201_v3 = vadd.f32 %v197_v2, %v187_v60  ;;  %v287_v29 = vpop.permute.xlu1 %286  ;;  %v375_v60 = vstv %s1129_s13  ;;  %539 = vrot.lane.b32.xlu0 %v535_v59, %s1248_s14  ;;  %s1903_s13 = sld [smem:[#allocation6 + $0x2d]] }
  0xb0   :  { %v291_v34 = vadd.f32 %v287_v29, %v277_v28  ;;  %v377_v4 = vmul.f32 %v375_v60, %v1355_v25  ;;  %v447_v29 = vmul.f32 %v446_v19, %v1375_v33 }
  0xb1   :  { %206 = vrot.lane.b32.xlu2 %v201_v3, %s1249_s20  ;;  %v376_v3 = vmul.f32 %v375_v60, %v1394_v40 }
  0xb2   :  { %v297_v39 = vadd.f32 %v295_v35, %v291_v34 }
  0xb3   :  { %v378_v8 = vadd.f32 %v376_v3, %v1486_v26 }
  0xb6   :  { %v226_v14 = vpop.permute.xlu0 %225 }
  0xb7   :  { %v231_v15 = vadd.f32 %v226_v14, %v217_v9  ;;  %v338_v49 = vpop.permute.xlu1 %337  ;;  %v379_v9 = vadd.f32 %v377_v4, %v1486_v26 }
  0xb8   :  { %v342_v53 = vadd.f32 %v338_v49, %v328_v7 }
  0xb9   :  { %v237_v0 = vadd.f32 %v235_v12, %v231_v15 }
  0xba   :  { %v348_v58 = vadd.f32 %v346_v54, %v342_v53 }
  0xbb   :  { %v251_v6 = vadd.f32 %v246_v61, %v237_v0  ;;  %v1510_v61 = vpop.permute.xlu2 %508 }
  0xbd   :  { %255 = vrot.lane.b32.xlu1 %v251_v6, %s1249_s20 }
  0xbe   :  { %v248_v21 = vpop.permute.xlu0 %247 }
  0xbf   :  { %v252_v22 = vadd.f32 %v248_v21, %v238_v18  ;;  %v389_v10 = vpop.permute.xlu1 %388  ;;  %v426_v18 = vstv %s1135_s15  ;;  %s1166_s15 = sld [smem:[#allocation6 + $0x26]] }
  0xc0   :  { %v393_v15 = vadd.f32 %v389_v10, %v379_v9  ;;  %v427_v63 = vmul.f32 %v426_v18, %v1394_v40 }
  0xc1   :  { %257 = vrot.lane.b32.xlu2 %v252_v22, %s1249_s20 }
  0xc2   :  { %v399_v6 = vadd.f32 %v397_v16, %v393_v15  ;;  %v429_v24 = vadd.f32 %v427_v63, %v1486_v26 }
  0xc6   :  { %v285_v31 = vpop.permute.xlu0 %284 }
  0xc7   :  { %v290_v32 = vadd.f32 %v285_v31, %v276_v27  ;;  %v440_v28 = vpop.permute.xlu1 %439 }
  0xc9   :  { %v296_v36 = vadd.f32 %v294_v30, %v290_v32  ;;  %v554_v30 = vstv %s1525_s19  ;;  %s1161_s19 = sld [smem:[#allocation6 + $0x3d]] }
  0xca   :  { %v556_v32 = vmul.f32 %v554_v30, %v1408_v46  ;;  %v555_v3 = vmul.f32 %v554_v30, %v1375_v33  ;;  %v636_v30 = vstv %s1631_s29  ;;  %s1167_s29 = sld [smem:[#allocation6 + $0x2]] }
  0xcb   :  { %v310_v38 = vadd.f32 %v305_v13, %v296_v36  ;;  %v448_v36 = vmul.f32 %v446_v19, %v1408_v46 }
  0xcc   :  { %561 = vrot.lane.b32.xlu0 %v556_v32, %s1248_s14 }
  0xcd   :  { %314 = vrot.lane.b32.xlu1 %v310_v38, %s1249_s20 }
  0xce   :  { %v307_v42 = vpop.permute.xlu0 %306 }
  0xcf   :  { %v311_v43 = vadd.f32 %v307_v42, %v297_v39  ;;  %v477_v42 = vstv %s1141_s23  ;;  %s1697_s23 = sld [smem:[#allocation6 + $0x27]] }
  0xd0   :  { %v478_v45 = vmul.f32 %v477_v42, %v1394_v40  ;;  %v479_v1 = vmul.f32 %v477_v42, %v1355_v25 }
  0xd1   :  { %316 = vrot.lane.b32.xlu2 %v311_v43, %s1249_s20 }
  0xd2   :  { %v481_v7 = vadd.f32 %v479_v1, %v1486_v26 }
  0xd6   :  { %v336_v51 = vpop.permute.xlu0 %335 }
  0xd7   :  { %v341_v52 = vadd.f32 %v336_v51, %v327_v47  ;;  %v497_v47 = vstv %s1143_s24  ;;  %s1816_s24 = sld [smem:[#allocation6 + $0x9]] }
  0xd8   :  { %v498_v49 = vmul.f32 %v497_v47, %v1375_v33  ;;  %v499_v54 = vmul.f32 %v497_v47, %v1408_v46  ;;  %v579_v47 = vstv %s1153_s11  ;;  %s1746_s11 = sld [smem:[#allocation6]] }
  0xd9   :  { %v347_v55 = vadd.f32 %v345_v50, %v341_v52  ;;  %v491_v50 = vpop.permute.xlu1 %490 }
  0xda   :  { %v495_v53 = vadd.f32 %v491_v50, %v481_v7  ;;  %v599_v50 = vstv %s1155_s0  ;;  %s1748_s0 = sld [smem:[#allocation6 + $0x23]] }
  0xdb   :  { %v361_v57 = vadd.f32 %v356_v23, %v347_v55  ;;  %v428_v23 = vmul.f32 %v426_v18, %v1355_v25 }
  0xdc   :  { %v501_v59 = vadd.f32 %v499_v54, %v495_v53  ;;  %v581_v54 = vmul.f32 %v579_v47, %v1355_v25 }
  0xdd   :  { %365 = vrot.lane.b32.xlu1 %v361_v57, %s1249_s20  ;;  %v430_v27 = vadd.f32 %v428_v23, %v1486_v26 }
  0xde   :  { %v358_v62 = vpop.permute.xlu0 %357 }
  0xdf   :  { %v362_v2 = vadd.f32 %v358_v62, %v348_v58  ;;  %v444_v35 = vadd.f32 %v440_v28, %v430_v27 }
  0xe1   :  { %367 = vrot.lane.b32.xlu2 %v362_v2, %s1249_s20  ;;  %v450_v41 = vadd.f32 %v448_v36, %v444_v35 }
  0xe6   :  { %v387_v12 = vpop.permute.xlu0 %386 }
  0xe7   :  { %v392_v13 = vadd.f32 %v387_v12, %v378_v8  ;;  %v103_v14 = vpop.permute.xlu2 %102 }
  0xe8   :  { %109 = vst.msk [vmem:[%s2029_s6] sm:$0xff] %vm108_vm0, %v103_v14 }
  0xe9   :  { %v398_v17 = vadd.f32 %v396_v11, %v392_v13  ;;  %v585_v13 = vstv %s1599_s18 }
  0xea   :  { %v586_v14 = vmul.f32 %v585_v13, %v1394_v40  ;;  %v587_v32 = vmul.f32 %v585_v13, %v1355_v25  ;;  %v630_v13 = vstv %s1159_s17 }
  0xeb   :  { %v412_v0 = vadd.f32 %v407_v37, %v398_v17  ;;  %v605_v17 = vstv %s1607_s21 }
  0xec   :  { %590 = vrot.lane.b32.xlu0 %v586_v14, %s1249_s20 }
  0xed   :  { %416 = vrot.lane.b32.xlu1 %v412_v0, %s1249_s20  ;;  %v607_v0 = vmul.f32 %v605_v17, %v1408_v46 }
  0xee   :  { %v409_v20 = vpop.permute.xlu0 %408 }
  0xef   :  { %v413_v21 = vadd.f32 %v409_v20, %v399_v6  ;;  %v105_v22 = vpop.permute.xlu2 %104  ;;  %v528_v6 = vstv %s1609_s22  ;;  %s1809_s22 = sld [smem:[#allocation6 + $0xe]] }
  0xf0   :  { %110 = vst.msk [vmem:[%s2029_s6 + $0x8] sm:$0xff] %vm108_vm0, %v105_v22  ;;  %v529_v18 = vmul.f32 %v528_v6, %v1394_v40  ;;  %v548_v22 = vstv %s1149_s27  ;;  %v530_v35 = vmul.f32 %v528_v6, %v1355_v25 }
  0xf1   :  { %418 = vrot.lane.b32.xlu2 %v413_v21, %s1249_s20  ;;  %v549_v19 = vmul.f32 %v548_v22, %v1375_v33 }
  0xf2   :  { %v531_v20 = vadd.f32 %v529_v18, %v1486_v26  ;;  %v532_v36 = vadd.f32 %v530_v35, %v1486_v26 }
  0xf4   :  { %612 = vrot.lane.b32.xlu0 %v607_v0, %s1249_s20  ;;  %v650_v0 = vstv %s1161_s19  ;;  %s1944_s19 = sld [smem:[#allocation6 + $0xc]] }
  0xf6   :  { %v438_v31 = vpop.permute.xlu0 %437 }
  0xf7   :  { %v443_v34 = vadd.f32 %v438_v31, %v429_v24  ;;  %v637_v31 = vmul.f32 %v636_v30, %v1394_v40 }
  0xf9   :  { %v449_v37 = vadd.f32 %v447_v29, %v443_v34 }
  0xfb   :  { %v156_v38 = vpop.permute.xlu2 %155  ;;  %v463_v39 = vadd.f32 %v1500_v48, %v449_v37  ;;  %v480_v48 = vadd.f32 %v478_v45, %v1486_v26  ;;  %v550_v37 = vmul.f32 %v548_v22, %v1408_v46  ;;  %v656_v45 = vstv %s1653_s10  ;;  %s1178_s10 = sld [smem:[#allocation6 + $0x20]] }
  0xfc   :  { %1107 = vst.msk [vmem:[%s2029_s6 + $0x18] sm:$0xff] %vm108_vm0, %v156_v38  ;;  %641 = vrot.lane.b32.xlu0 %v637_v31, %s1249_s20  ;;  %v658_v1 = vmul.f32 %v656_v45, %v1408_v46 }
  0xfd   :  { %467 = vrot.lane.b32.xlu1 %v463_v39, %s1249_s20 }
  0xfe   :  { %v460_v43 = vpop.permute.xlu0 %459 }
  0xff   :  { %v464_v44 = vadd.f32 %v460_v43, %v450_v41 }
 0x101   :  { %469 = vrot.lane.b32.xlu2 %v464_v44, %s1249_s20  ;;  %v606_v44 = vmul.f32 %v605_v17, %v1375_v33 }
 0x104   :  { %663 = vrot.lane.b32.xlu0 %v658_v1, %s1249_s20 }
 0x106   :  { %v489_v51 = vpop.permute.xlu0 %488 }
 0x107   :  { %v494_v52 = vadd.f32 %v489_v51, %v480_v48  ;;  %v580_v48 = vmul.f32 %v579_v47, %v1394_v40 }
 0x109   :  { %v500_v55 = vadd.f32 %v498_v49, %v494_v52  ;;  %v582_v7 = vadd.f32 %v580_v48, %v1486_v26 }
 0x10b   :  { %v207_v57 = vpop.permute.xlu2 %206  ;;  %v514_v58 = vadd.f32 %v1510_v61, %v500_v55  ;;  %v536_v61 = vmul.f32 %v534_v56, %v1355_v25  ;;  %v600_v55 = vmul.f32 %v599_v50, %v1375_v33 }
 0x10c   :  { %1113 = vst.msk [vmem:[%s2029_s6 + $0x28] sm:$0xff] %vm108_vm0, %v207_v57  ;;  %v583_v57 = vadd.f32 %v581_v54, %v1486_v26 }
 0x10d   :  { %518 = vrot.lane.b32.xlu1 %v514_v58, %s1249_s20 }
 0x10e   :  { %v511_v60 = vpop.permute.xlu0 %510 }
 0x10f   :  { %v515_v62 = vadd.f32 %v511_v60, %v501_v59  ;;  %v154_v2 = vpop.permute.xlu1 %153  ;;  %v601_v59 = vmul.f32 %v599_v50, %v1408_v46 }
 0x110   :  { %1106 = vst.msk [vmem:[%s2029_s6 + $0x10] sm:$0xff] %vm108_vm0, %v154_v2 }
 0x111   :  { %520 = vrot.lane.b32.xlu2 %v515_v62, %s1249_s20 }
 0x115   :  { %541 = vrot.lane.b32.xlu1 %v536_v61, %s1248_s14 }
 0x119   :  { %559 = vrot.lane.b32.xlu2 %v555_v3, %s1248_s14 }
 0x11b   :  { %v258_v4 = vpop.permute.xlu2 %257 }
 0x11c   :  { %1118 = vst.msk [vmem:[%s2029_s6 + $0x38] sm:$0xff] %vm108_vm0, %v258_v4 }
 0x11f   :  { %v205_v5 = vpop.permute.xlu1 %204 }
 0x120   :  { %1112 = vst.msk [vmem:[%s2029_s6 + $0x20] sm:$0xff] %vm108_vm0, %v205_v5 }
 0x121   :  { %v540_v21 = vpop.permute.xlu0 %539 }
 0x122   :  { %v545_v23 = vadd.f32 %v540_v21, %v531_v20  ;;  %v651_v20 = vmul.f32 %v650_v0, %v1375_v33 }
 0x124   :  { %v551_v27 = vadd.f32 %v549_v19, %v545_v23  ;;  %v738_v23 = vstv %s1697_s23  ;;  %s1814_s23 = sld [smem:[#allocation6 + $0xf]] }
 0x125   :  { %v739_v19 = vmul.f32 %v738_v23, %v1394_v40 }
 0x12b   :  { %v317_v56 = vpop.permute.xlu2 %316 }
 0x12c   :  { %322 = vst.msk [vmem:[%s2030_s7 + $0x4] sm:$0xf] %vm320_vm1, %v317_v56  ;;  %v638_v56 = vmul.f32 %v636_v30, %v1355_v25 }
 0x12f   :  { %v256_v8 = vpop.permute.xlu1 %255 }
 0x130   :  { %1117 = vst.msk [vmem:[%s2029_s6 + $0x30] sm:$0xff] %vm108_vm0, %v256_v8  ;;  %v657_v8 = vmul.f32 %v656_v45, %v1375_v33  ;;  %v632_v33 = vmul.f32 %v630_v13, %v1355_v25  ;;  %s1790_s6 = sld [smem:[#allocation6 + $0x29]] }
 0x13b   :  { %v368_v9 = vpop.permute.xlu2 %367 }
 0x13c   :  { %1128 = vst.msk [vmem:[%s2030_s7 + $0xc] sm:$0xf] %vm320_vm1, %v368_v9  ;;  %v687_v9 = vstv %s1166_s15  ;;  %s1767_s15 = sld [smem:[#allocation6 + $0x2e]] }
 0x13e   :  { %v562_v41 = vpop.permute.xlu0 %561 }
 0x13f   :  { %v315_v10 = vpop.permute.xlu1 %314 }
 0x140   :  { %321 = vst.msk [vmem:[%s2030_s7] sm:$0xf] %vm320_vm1, %v315_v10  ;;  %v688_v10 = vmul.f32 %v687_v9, %v1394_v40 }
 0x142   :  { %692 = vrot.lane.b32.xlu0 %v688_v10, %s1248_s14  ;;  %v752_v10 = vstv %s1753_s4 }
 0x14b   :  { %v419_v11 = vpop.permute.xlu2 %418 }
 0x14c   :  { %1134 = vst.msk [vmem:[%s2030_s7 + $0x14] sm:$0xf] %vm320_vm1, %v419_v11  ;;  %v1685_v11 = vld [vmem:[%s2028_s5 + $0xa] sm:$0xf] }
 0x14f   :  { %v366_v12 = vpop.permute.xlu1 %365 }
 0x150   :  { %1127 = vst.msk [vmem:[%s2030_s7 + $0x8] sm:$0xf] %vm320_vm1, %v366_v12  ;;  %v707_v12 = vstv %s1679_s16  ;;  %s1777_s16 = sld [smem:[#allocation6 + $0x28]] }
 0x151   :  { %v709_v14 = vmul.f32 %v707_v12, %v1685_v11 }
 0x153   :  { %714 = vrot.lane.b32.xlu0 %v709_v14, %s1248_s14 }
 0x15b   :  { %v470_v15 = vpop.permute.xlu2 %469  ;;  %743 = vrot.lane.b32.xlu0 %v739_v19, %s1248_s14 }
 0x15c   :  { %1140 = vst.msk [vmem:[%s2030_s7 + $0x1c] sm:$0xf] %vm320_vm1, %v470_v15  ;;  %v631_v15 = vmul.f32 %v630_v13, %v1394_v40 }
 0x15e   :  { %v591_v49 = vpop.permute.xlu0 %590 }
 0x15f   :  { %v417_v16 = vpop.permute.xlu1 %416  ;;  %v596_v53 = vadd.f32 %v591_v49, %v582_v7 }
 0x160   :  { %1133 = vst.msk [vmem:[%s2030_s7 + $0x10] sm:$0xf] %vm320_vm1, %v417_v16  ;;  %v633_v16 = vadd.f32 %v631_v15, %v1486_v26 }
 0x161   :  { %v602_v58 = vadd.f32 %v600_v55, %v596_v53 }
 0x166   :  { %v613_v3 = vpop.permute.xlu0 %612 }
 0x16b   :  { %v521_v63 = vpop.permute.xlu2 %520 }
 0x16c   :  { %1146 = vst.msk [vmem:[%s2030_s7 + $0x24] sm:$0xf] %vm320_vm1, %v521_v63 }
 0x16e   :  { %v642_v17 = vpop.permute.xlu0 %641 }
 0x16f   :  { %v468_v24 = vpop.permute.xlu1 %467  ;;  %v647_v18 = vadd.f32 %v642_v17, %v633_v16 }
 0x170   :  { %1139 = vst.msk [vmem:[%s2030_s7 + $0x18] sm:$0xf] %vm320_vm1, %v468_v24  ;;  %v689_v24 = vmul.f32 %v687_v9, %v1355_v25 }
 0x171   :  { %v653_v21 = vadd.f32 %v651_v20, %v647_v18  ;;  %v891_v20 = vstv %s1767_s15  ;;  %s1913_s15 = sld [smem:[#allocation6 + $0xd]] }
 0x173   :  { %v560_v28 = vpop.permute.xlu2 %559 }
 0x174   :  { %v565_v29 = vadd.f32 %v560_v28, %v551_v27  ;;  %v634_v28 = vadd.f32 %v632_v33, %v1486_v26 }
 0x176   :  { %569 = vrot.lane.b32.xlu1 %v565_v29, %s1249_s20  ;;  %v652_v29 = vmul.f32 %v650_v0, %v1408_v46  ;;  %v758_v46 = vstv %s1720_s28  ;;  %v840_v0 = vstv %s1765_s3  ;;  %s1910_s3 = sld [smem:[#allocation6 + $0x25]] }
 0x17e   :  { %592 = vrot.lane.b32.xlu1 %v587_v32, %s1249_s20  ;;  %v664_v32 = vpop.permute.xlu0 %663 }
 0x17f   :  { %v519_v34 = vpop.permute.xlu1 %518 }
 0x180   :  { %1145 = vst.msk [vmem:[%s2030_s7 + $0x20] sm:$0xf] %vm320_vm1, %v519_v34 }
 0x187   :  { %v542_v38 = vpop.permute.xlu1 %541 }
 0x188   :  { %v546_v39 = vadd.f32 %v542_v38, %v532_v36  ;;  %v1716_v36 = vld [vmem:[%s2028_s5 + $0x2] sm:$0xf]  ;;  %v760_v38 = vmul.f32 %v758_v46, %v1685_v11 }
 0x189   :  { %v753_v14 = vmul.f32 %v752_v10, %v1716_v36 }
 0x18a   :  { %v552_v42 = vadd.f32 %v550_v37, %v546_v39  ;;  %v708_v37 = vmul.f32 %v707_v12, %v1716_v36  ;;  %v681_v39 = vstv %s1165_s1  ;;  %765 = vrot.lane.b32.xlu0 %v760_v38, %s1248_s14 }
 0x18b   :  { %v683_v48 = vmul.f32 %v681_v39, %v1355_v25 }
 0x18c   :  { %v566_v43 = vadd.f32 %v562_v41, %v552_v42  ;;  %v682_v41 = vmul.f32 %v681_v39, %v1394_v40  ;;  %v1064_v39 = vstv %s1816_s24 }
 0x18d   :  { %v685_v49 = vadd.f32 %v683_v48, %v1486_v26 }
 0x18e   :  { %571 = vrot.lane.b32.xlu2 %v566_v43, %s1249_s20  ;;  %v684_v42 = vadd.f32 %v682_v41, %v1486_v26  ;;  %v1065_v41 = vmul.f32 %v1064_v39, %v1716_v36 }
 0x196   :  { %610 = vrot.lane.b32.xlu2 %v606_v44, %s1249_s20  ;;  %v701_v44 = vstv %s1167_s29 }
 0x197   :  { %v702_v7 = vmul.f32 %v701_v44, %v1716_v36 }
 0x1b4   :  { %v693_v43 = vpop.permute.xlu0 %692 }
 0x1b5   :  { %v698_v47 = vadd.f32 %v693_v43, %v684_v42  ;;  %v783_v42 = vstv %s1177_s25  ;;  %v1827_v43 = vld [vmem:[%s2028_s5 + $0x1] sm:$0xf] }
 0x1b7   :  { %v704_v50 = vadd.f32 %v702_v7, %v698_v47  ;;  %v803_v47 = vstv %s1179_s26 }
 0x1e8   :  { %v570_v51 = vpop.permute.xlu1 %569  ;;  %v572_v52 = vpop.permute.xlu2 %571 }
 0x1e9   :  { %1151 = vst.msk [vmem:[%s2030_s7 + $0x28] sm:$0xf] %vm320_vm1, %v570_v51  ;;  %v703_v51 = vmul.f32 %v701_v44, %v1685_v11  ;;  %v784_v44 = vmul.f32 %v1827_v43, %v783_v42 }
 0x1ea   :  { %1152 = vst.msk [vmem:[%s2030_s7 + $0x2c] sm:$0xf] %vm320_vm1, %v572_v52 }
 0x1f0   :  { %v593_v60 = vpop.permute.xlu1 %592  ;;  %v611_v62 = vpop.permute.xlu2 %610 }
 0x1f1   :  { %v597_v2 = vadd.f32 %v593_v60, %v583_v57  ;;  %v616_v61 = vadd.f32 %v611_v62, %v602_v58  ;;  %v715_v57 = vpop.permute.xlu0 %714  ;;  %v740_v60 = vmul.f32 %v738_v23, %v1355_v25  ;;  %v759_v62 = vmul.f32 %v758_v46, %v1716_v36 }
 0x1f2   :  { %v993_v23 = vstv %s1777_s16  ;;  %v962_v46 = vstv %s1814_s23  ;;  %s1922_s16 = sld [smem:[#allocation6 + $0x5]] }
 0x1f3   :  { %620 = vrot.lane.b32.xlu1 %v616_v61, %s1249_s20  ;;  %v603_v4 = vadd.f32 %v601_v59, %v597_v2  ;;  %v789_v2 = vstv %s1178_s10  ;;  %v964_v38 = vmul.f32 %v962_v46, %v1685_v11  ;;  %s1883_s10 = sld [smem:[#allocation6 + $0x2a]] }
 0x1f4   :  { %v790_v61 = vmul.f32 %v789_v2, %v1394_v40  ;;  %v791_v18 = vmul.f32 %v789_v2, %v1355_v25 }
 0x1f5   :  { %v617_v5 = vadd.f32 %v613_v3, %v603_v4  ;;  %v809_v3 = vstv %s1746_s11  ;;  %v732_v4 = vstv %s1748_s0  ;;  %s1890_s11 = sld [smem:[#allocation6 + $0x2b]] }
 0x1f6   :  { %794 = vrot.lane.b32.xlu0 %v790_v61, %s1249_s20 }
 0x1f7   :  { %622 = vrot.lane.b32.xlu2 %v617_v5, %s1249_s20  ;;  %v811_v5 = vmul.f32 %v809_v3, %v1685_v11 }
 0x1f9   :  { %v744_v9 = vpop.permute.xlu0 %743 }
 0x1fb   :  { %643 = vrot.lane.b32.xlu1 %v638_v56, %s1249_s20  ;;  %v733_v56 = vmul.f32 %v732_v4, %v1394_v40 }
 0x1fe   :  { %816 = vrot.lane.b32.xlu0 %v811_v5, %s1249_s20 }
 0x1ff   :  { %661 = vrot.lane.b32.xlu2 %v657_v8, %s1249_s20  ;;  %v735_v8 = vadd.f32 %v733_v56, %v1486_v26 }
 0x201   :  { %v749_v13 = vadd.f32 %v744_v9, %v735_v8 }
 0x203   :  { %v755_v15 = vadd.f32 %v753_v14, %v749_v13 }
 0x251   :  { %v623_v6 = vpop.permute.xlu2 %622 }
 0x252   :  { %1158 = vst.msk [vmem:[%s2030_s7 + $0x34] sm:$0xf] %vm320_vm1, %v623_v6  ;;  %v841_v6 = vmul.f32 %v840_v0, %v1394_v40 }
 0x254   :  { %845 = vrot.lane.b32.xlu0 %v841_v6, %s1249_s20  ;;  %v1066_v6 = vmul.f32 %v1064_v39, %v1685_v11 }
 0x259   :  { %v662_v22 = vpop.permute.xlu2 %661 }
 0x25a   :  { %v667_v63 = vadd.f32 %v662_v22, %v653_v21  ;;  %v893_v21 = vmul.f32 %v891_v20, %v1355_v25 }
 0x25c   :  { %671 = vrot.lane.b32.xlu1 %v667_v63, %s1249_s20  ;;  %v734_v63 = vmul.f32 %v732_v4, %v1355_v25  ;;  %898 = vrot.lane.b32.xlu0 %v893_v21, %s1248_s14  ;;  %v1044_v25 = vstv %s1790_s6  ;;  %v942_v4 = vstv %s1195_s8  ;;  %s1939_s6 = sld [smem:[#allocation6 + $0x2c]] }
 0x25d   :  { %v943_v5 = vmul.f32 %v1827_v43, %v942_v4  ;;  %v1045_v9 = vmul.f32 %v1827_v43, %v1044_v25 }
 0x25e   :  { %v736_v19 = vadd.f32 %v734_v63, %v1486_v26  ;;  %v885_v63 = vstv %s1883_s10 }
 0x264   :  { %694 = vrot.lane.b32.xlu1 %v689_v24, %s1248_s14  ;;  %v994_v24 = vmul.f32 %v993_v23, %v1394_v40  ;;  %v810_v40 = vmul.f32 %v809_v3, %v1716_v36  ;;  %v892_v3 = vmul.f32 %v1827_v43, %v891_v20 }
 0x265   :  { %v621_v27 = vpop.permute.xlu1 %620 }
 0x266   :  { %1157 = vst.msk [vmem:[%s2030_s7 + $0x30] sm:$0xf] %vm320_vm1, %v621_v27  ;;  %v754_v27 = vmul.f32 %v752_v10, %v1685_v11  ;;  %998 = vrot.lane.b32.xlu0 %v994_v24, %s1249_s20  ;;  %v860_v10 = vstv %s1185_s9 }
 0x267   :  { %v862_v13 = vmul.f32 %v860_v10, %v1685_v11 }
 0x26d   :  { %v644_v30 = vpop.permute.xlu1 %643 }
 0x26e   :  { %v648_v31 = vadd.f32 %v644_v30, %v634_v28 }
 0x270   :  { %v654_v34 = vadd.f32 %v652_v29, %v648_v31  ;;  %v766_v29 = vpop.permute.xlu0 %765 }
 0x272   :  { %v668_v35 = vadd.f32 %v664_v32, %v654_v34  ;;  %v1802_v32 = vld [vmem:[%s2028_s5 + $0x9] sm:$0xf] }
 0x273   :  { %v1046_v34 = vmul.f32 %v1802_v32, %v1044_v25  ;;  %v842_v61 = vmul.f32 %v1802_v32, %v840_v0  ;;  %v944_v56 = vmul.f32 %v1802_v32, %v942_v4  ;;  %v995_v8 = vmul.f32 %v1802_v32, %v993_v23 }
 0x274   :  { %673 = vrot.lane.b32.xlu2 %v668_v35, %s1249_s20  ;;  %v911_v35 = vstv %s1809_s22 }
 0x275   :  { %1051 = vrot.lane.b32.xlu0 %v1046_v34, %s1249_s20  ;;  %v913_v14 = vmul.f32 %v911_v35, %v1685_v11 }
 0x27c   :  { %712 = vrot.lane.b32.xlu2 %v708_v37, %s1248_s14  ;;  %v912_v37 = vmul.f32 %v911_v35, %v1716_v36 }
 0x27e   :  { %916 = vrot.lane.b32.xlu0 %v912_v37, %s1248_s14 }
 0x286   :  { %969 = vrot.lane.b32.xlu0 %v964_v38, %s1248_s14 }
 0x28e   :  { %1069 = vrot.lane.b32.xlu0 %v1065_v41, %s1249_s20 }
 0x2ce   :  { %v672_v45 = vpop.permute.xlu1 %671  ;;  %v674_v1 = vpop.permute.xlu2 %673 }
 0x2cf   :  { %1163 = vst.msk [vmem:[%s2030_s7 + $0x38] sm:$0xf] %vm320_vm1, %v672_v45  ;;  %v786_v45 = vadd.f32 %v784_v44, %v1486_v26 }
 0x2d0   :  { %1164 = vst.msk [vmem:[%s2030_s7 + $0x3c] sm:$0xf] %vm320_vm1, %v674_v1  ;;  %v795_v1 = vpop.permute.xlu0 %794 }
 0x2d6   :  { %v695_v52 = vpop.permute.xlu1 %694  ;;  %v713_v53 = vpop.permute.xlu2 %712 }
 0x2d7   :  { %v699_v54 = vadd.f32 %v695_v52, %v685_v49  ;;  %v718_v55 = vadd.f32 %v713_v53, %v704_v50  ;;  %v800_v49 = vadd.f32 %v795_v1, %v786_v45  ;;  %v785_v50 = vmul.f32 %v1802_v32, %v783_v42 }
 0x2d8   :  { %v834_v1 = vstv %s1910_s3 }
 0x2d9   :  { %722 = vrot.lane.b32.xlu1 %v718_v55, %s1249_s20  ;;  %v705_v58 = vadd.f32 %v703_v51, %v699_v54  ;;  %v804_v51 = vmul.f32 %v803_v47, %v1716_v36  ;;  %v787_v52 = vadd.f32 %v785_v50, %v1486_v26  ;;  %v805_v54 = vmul.f32 %v803_v47, %v1685_v11 }
 0x2da   :  { %v836_v50 = vmul.f32 %v1802_v32, %v834_v1 }
 0x2db   :  { %v719_v59 = vadd.f32 %v715_v57, %v705_v58  ;;  %v806_v53 = vadd.f32 %v804_v51, %v800_v49 }
 0x2dd   :  { %724 = vrot.lane.b32.xlu2 %v719_v59, %s1249_s20 }
 0x2e1   :  { %745 = vrot.lane.b32.xlu1 %v740_v60, %s1248_s14  ;;  %v817_v60 = vpop.permute.xlu0 %816 }
 0x2e5   :  { %763 = vrot.lane.b32.xlu2 %v759_v62, %s1248_s14 }
 0x337   :  { %v725_v12 = vpop.permute.xlu2 %724 }
 0x338   :  { %1170 = vst.msk [vmem:[%s2030_s7 + $0x44] sm:$0xf] %vm320_vm1, %v725_v12  ;;  %v861_v12 = vmul.f32 %v860_v10, %v1716_v36 }
 0x33f   :  { %v764_v16 = vpop.permute.xlu2 %763 }
 0x340   :  { %v769_v17 = vadd.f32 %v764_v16, %v755_v15  ;;  %v963_v15 = vmul.f32 %v962_v46, %v1716_v36  ;;  %v1013_v16 = vstv %s1203_s2  ;;  %v1038_v46 = vstv %s1903_s13 }
 0x341   :  { %v1015_v0 = vmul.f32 %v1013_v16, %v1685_v11  ;;  %v1039_v44 = vmul.f32 %v1827_v43, %v1038_v46 }
 0x342   :  { %773 = vrot.lane.b32.xlu1 %v769_v17, %s1249_s20  ;;  %v1014_v17 = vmul.f32 %v1013_v16, %v1716_v36 }
 0x343   :  { %v1041_v49 = vadd.f32 %v1039_v44, %v1486_v26 }
 0x34a   :  { %796 = vrot.lane.b32.xlu1 %v791_v18, %s1249_s20  ;;  %v1877_v18 = vpop.permute.xlu0 %845 }
 0x34b   :  { %v723_v22 = vpop.permute.xlu1 %722 }
 0x34c   :  { %1169 = vst.msk [vmem:[%s2030_s7 + $0x40] sm:$0xf] %vm320_vm1, %v723_v22 }
 0x352   :  { %v1879_v20 = vpop.permute.xlu0 %898 }
 0x353   :  { %v746_v33 = vpop.permute.xlu1 %745 }
 0x354   :  { %v750_v28 = vadd.f32 %v746_v33, %v736_v19  ;;  %v886_v19 = vmul.f32 %v1827_v43, %v885_v63 }
 0x356   :  { %v756_v30 = vadd.f32 %v754_v27, %v750_v28  ;;  %v888_v27 = vadd.f32 %v886_v19, %v1486_v26  ;;  %v936_v28 = vstv %s1890_s11 }
 0x358   :  { %v770_v31 = vadd.f32 %v766_v29, %v756_v30 }
 0x35a   :  { %775 = vrot.lane.b32.xlu2 %v770_v31, %s1249_s20  ;;  %v1881_v21 = vpop.permute.xlu0 %998  ;;  %v938_v31 = vmul.f32 %v1802_v32, %v936_v28 }
 0x35c   :  { %v940_v37 = vadd.f32 %v938_v31, %v1486_v26 }
 0x362   :  { %814 = vrot.lane.b32.xlu2 %v810_v40, %s1249_s20  ;;  %v1885_v22 = vpop.permute.xlu0 %1051  ;;  %v956_v40 = vstv %s1900_s12 }
 0x363   :  { %v958_v38 = vmul.f32 %v956_v40, %v1685_v11 }
 0x36a   :  { %v917_v33 = vpop.permute.xlu0 %916 }
 0x372   :  { %v970_v41 = vpop.permute.xlu0 %969 }
 0x3b4   :  { %v774_v48 = vpop.permute.xlu1 %773  ;;  %v776_v7 = vpop.permute.xlu2 %775 }
 0x3b5   :  { %1175 = vst.msk [vmem:[%s2030_s7 + $0x48] sm:$0xf] %vm320_vm1, %v774_v48  ;;  %v1058_v48 = vstv %s1913_s15 }
 0x3b6   :  { %1176 = vst.msk [vmem:[%s2030_s7 + $0x4c] sm:$0xf] %vm320_vm1, %v776_v7  ;;  %v1059_v51 = vmul.f32 %v1058_v48, %v1716_v36 }
 0x3bc   :  { %v797_v55 = vpop.permute.xlu1 %796  ;;  %v815_v57 = vpop.permute.xlu2 %814 }
 0x3bd   :  { %v801_v58 = vadd.f32 %v797_v55, %v787_v52  ;;  %v820_v59 = vadd.f32 %v815_v57, %v806_v53  ;;  %v1070_v55 = vpop.permute.xlu0 %1069  ;;  %v854_v57 = vstv %s1922_s16 }
 0x3bf   :  { %824 = vrot.lane.b32.xlu1 %v820_v59, %s1249_s20  ;;  %v807_v62 = vadd.f32 %v805_v54, %v801_v58  ;;  %v838_v54 = vadd.f32 %v836_v50, %v1486_v26  ;;  %v856_v59 = vmul.f32 %v854_v57, %v1685_v11 }
 0x3c1   :  { %v821_v2 = vadd.f32 %v817_v60, %v807_v62 }
 0x3c3   :  { %826 = vrot.lane.b32.xlu2 %v821_v2, %s1249_s20 }
 0x3c7   :  { %847 = vrot.lane.b32.xlu1 %v842_v61, %s1249_s20  ;;  %v937_v61 = vmul.f32 %v1827_v43, %v936_v28 }
 0x3cb   :  { %896 = vrot.lane.b32.xlu2 %v892_v3, %s1248_s14 }
 0x3cf   :  { %947 = vrot.lane.b32.xlu1 %v943_v5, %s1248_s14 }
 0x3d3   :  { %949 = vrot.lane.b32.xlu2 %v944_v56, %s1248_s14  ;;  %v939_v56 = vadd.f32 %v937_v61, %v1486_v26 }
 0x3d7   :  { %1000 = vrot.lane.b32.xlu1 %v995_v8, %s1249_s20  ;;  %v957_v8 = vmul.f32 %v956_v40, %v1716_v36 }
 0x3db   :  { %1049 = vrot.lane.b32.xlu2 %v1045_v9, %s1249_s20  ;;  %v987_v9 = vstv %s1939_s6 }
 0x3df   :  { %865 = vrot.lane.b32.xlu1 %v861_v12, %s1249_s20 }
 0x3e3   :  { %867 = vrot.lane.b32.xlu2 %v862_v13, %s1249_s20  ;;  %v989_v13 = vmul.f32 %v1802_v32, %v987_v9 }
 0x3e7   :  { %918 = vrot.lane.b32.xlu1 %v913_v14, %s1248_s14  ;;  %v835_v14 = vmul.f32 %v1827_v43, %v834_v1 }
 0x3eb   :  { %967 = vrot.lane.b32.xlu2 %v963_v15, %s1248_s14  ;;  %s1887_s14 = sld [smem:[#allocation6 + $0xa]] }
 0x3ef   :  { %1018 = vrot.lane.b32.xlu1 %v1014_v17, %s1249_s20 }
 0x3f1   :  { %v905_v24 = vstv %s1887_s14 }
 0x3f2   :  { %v906_v29 = vmul.f32 %v905_v24, %v1716_v36 }
 0x3f3   :  { %1020 = vrot.lane.b32.xlu2 %v1015_v0, %s1249_s20  ;;  %v991_v0 = vadd.f32 %v989_v13, %v1486_v26 }
 0x3f7   :  { %1071 = vrot.lane.b32.xlu1 %v1066_v6, %s1249_s20  ;;  %v1007_v6 = vstv %s1944_s19 }
 0x3f8   :  { %v1009_v19 = vmul.f32 %v1007_v6, %v1685_v11 }
 0x41d   :  { %v827_v23 = vpop.permute.xlu2 %826 }
 0x41e   :  { %1181 = vst.msk [vmem:[%s2030_s7 + $0x54] sm:$0xf] %vm320_vm1, %v827_v23  ;;  %v837_v23 = vadd.f32 %v835_v14, %v1486_v26 }
 0x420   :  { %v851_v28 = vadd.f32 %v1877_v18, %v837_v23  ;;  %v988_v18 = vmul.f32 %v1827_v43, %v987_v9  ;;  %v1008_v43 = vmul.f32 %v1007_v6, %v1716_v36 }
 0x425   :  { %v897_v30 = vpop.permute.xlu2 %896 }
 0x426   :  { %v902_v25 = vadd.f32 %v897_v30, %v888_v27 }
 0x428   :  { %v908_v34 = vadd.f32 %v906_v29, %v902_v25  ;;  %v887_v29 = vmul.f32 %v1802_v32, %v885_v63  ;;  %v855_v25 = vmul.f32 %v854_v57, %v1716_v36  ;;  %v907_v63 = vmul.f32 %v905_v24, %v1685_v11 }
 0x42a   :  { %v922_v35 = vadd.f32 %v917_v33, %v908_v34  ;;  %v889_v40 = vadd.f32 %v887_v29, %v1486_v26 }
 0x42c   :  { %926 = vrot.lane.b32.xlu1 %v922_v35, %s1249_s20  ;;  %v857_v35 = vadd.f32 %v855_v25, %v851_v28 }
 0x42d   :  { %v950_v39 = vpop.permute.xlu2 %949 }
 0x42e   :  { %v954_v42 = vadd.f32 %v950_v39, %v940_v37  ;;  %v903_v39 = vadd.f32 %v1879_v20, %v889_v40 }
 0x430   :  { %v960_v45 = vadd.f32 %v958_v38, %v954_v42  ;;  %v909_v42 = vadd.f32 %v907_v63, %v903_v39 }
 0x431   :  { %v825_v47 = vpop.permute.xlu1 %824 }
 0x432   :  { %1180 = vst.msk [vmem:[%s2030_s7 + $0x50] sm:$0xf] %vm320_vm1, %v825_v47  ;;  %v974_v7 = vadd.f32 %v970_v41, %v960_v45  ;;  %v990_v41 = vadd.f32 %v988_v18, %v1486_v26  ;;  %v1040_v47 = vmul.f32 %v1802_v32, %v1038_v46 }
 0x434   :  { %979 = vrot.lane.b32.xlu1 %v974_v7, %s1249_s20  ;;  %v1004_v1 = vadd.f32 %v1881_v21, %v990_v41  ;;  %v1042_v20 = vadd.f32 %v1040_v47, %v1486_v26 }
 0x435   :  { %v1050_v52 = vpop.permute.xlu2 %1049 }
 0x436   :  { %v1055_v53 = vadd.f32 %v1050_v52, %v1041_v49  ;;  %v1010_v7 = vadd.f32 %v1008_v43, %v1004_v1  ;;  %v1056_v24 = vadd.f32 %v1885_v22, %v1042_v20 }
 0x438   :  { %v1061_v58 = vadd.f32 %v1059_v51, %v1055_v53  ;;  %v1060_v51 = vmul.f32 %v1058_v48, %v1685_v11 }
 0x439   :  { %v848_v60 = vpop.permute.xlu1 %847 }
 0x43a   :  { %v852_v62 = vadd.f32 %v848_v60, %v838_v54  ;;  %v1075_v2 = vadd.f32 %v1070_v55, %v1061_v58  ;;  %v1062_v21 = vadd.f32 %v1060_v51, %v1056_v24 }
 0x43c   :  { %v858_v3 = vadd.f32 %v856_v59, %v852_v62  ;;  %1079 = vrot.lane.b32.xlu1 %v1075_v2, %s1249_s20 }
 0x43d   :  { %v868_v4 = vpop.permute.xlu2 %867 }
 0x43e   :  { %v872_v5 = vadd.f32 %v868_v4, %v858_v3 }
 0x440   :  { %877 = vrot.lane.b32.xlu0 %v872_v5, %s1249_s20 }
 0x441   :  { %v948_v10 = vpop.permute.xlu1 %947 }
 0x442   :  { %v953_v12 = vadd.f32 %v948_v10, %v939_v56 }
 0x444   :  { %v959_v15 = vadd.f32 %v957_v8, %v953_v12 }
 0x445   :  { %v968_v16 = vpop.permute.xlu2 %967 }
 0x446   :  { %v973_v17 = vadd.f32 %v968_v16, %v959_v15 }
 0x448   :  { %977 = vrot.lane.b32.xlu0 %v973_v17, %s1249_s20 }
 0x449   :  { %v1001_v27 = vpop.permute.xlu1 %1000 }
 0x44a   :  { %v1005_v33 = vadd.f32 %v1001_v27, %v991_v0 }
 0x44c   :  { %v1011_v30 = vadd.f32 %v1009_v19, %v1005_v33 }
 0x44d   :  { %v1021_v31 = vpop.permute.xlu2 %1020 }
 0x44e   :  { %v1025_v34 = vadd.f32 %v1021_v31, %v1011_v30 }
 0x450   :  { %1030 = vrot.lane.b32.xlu0 %v1025_v34, %s1249_s20 }
 0x451   :  { %v866_v37 = vpop.permute.xlu1 %865 }
 0x452   :  { %v871_v38 = vadd.f32 %v866_v37, %v857_v35 }
 0x454   :  { %875 = vrot.lane.b32.xlu2 %v871_v38, %s1249_s20 }
 0x459   :  { %v919_v44 = vpop.permute.xlu1 %918 }
 0x45a   :  { %v923_v45 = vadd.f32 %v919_v44, %v909_v42 }
 0x45c   :  { %928 = vrot.lane.b32.xlu2 %v923_v45, %s1249_s20 }
 0x461   :  { %v1019_v49 = vpop.permute.xlu1 %1018 }
 0x462   :  { %v1024_v50 = vadd.f32 %v1019_v49, %v1010_v7 }
 0x464   :  { %1028 = vrot.lane.b32.xlu2 %v1024_v50, %s1249_s20 }
 0x469   :  { %v1072_v52 = vpop.permute.xlu1 %1071 }
 0x46a   :  { %v1076_v53 = vadd.f32 %v1072_v52, %v1062_v21 }
 0x46c   :  { %1081 = vrot.lane.b32.xlu2 %v1076_v53, %s1249_s20 }
 0x49e   :  { %v927_v32 = vpop.permute.xlu1 %926 }
 0x49f   :  { %1192 = vst.msk [vmem:[%s2030_s7 + $0x60] sm:$0xf] %vm320_vm1, %v927_v32 }
 0x4a6   :  { %v980_v26 = vpop.permute.xlu1 %979 }
 0x4a7   :  { %1199 = vst.msk [vmem:[%s2030_s7 + $0x6c] sm:$0xf] %vm320_vm1, %v980_v26 }
 0x4ae   :  { %v876_v36 = vpop.permute.xlu2 %875  ;;  %v1080_v22 = vpop.permute.xlu1 %1079 }
 0x4af   :  { %1186 = vst.msk [vmem:[%s2030_s7 + $0x58] sm:$0xf] %vm320_vm1, %v876_v36 }
 0x4b0   :  { %1210 = vst.msk [vmem:[%s2030_s7 + $0x78] sm:$0xf] %vm320_vm1, %v1080_v22 }
 0x4b2   :  { %v878_v11 = vpop.permute.xlu0 %877 }
 0x4b3   :  { %1187 = vst.msk [vmem:[%s2030_s7 + $0x5c] sm:$0xf] %vm320_vm1, %v878_v11 }
 0x4b6   :  { %v929_v46 = vpop.permute.xlu2 %928 }
 0x4b7   :  { %1193 = vst.msk [vmem:[%s2030_s7 + $0x64] sm:$0xf] %vm320_vm1, %v929_v46 }
 0x4ba   :  { %v978_v48 = vpop.permute.xlu0 %977 }
 0x4bb   :  { %1198 = vst.msk [vmem:[%s2030_s7 + $0x68] sm:$0xf] %vm320_vm1, %v978_v48 }
 0x4be   :  { %v1029_v54 = vpop.permute.xlu2 %1028 }
 0x4bf   :  { %1204 = vst.msk [vmem:[%s2030_s7 + $0x70] sm:$0xf] %vm320_vm1, %v1029_v54 }
 0x4c2   :  { %v1031_v55 = vpop.permute.xlu0 %1030 }
 0x4c3   :  { %1205 = vst.msk [vmem:[%s2030_s7 + $0x74] sm:$0xf] %vm320_vm1, %v1031_v55 }
 0x4c6   :  { %v1082_v57 = vpop.permute.xlu2 %1081 }
 0x4c7   :  { %1211 = vst.msk [vmem:[%s2030_s7 + $0x7c] sm:$0xf] %vm320_vm1, %v1082_v57 }
 0x4c8   :  { %1096 = vsyncpa [#allocation5], 1 }
 0x4c9   :  { %1097 = vsyncpa [#allocation7], 1 }

// kernel: concat_layer_forward.5
= control target key start
LH: loop header
LB: loop body
LE: loop exit
PB: predicated region body
PF: predicated region fallthrough
CT: control target
= control target key end

     0   :  { %9 = vsyncpa [#allocation4], 0  ;;  %s823_s15 = smov [#allocation3]   ;;  %s1426_s0 = inlined_call_operand.vmem [shape: f32[16], index: 0, kind: input, shape index: {}]   ;;  %s1427_s1 = inlined_call_operand.<no memory space> [shape: f32[1], index: 1, kind: input, shape index: {}]   ;;  %s1428_s2 = inlined_call_operand.vmem [shape: f32[2,34,34], index: 2, kind: input, shape index: {}]   ;;  %s1429_s3 = inlined_call_operand.vmem [shape: f32[4,2,32,32], index: 3, kind: output, shape index: {}]  }
   0x1   :  { %s15_s14 = sshll.u32 %s1426_s0, 4  ;;  %s16_s14 = int_to_ptr.vmem [resolvable:$true] %s15_s14 }
   0x2   :  { %18 = dma.vmem_to_smem %s16_s14, 16, %s823_s15, [#allocation4]  }
   0x3   :  { %821 = dma.done.wait [#allocation4], 16  }
   0x4   :  { %822 = vsyncadd [#allocation4], 4294967280 }
   0x5   :  { %27 = sfence }
   0x6   :  { %s768_s16 = sld [smem:[#allocation3 + $0x7]]  ;;  %v852_v0 = vld [vmem:[%s1428_s2 + $0x11] sm:$0xff]  ;;  %v857_v1 = vld [vmem:[%s1428_s2 + $0x1] sm:$0xff]  ;;  %v862_v2 = vld [vmem:[%s1428_s2 + $0x29] sm:$0xff]  ;;  %s824_s0 = smov 1   ;;  %v1008_v60 = vstv %s1427_s1  ;;  %vm222_vm0 = vcmask 261120  }
   0x7   :  { %v872_v7 = vld [vmem:[%s1428_s2 + $0x19] sm:$0xff]  ;;  %v877_v8 = vld [vmem:[%s1428_s2 + $0x9] sm:$0xff]  ;;  %v883_v9 = vld [vmem:[%s1428_s2 + $0x31] sm:$0xff]  ;;  %s770_s29 = sld [smem:[#allocation3 + $0xf]]  ;;  %s825_s24 = smov 127  }
   0x8   :  { %v893_v13 = vld [vmem:[%s1428_s2 + $0x41] sm:$0xff]  ;;  %v898_v14 = vld [vmem:[%s1428_s2 + $0x39] sm:$0xff]  ;;  %v914_v20 = vld [vmem:[%s1428_s2 + $0x10] sm:$0xff]  ;;  %s772_s19 = sld [smem:[#allocation3 + $0x4]] }
   0x9   :  { %v904_v15 = vld [vmem:[%s1428_s2] sm:$0xff]  ;;  %v919_v21 = vld [vmem:[%s1428_s2 + $0x8] sm:$0xff]  ;;  %v925_v22 = vld [vmem:[%s1428_s2 + $0x18] sm:$0xff]  ;;  %s774_s25 = sld [smem:[#allocation3 + $0xc]] }
   0xa   :  { %v935_v26 = vld [vmem:[%s1428_s2 + $0x30] sm:$0xff]  ;;  %v940_v27 = vld [vmem:[%s1428_s2 + $0x28] sm:$0xff]  ;;  %v946_v28 = vld [vmem:[%s1428_s2 + $0x38] sm:$0xff]  ;;  %s784_s26 = sld [smem:[#allocation3 + $0xb]] }
   0xb   :  { %v956_v33 = vld [vmem:[%s1428_s2 + $0x40] sm:$0xff]  ;;  %s767_s27 = sld [smem:[#allocation3 + $0x5]] }
   0xc   :  { %v73_v3 = vstv %s768_s16  ;;  %s769_s28 = sld [smem:[#allocation3 + $0xd]] }
   0xd   :  { %v76_v4 = vmul.f32 %v73_v3, %v852_v0  ;;  %v74_v5 = vmul.f32 %v73_v3, %v857_v1  ;;  %v78_v6 = vmul.f32 %v73_v3, %v862_v2  ;;  %v77_v10 = vmul.f32 %v73_v3, %v872_v7  ;;  %s771_s1 = sld [smem:[#allocation3 + $0x6]] }
   0xe   :  { %v75_v11 = vmul.f32 %v73_v3, %v877_v8  ;;  %v79_v12 = vmul.f32 %v73_v3, %v883_v9  ;;  %v81_v16 = vmul.f32 %v73_v3, %v893_v13  ;;  %v80_v17 = vmul.f32 %v73_v3, %v898_v14  ;;  %s773_s4 = sld [smem:[#allocation3 + $0xe]] }
   0xf   :  { %94 = vrot.lane.b32.xlu1 %v76_v4, %s824_s0  ;;  %90 = vrot.lane.b32.xlu0 %v74_v5, %s824_s0  ;;  %v141_v18 = vstv %s770_s29  ;;  %v250_v32 = vstv %s772_s19  ;;  %s786_s5 = sld [smem:[#allocation3 + $0x3]] }
  0x10   :  { %98 = vrot.lane.b32.xlu2 %v78_v6, %s824_s0  ;;  %v142_v19 = vmul.f32 %v141_v18, %v904_v15  ;;  %v144_v23 = vmul.f32 %v141_v18, %v914_v20  ;;  %v143_v24 = vmul.f32 %v141_v18, %v919_v21  ;;  %v145_v25 = vmul.f32 %v141_v18, %v925_v22  ;;  %s783_s15 = sld [smem:[#allocation3 + $0x9]] }
  0x11   :  { %v147_v29 = vmul.f32 %v141_v18, %v935_v26  ;;  %v146_v30 = vmul.f32 %v141_v18, %v940_v27  ;;  %v148_v31 = vmul.f32 %v141_v18, %v946_v28  ;;  %v252_v34 = vmul.f32 %v250_v32, %v877_v8  ;;  %s785_s22 = sld [smem:[#allocation3 + $0x1]] }
  0x12   :  { %v149_v35 = vmul.f32 %v141_v18, %v956_v33  ;;  %v253_v36 = vmul.f32 %v250_v32, %v852_v0  ;;  %v255_v37 = vmul.f32 %v250_v32, %v862_v2  ;;  %v251_v38 = vmul.f32 %v250_v32, %v857_v1 }
  0x13   :  { %v256_v39 = vmul.f32 %v250_v32, %v883_v9  ;;  %v258_v40 = vmul.f32 %v250_v32, %v893_v13  ;;  %v254_v41 = vmul.f32 %v250_v32, %v872_v7  ;;  %v318_v42 = vstv %s774_s25 }
  0x14   :  { %v319_v43 = vmul.f32 %v318_v42, %v904_v15  ;;  %v321_v44 = vmul.f32 %v318_v42, %v914_v20  ;;  %v257_v45 = vmul.f32 %v250_v32, %v898_v14  ;;  %v322_v46 = vmul.f32 %v318_v42, %v925_v22 }
  0x15   :  { %v324_v47 = vmul.f32 %v318_v42, %v935_v26  ;;  %v320_v48 = vmul.f32 %v318_v42, %v919_v21  ;;  %v325_v49 = vmul.f32 %v318_v42, %v946_v28  ;;  %v989_v50 = vstv %s784_s26 }
  0x16   :  { %v323_v51 = vmul.f32 %v318_v42, %v940_v27  ;;  %v429_v52 = vmul.f32 %v989_v50, %v877_v8  ;;  %v326_v53 = vmul.f32 %v318_v42, %v956_v33  ;;  %v428_v55 = vmul.f32 %v989_v50, %v857_v1 }
  0x17   :  { %96 = vrot.lane.b32.xlu1 %v77_v10, %s824_s0  ;;  %92 = vrot.lane.b32.xlu0 %v75_v11, %s824_s0  ;;  %v430_v56 = vmul.f32 %v989_v50, %v852_v0  ;;  %v54_v58 = vstv %s767_s27  ;;  %v1011_v63 = vstv %s769_s28  ;;  %s796_s27 = sld [smem:[#allocation3 + $0x8]] }
  0x18   :  { %100 = vrot.lane.b32.xlu2 %v79_v12, %s824_s0  ;;  %v55_v59 = vmul.f32 %v54_v58, %v857_v1  ;;  %v124_v3 = vmul.f32 %v1011_v63, %v904_v15  ;;  %v58_v10 = vmul.f32 %v54_v58, %v872_v7  ;;  %v59_v42 = vmul.f32 %v54_v58, %v862_v2  ;;  %s671_s28 = sld [smem:[#allocation3]] }
  0x1a   :  { %v64_v61 = vadd.f32 %v1008_v60, %v55_v59 }
  0x1f   :  { %104 = vrot.lane.b32.xlu1 %v81_v16, %s824_s0  ;;  %102 = vrot.lane.b32.xlu0 %v80_v17, %s824_s0  ;;  %v67_v16 = vadd.f32 %v1008_v60, %v58_v10  ;;  %v127_v17 = vmul.f32 %v1011_v63, %v925_v22 }
  0x20   :  { %158 = vrot.lane.b32.xlu2 %v142_v19, %s824_s0 }
  0x27   :  { %162 = vrot.lane.b32.xlu1 %v144_v23, %s824_s0  ;;  %160 = vrot.lane.b32.xlu0 %v143_v24, %s824_s0 }
  0x28   :  { %164 = vrot.lane.b32.xlu2 %v145_v25, %s824_s0  ;;  %v61_v25 = vmul.f32 %v54_v58, %v898_v14 }
  0x2f   :  { %168 = vrot.lane.b32.xlu1 %v147_v29, %s824_s0  ;;  %166 = vrot.lane.b32.xlu0 %v146_v30, %s824_s0  ;;  %v57_v29 = vmul.f32 %v54_v58, %v852_v0  ;;  %v56_v30 = vmul.f32 %v54_v58, %v877_v8 }
  0x30   :  { %170 = vrot.lane.b32.xlu2 %v148_v31, %s824_s0 }
  0x37   :  { %269 = vrot.lane.b32.xlu1 %v252_v34, %s825_s24  ;;  %172 = vrot.lane.b32.xlu0 %v149_v35, %s824_s0  ;;  %v70_v34 = vadd.f32 %v1008_v60, %v61_v25  ;;  %v66_v35 = vadd.f32 %v1008_v60, %v57_v29  ;;  %v232_v29 = vstv %s771_s1 }
  0x38   :  { %271 = vrot.lane.b32.xlu2 %v253_v36, %s825_s24  ;;  %v65_v36 = vadd.f32 %v1008_v60, %v56_v30 }
  0x3f   :  { %275 = vrot.lane.b32.xlu1 %v255_v37, %s825_s24  ;;  %267 = vrot.lane.b32.xlu0 %v251_v38, %s825_s24  ;;  %v130_v37 = vmul.f32 %v1011_v63, %v946_v28 }
  0x40   :  { %277 = vrot.lane.b32.xlu2 %v256_v39, %s825_s24 }
  0x47   :  { %281 = vrot.lane.b32.xlu1 %v258_v40, %s825_s24  ;;  %273 = vrot.lane.b32.xlu0 %v254_v41, %s825_s24 }
  0x48   :  { %335 = vrot.lane.b32.xlu2 %v319_v43, %s825_s24  ;;  %v60_v43 = vmul.f32 %v54_v58, %v883_v9 }
  0x4f   :  { %339 = vrot.lane.b32.xlu1 %v321_v44, %s825_s24  ;;  %279 = vrot.lane.b32.xlu0 %v257_v45, %s825_s24  ;;  %v126_v44 = vmul.f32 %v1011_v63, %v914_v20 }
  0x50   :  { %341 = vrot.lane.b32.xlu2 %v322_v46, %s825_s24 }
  0x57   :  { %345 = vrot.lane.b32.xlu1 %v324_v47, %s825_s24  ;;  %337 = vrot.lane.b32.xlu0 %v320_v48, %s825_s24  ;;  %v125_v48 = vmul.f32 %v1011_v63, %v919_v21 }
  0x58   :  { %347 = vrot.lane.b32.xlu2 %v325_v49, %s825_s24 }
  0x5f   :  { %343 = vrot.lane.b32.xlu0 %v323_v51, %s825_s24  ;;  %446 = vrot.lane.b32.xlu1 %v429_v52, %s824_s0  ;;  %v68_v51 = vadd.f32 %v1008_v60, %v59_v42  ;;  %v69_v52 = vadd.f32 %v1008_v60, %v60_v43  ;;  %v235_v42 = vmul.f32 %v232_v29, %v852_v0 }
  0x60   :  { %448 = vrot.lane.b32.xlu2 %v430_v56, %s824_s0 }
  0x67   :  { %349 = vrot.lane.b32.xlu0 %v326_v53, %s825_s24 }
  0x6a   :  { %v99_v54 = vpop.permute.xlu2 %98 }
  0x6f   :  { %444 = vrot.lane.b32.xlu0 %v428_v55, %s824_s0 }
  0x72   :  { %v101_v57 = vpop.permute.xlu2 %100 }
  0x73   :  { %v119_v10 = vadd.f32 %v101_v57, %v69_v52  ;;  %v239_v52 = vmul.f32 %v232_v29, %v898_v14 }
  0x7a   :  { %v159_v62 = vpop.permute.xlu2 %158 }
  0x81   :  { %v95_v4 = vpop.permute.xlu1 %94  ;;  %v91_v5 = vpop.permute.xlu0 %90 }
  0x82   :  { %v114_v6 = vadd.f32 %v91_v5, %v64_v61  ;;  %v165_v18 = vpop.permute.xlu2 %164  ;;  %v116_v45 = vadd.f32 %v95_v4, %v66_v35  ;;  %v129_v4 = vmul.f32 %v1011_v63, %v935_v26  ;;  %v128_v5 = vmul.f32 %v1011_v63, %v940_v27 }
  0x84   :  { %v132_v11 = vadd.f32 %v124_v3, %v114_v6  ;;  %v134_v53 = vadd.f32 %v126_v44, %v116_v45  ;;  %v118_v6 = vadd.f32 %v99_v54, %v68_v51  ;;  %v131_v54 = vmul.f32 %v1011_v63, %v956_v33 }
  0x86   :  { %v182_v12 = vadd.f32 %v159_v62, %v132_v11  ;;  %v62_v11 = vmul.f32 %v54_v58, %v893_v13 }
  0x88   :  { %198 = vrot.lane.b32.xlu1 %v182_v12, %s825_s24  ;;  %v71_v12 = vadd.f32 %v1008_v60, %v62_v11 }
  0x89   :  { %v97_v19 = vpop.permute.xlu1 %96  ;;  %v93_v23 = vpop.permute.xlu0 %92 }
  0x8a   :  { %v117_v24 = vadd.f32 %v97_v19, %v67_v16  ;;  %v171_v41 = vpop.permute.xlu2 %170  ;;  %v115_v46 = vadd.f32 %v93_v23, %v65_v36  ;;  %v137_v16 = vadd.f32 %v129_v4, %v119_v10  ;;  %v247_v4 = vadd.f32 %v239_v52, %v1008_v60 }
  0x8c   :  { %v135_v31 = vadd.f32 %v127_v17, %v117_v24  ;;  %v133_v55 = vadd.f32 %v125_v48, %v115_v46  ;;  %v136_v17 = vadd.f32 %v128_v5, %v118_v6  ;;  %v243_v46 = vadd.f32 %v235_v42, %v1008_v60 }
  0x8d   :  { %v435_v42 = vmul.f32 %v989_v50, %v893_v13 }
  0x8e   :  { %v185_v32 = vadd.f32 %v165_v18, %v135_v31 }
  0x90   :  { %204 = vrot.lane.b32.xlu1 %v185_v32, %s825_s24 }
  0x91   :  { %v105_v38 = vpop.permute.xlu1 %104  ;;  %v103_v39 = vpop.permute.xlu0 %102 }
  0x92   :  { %v120_v40 = vadd.f32 %v103_v39, %v70_v34  ;;  %v272_v3 = vpop.permute.xlu2 %271  ;;  %v121_v25 = vadd.f32 %v105_v38, %v71_v12  ;;  %v233_v34 = vmul.f32 %v232_v29, %v857_v1 }
  0x94   :  { %v138_v47 = vadd.f32 %v130_v37, %v120_v40  ;;  %v139_v58 = vadd.f32 %v131_v54, %v121_v25  ;;  %v241_v35 = vadd.f32 %v233_v34, %v1008_v60  ;;  %v1053_v37 = vstv %s773_s4  ;;  %s795_s4 = sld [smem:[#allocation3 + $0xa]] }
  0x95   :  { %v301_v38 = vmul.f32 %v1053_v37, %v904_v15  ;;  %v307_v10 = vmul.f32 %v1053_v37, %v946_v28  ;;  %v302_v25 = vmul.f32 %v1053_v37, %v919_v21  ;;  %v432_v21 = vmul.f32 %v989_v50, %v862_v2 }
  0x96   :  { %v188_v49 = vadd.f32 %v171_v41, %v138_v47  ;;  %v236_v41 = vmul.f32 %v232_v29, %v872_v7  ;;  %v304_v47 = vmul.f32 %v1053_v37, %v925_v22 }
  0x98   :  { %210 = vrot.lane.b32.xlu1 %v188_v49, %s825_s24  ;;  %v244_v45 = vadd.f32 %v236_v41, %v1008_v60 }
  0x99   :  { %v163_v56 = vpop.permute.xlu1 %162  ;;  %v161_v59 = vpop.permute.xlu0 %160 }
  0x9a   :  { %v184_v61 = vadd.f32 %v163_v56, %v134_v53  ;;  %v183_v62 = vadd.f32 %v161_v59, %v133_v55  ;;  %v278_v57 = vpop.permute.xlu2 %277  ;;  %v234_v53 = vmul.f32 %v232_v29, %v877_v8  ;;  %v293_v55 = vadd.f32 %v272_v3, %v243_v46  ;;  %v1106_v46 = vld [vmem:[%s1428_s2 + $0x12] sm:$0xff] }
  0x9b   :  { %v238_v56 = vmul.f32 %v232_v29, %v883_v9 }
  0x9c   :  { %202 = vrot.lane.b32.xlu0 %v184_v61, %s825_s24  ;;  %200 = vrot.lane.b32.xlu2 %v183_v62, %s825_s24  ;;  %v303_v61 = vmul.f32 %v1053_v37, %v914_v20  ;;  %v242_v22 = vadd.f32 %v234_v53, %v1008_v60  ;;  %v1131_v53 = vld [vmem:[%s1428_s2 + $0x2] sm:$0xff] }
  0x9d   :  { %v246_v5 = vadd.f32 %v238_v56, %v1008_v60 }
  0x9e   :  { %v311_v6 = vadd.f32 %v303_v61, %v293_v55  ;;  %v1148_v61 = vld [vmem:[%s1428_s2 + $0x1a] sm:$0xff] }
  0xa1   :  { %v169_v18 = vpop.permute.xlu1 %168  ;;  %v167_v19 = vpop.permute.xlu0 %166 }
  0xa2   :  { %v187_v23 = vadd.f32 %v169_v18, %v137_v16  ;;  %v186_v24 = vadd.f32 %v167_v19, %v136_v17  ;;  %v336_v36 = vpop.permute.xlu2 %335  ;;  %v237_v17 = vmul.f32 %v232_v29, %v862_v2  ;;  %v306_v18 = vmul.f32 %v1053_v37, %v935_v26 }
  0xa3   :  { %v240_v26 = vmul.f32 %v232_v29, %v893_v13 }
  0xa4   :  { %208 = vrot.lane.b32.xlu0 %v187_v23, %s825_s24  ;;  %206 = vrot.lane.b32.xlu2 %v186_v24, %s825_s24  ;;  %v296_v23 = vadd.f32 %v278_v57, %v246_v5  ;;  %v245_v28 = vadd.f32 %v237_v17, %v1008_v60 }
  0xa9   :  { %v270_v30 = vpop.permute.xlu1 %269  ;;  %v173_v31 = vpop.permute.xlu0 %172 }
  0xaa   :  { %v189_v32 = vadd.f32 %v173_v31, %v139_v58  ;;  %v342_v48 = vpop.permute.xlu2 %341  ;;  %v292_v19 = vadd.f32 %v270_v30, %v242_v22  ;;  %v314_v58 = vadd.f32 %v306_v18, %v296_v23  ;;  %v305_v30 = vmul.f32 %v1053_v37, %v940_v27 }
  0xab   :  { %v308_v27 = vmul.f32 %v1053_v37, %v956_v33  ;;  %v1114_v37 = vld [vmem:[%s1428_s2 + $0xa] sm:$0xff] }
  0xac   :  { %212 = vrot.lane.b32.xlu2 %v189_v32, %s825_s24  ;;  %v310_v31 = vadd.f32 %v302_v25, %v292_v19 }
  0xb1   :  { %v276_v63 = vpop.permute.xlu1 %275  ;;  %v268_v39 = vpop.permute.xlu0 %267 }
  0xb2   :  { %v291_v40 = vadd.f32 %v268_v39, %v241_v35  ;;  %v348_v20 = vpop.permute.xlu2 %347  ;;  %v295_v57 = vadd.f32 %v276_v63, %v245_v28 }
  0xb4   :  { %v309_v43 = vadd.f32 %v301_v38, %v291_v40  ;;  %v248_v38 = vadd.f32 %v240_v26, %v1008_v60  ;;  %v313_v39 = vadd.f32 %v305_v30, %v295_v57  ;;  %v431_v40 = vmul.f32 %v989_v50, %v872_v7 }
  0xb5   :  { %v1241_v30 = vstv %s785_s22 }
  0xb6   :  { %v359_v44 = vadd.f32 %v336_v36, %v309_v43 }
  0xb8   :  { %375 = vrot.lane.b32.xlu1 %v359_v44, %s825_s24  ;;  %v434_v44 = vmul.f32 %v989_v50, %v898_v14 }
  0xb9   :  { %v282_v15 = vpop.permute.xlu1 %281  ;;  %v274_v49 = vpop.permute.xlu0 %273 }
  0xba   :  { %v294_v51 = vadd.f32 %v274_v49, %v244_v45  ;;  %v298_v41 = vadd.f32 %v282_v15, %v248_v38  ;;  %v433_v15 = vmul.f32 %v989_v50, %v883_v9  ;;  %v1136_v50 = vld [vmem:[%s1428_s2 + $0x2a] sm:$0xff] }
  0xbc   :  { %v312_v59 = vadd.f32 %v304_v47, %v294_v51  ;;  %v316_v43 = vadd.f32 %v308_v27, %v298_v41  ;;  %v495_v47 = vstv %s786_s5  ;;  %v1123_v51 = vld [vmem:[%s1428_s2 + $0x32] sm:$0xff]  ;;  %s797_s5 = sld [smem:[#allocation3 + $0x2]] }
  0xbd   :  { %v498_v33 = vmul.f32 %v495_v47, %v1106_v46  ;;  %v497_v49 = vmul.f32 %v495_v47, %v1114_v37  ;;  %v501_v52 = vmul.f32 %v495_v47, %v1123_v51  ;;  %v496_v55 = vmul.f32 %v495_v47, %v1131_v53 }
  0xbe   :  { %v362_v62 = vadd.f32 %v342_v48, %v312_v59  ;;  %v500_v56 = vmul.f32 %v495_v47, %v1136_v50  ;;  %v1143_v59 = vpop.permute.xlu2 %448  ;;  %v499_v22 = vmul.f32 %v495_v47, %v1148_v61 }
  0xc0   :  { %381 = vrot.lane.b32.xlu1 %v362_v62, %s825_s24  ;;  %v1153_v62 = vld [vmem:[%s1428_s2 + $0x42] sm:$0xff] }
  0xc1   :  { %v340_v3 = vpop.permute.xlu1 %339  ;;  %v280_v11 = vpop.permute.xlu0 %279  ;;  %v503_v5 = vmul.f32 %v495_v47, %v1153_v62 }
  0xc2   :  { %v361_v12 = vadd.f32 %v340_v3, %v311_v6  ;;  %v297_v16 = vadd.f32 %v280_v11, %v247_v4  ;;  %v1164_v6 = vld [vmem:[%s1428_s2 + $0x3a] sm:$0xff] }
  0xc3   :  { %v502_v3 = vmul.f32 %v495_v47, %v1164_v6 }
  0xc4   :  { %379 = vrot.lane.b32.xlu0 %v361_v12, %s825_s24  ;;  %v315_v24 = vadd.f32 %v307_v10, %v297_v16 }
  0xc6   :  { %v365_v54 = vadd.f32 %v348_v20, %v315_v24 }
  0xc8   :  { %387 = vrot.lane.b32.xlu1 %v365_v54, %s825_s24 }
  0xc9   :  { %v346_v32 = vpop.permute.xlu1 %345  ;;  %v338_v34 = vpop.permute.xlu0 %337 }
  0xca   :  { %v364_v35 = vadd.f32 %v346_v32, %v314_v58  ;;  %v360_v36 = vadd.f32 %v338_v34, %v310_v31  ;;  %v1220_v32 = vstv %s783_s15 }
  0xcb   :  { %v410_v34 = vmul.f32 %v1220_v32, %v857_v1 }
  0xcc   :  { %377 = vrot.lane.b32.xlu2 %v360_v36, %s825_s24  ;;  %385 = vrot.lane.b32.xlu0 %v364_v35, %s825_s24 }
  0xcd   :  { %v418_v36 = vadd.f32 %v410_v34, %v1008_v60 }
  0xd0   :  { %452 = vrot.lane.b32.xlu1 %v432_v21, %s824_s0  ;;  %v413_v21 = vmul.f32 %v1220_v32, %v872_v7 }
  0xd1   :  { %v344_v29 = vpop.permute.xlu0 %343  ;;  %v1155_v4 = vpop.permute.xlu1 %446 }
  0xd2   :  { %v363_v63 = vadd.f32 %v344_v29, %v313_v39  ;;  %v478_v39 = vmul.f32 %v1241_v30, %v1131_v53  ;;  %v421_v29 = vadd.f32 %v413_v21, %v1008_v60  ;;  %v414_v21 = vmul.f32 %v1220_v32, %v862_v2 }
  0xd4   :  { %383 = vrot.lane.b32.xlu2 %v363_v63, %s825_s24  ;;  %450 = vrot.lane.b32.xlu0 %v431_v40, %s824_s0  ;;  %v412_v63 = vmul.f32 %v1220_v32, %v852_v0 }
  0xd6   :  { %v420_v47 = vadd.f32 %v412_v63, %v1008_v60  ;;  %v422_v63 = vadd.f32 %v414_v21, %v1008_v60 }
  0xd8   :  { %458 = vrot.lane.b32.xlu1 %v435_v42, %s824_s0 }
  0xd9   :  { %v350_v45 = vpop.permute.xlu0 %349 }
  0xda   :  { %v366_v48 = vadd.f32 %v350_v45, %v316_v43  ;;  %v481_v45 = vmul.f32 %v1241_v30, %v1148_v61 }
  0xdc   :  { %389 = vrot.lane.b32.xlu2 %v366_v48, %s825_s24  ;;  %456 = vrot.lane.b32.xlu0 %v434_v44, %s824_s0  ;;  %v411_v48 = vmul.f32 %v1220_v32, %v877_v8 }
  0xe0   :  { %516 = vrot.lane.b32.xlu1 %v498_v33, %s824_s0 }
  0xe1   :  { %v445_v17 = vpop.permute.xlu0 %444 }
  0xe2   :  { %v468_v38 = vadd.f32 %v445_v17, %v418_v36  ;;  %v415_v36 = vmul.f32 %v1220_v32, %v883_v9 }
  0xe4   :  { %454 = vrot.lane.b32.xlu2 %v433_v15, %s824_s0  ;;  %514 = vrot.lane.b32.xlu0 %v497_v49, %s824_s0  ;;  %v486_v41 = vadd.f32 %v478_v39, %v468_v38  ;;  %v470_v49 = vadd.f32 %v1143_v59, %v420_v47  ;;  %v423_v38 = vadd.f32 %v415_v36, %v1008_v60 }
  0xe5   :  { %v417_v47 = vmul.f32 %v1220_v32, %v893_v13 }
  0xe8   :  { %522 = vrot.lane.b32.xlu1 %v501_v52, %s824_s0  ;;  %v419_v52 = vadd.f32 %v411_v48, %v1008_v60 }
  0xec   :  { %512 = vrot.lane.b32.xlu2 %v496_v55, %s824_s0  ;;  %520 = vrot.lane.b32.xlu0 %v500_v56, %s824_s0  ;;  %v480_v55 = vmul.f32 %v1241_v30, %v1106_v46 }
  0xf4   :  { %518 = vrot.lane.b32.xlu2 %v499_v22, %s824_s0  ;;  %526 = vrot.lane.b32.xlu0 %v503_v5, %s824_s0 }
  0xf6   :  { %v201_v10 = vpop.permute.xlu2 %200 }
  0xf7   :  { %224 = vst.msk [vmem:[%s1429_s3 + $0x8] sm:$0xff] %vm222_vm0, %v201_v10  ;;  %v469_v10 = vadd.f32 %v1155_v4, %v419_v52 }
  0xfa   :  { %v199_v11 = vpop.permute.xlu1 %198 }
  0xfb   :  { %223 = vst.msk [vmem:[%s1429_s3] sm:$0xff] %vm222_vm0, %v199_v11  ;;  %v479_v11 = vmul.f32 %v1241_v30, %v1114_v37 }
  0xfc   :  { %524 = vrot.lane.b32.xlu2 %v502_v3, %s824_s0  ;;  %v488_v3 = vadd.f32 %v480_v55, %v470_v49  ;;  %v416_v49 = vmul.f32 %v1220_v32, %v898_v14  ;;  %v425_v55 = vadd.f32 %v417_v47, %v1008_v60 }
  0xfd   :  { %v487_v17 = vadd.f32 %v479_v11, %v469_v10 }
  0xfe   :  { %v207_v12 = vpop.permute.xlu2 %206 }
  0xff   :  { %227 = vst.msk [vmem:[%s1429_s3 + $0x20] sm:$0xff] %vm222_vm0, %v207_v12 }
 0x102   :  { %v205_v16 = vpop.permute.xlu1 %204 }
 0x103   :  { %226 = vst.msk [vmem:[%s1429_s3 + $0x18] sm:$0xff] %vm222_vm0, %v205_v16  ;;  %v604_v16 = vstv %s796_s27 }
 0x104   :  { %v606_v4 = vmul.f32 %v604_v16, %v877_v8  ;;  %v611_v34 = vmul.f32 %v604_v16, %v898_v14 }
 0x106   :  { %v213_v20 = vpop.permute.xlu2 %212 }
 0x107   :  { %230 = vst.msk [vmem:[%s1429_s3 + $0x38] sm:$0xff] %vm222_vm0, %v213_v20  ;;  %v607_v20 = vmul.f32 %v604_v16, %v852_v0 }
 0x10a   :  { %v211_v18 = vpop.permute.xlu1 %210 }
 0x10b   :  { %229 = vst.msk [vmem:[%s1429_s3 + $0x30] sm:$0xff] %vm222_vm0, %v211_v18 }
 0x10e   :  { %v203_v19 = vpop.permute.xlu0 %202 }
 0x10f   :  { %225 = vst.msk [vmem:[%s1429_s3 + $0x10] sm:$0xff] %vm222_vm0, %v203_v19 }
 0x116   :  { %v209_v23 = vpop.permute.xlu0 %208 }
 0x117   :  { %228 = vst.msk [vmem:[%s1429_s3 + $0x28] sm:$0xff] %vm222_vm0, %v209_v23  ;;  %v605_v23 = vmul.f32 %v604_v16, %v857_v1 }
 0x126   :  { %v378_v24 = vpop.permute.xlu2 %377 }
 0x127   :  { %776 = vst.msk [vmem:[%s1429_s3 + $0x48] sm:$0xff] %vm222_vm0, %v378_v24  ;;  %v610_v24 = vmul.f32 %v604_v16, %v883_v9 }
 0x12a   :  { %v376_v25 = vpop.permute.xlu1 %375 }
 0x12b   :  { %775 = vst.msk [vmem:[%s1429_s3 + $0x40] sm:$0xff] %vm222_vm0, %v376_v25  ;;  %v609_v25 = vmul.f32 %v604_v16, %v862_v2 }
 0x12e   :  { %v384_v54 = vpop.permute.xlu2 %383 }
 0x12f   :  { %779 = vst.msk [vmem:[%s1429_s3 + $0x60] sm:$0xff] %vm222_vm0, %v384_v54  ;;  %v672_v54 = vstv %s671_s28 }
 0x130   :  { %v674_v39 = vmul.f32 %v672_v54, %v1114_v37  ;;  %v680_v32 = vmul.f32 %v672_v54, %v1153_v62 }
 0x132   :  { %v382_v28 = vpop.permute.xlu1 %381 }
 0x133   :  { %778 = vst.msk [vmem:[%s1429_s3 + $0x58] sm:$0xff] %vm222_vm0, %v382_v28  ;;  %v608_v28 = vmul.f32 %v604_v16, %v872_v7 }
 0x136   :  { %v380_v58 = vpop.permute.xlu0 %379  ;;  %v390_v31 = vpop.permute.xlu2 %389 }
 0x137   :  { %777 = vst.msk [vmem:[%s1429_s3 + $0x50] sm:$0xff] %vm222_vm0, %v380_v58  ;;  %v673_v58 = vmul.f32 %v672_v54, %v1131_v53 }
 0x138   :  { %782 = vst.msk [vmem:[%s1429_s3 + $0x78] sm:$0xff] %vm222_vm0, %v390_v31  ;;  %v612_v31 = vmul.f32 %v604_v16, %v893_v13 }
 0x13a   :  { %v388_v35 = vpop.permute.xlu1 %387 }
 0x13b   :  { %781 = vst.msk [vmem:[%s1429_s3 + $0x70] sm:$0xff] %vm222_vm0, %v388_v35  ;;  %v676_v35 = vmul.f32 %v672_v54, %v1148_v61 }
 0x13e   :  { %v386_v26 = vpop.permute.xlu0 %385  ;;  %v1233_v57 = vpop.permute.xlu2 %454 }
 0x13f   :  { %780 = vst.msk [vmem:[%s1429_s3 + $0x68] sm:$0xff] %vm222_vm0, %v386_v26  ;;  %v675_v26 = vmul.f32 %v672_v54, %v1106_v46 }
 0x142   :  { %v1245_v40 = vpop.permute.xlu1 %452 }
 0x146   :  { %v451_v42 = vpop.permute.xlu0 %450  ;;  %v513_v27 = vpop.permute.xlu2 %512 }
 0x147   :  { %v471_v43 = vadd.f32 %v451_v42, %v421_v29  ;;  %v536_v44 = vadd.f32 %v513_v27, %v486_v41  ;;  %v679_v29 = vmul.f32 %v672_v54, %v1164_v6  ;;  %v473_v41 = vadd.f32 %v1233_v57, %v423_v38 }
 0x148   :  { %v483_v42 = vmul.f32 %v1241_v30, %v1123_v51  ;;  %v678_v27 = vmul.f32 %v672_v54, %v1123_v51  ;;  %v677_v57 = vmul.f32 %v672_v54, %v1136_v50 }
 0x149   :  { %552 = vrot.lane.b32.xlu1 %v536_v44, %s825_s24  ;;  %v489_v15 = vadd.f32 %v481_v45, %v471_v43  ;;  %v482_v44 = vmul.f32 %v1241_v30, %v1136_v50  ;;  %v472_v45 = vadd.f32 %v1245_v40, %v422_v63  ;;  %v424_v40 = vadd.f32 %v416_v49, %v1008_v60 }
 0x14a   :  { %v1256_v33 = vpop.permute.xlu1 %458  ;;  %v491_v48 = vadd.f32 %v483_v42, %v473_v41 }
 0x14b   :  { %v475_v10 = vadd.f32 %v1256_v33, %v425_v55 }
 0x14e   :  { %v1262_v56 = vpop.permute.xlu0 %456  ;;  %v519_v22 = vpop.permute.xlu2 %518 }
 0x14f   :  { %v539_v5 = vadd.f32 %v519_v22, %v489_v15  ;;  %v490_v22 = vadd.f32 %v482_v44, %v472_v45  ;;  %v474_v11 = vadd.f32 %v1262_v56, %v424_v40 }
 0x151   :  { %558 = vrot.lane.b32.xlu1 %v539_v5, %s825_s24 }
 0x152   :  { %v517_v12 = vpop.permute.xlu1 %516 }
 0x153   :  { %v538_v59 = vadd.f32 %v517_v12, %v488_v3  ;;  %v485_v3 = vmul.f32 %v1241_v30, %v1153_v62  ;;  %v484_v12 = vmul.f32 %v1241_v30, %v1164_v6 }
 0x155   :  { %556 = vrot.lane.b32.xlu0 %v538_v59, %s825_s24  ;;  %v493_v59 = vadd.f32 %v485_v3, %v475_v10 }
 0x156   :  { %v515_v18 = vpop.permute.xlu0 %514 }
 0x157   :  { %v537_v19 = vadd.f32 %v515_v18, %v487_v17  ;;  %v525_v18 = vpop.permute.xlu2 %524 }
 0x159   :  { %554 = vrot.lane.b32.xlu2 %v537_v19, %s825_s24  ;;  %625 = vrot.lane.b32.xlu1 %v607_v20, %s825_s24  ;;  %v492_v20 = vadd.f32 %v484_v12, %v474_v11 }
 0x15a   :  { %v523_v43 = vpop.permute.xlu1 %522 }
 0x15b   :  { %v541_v52 = vadd.f32 %v523_v43, %v491_v48  ;;  %v542_v33 = vadd.f32 %v525_v18, %v492_v20 }
 0x15d   :  { %623 = vrot.lane.b32.xlu0 %v606_v4, %s825_s24 }
 0x15e   :  { %v521_v15 = vpop.permute.xlu0 %520 }
 0x15f   :  { %v540_v5 = vadd.f32 %v521_v15, %v490_v22 }
 0x161   :  { %621 = vrot.lane.b32.xlu2 %v605_v23, %s825_s24  ;;  %631 = vrot.lane.b32.xlu1 %v610_v24, %s825_s24  ;;  %v586_v24 = vstv %s795_s4 }
 0x162   :  { %v588_v54 = vmul.f32 %v586_v24, %v877_v8  ;;  %v590_v63 = vmul.f32 %v586_v24, %v872_v7  ;;  %v594_v45 = vmul.f32 %v586_v24, %v893_v13  ;;  %v589_v7 = vmul.f32 %v586_v24, %v852_v0 }
 0x163   :  { %v593_v15 = vmul.f32 %v586_v24, %v898_v14  ;;  %v592_v11 = vmul.f32 %v586_v24, %v883_v9 }
 0x164   :  { %v597_v13 = vadd.f32 %v589_v7, %v1008_v60 }
 0x165   :  { %629 = vrot.lane.b32.xlu0 %v609_v25, %s825_s24  ;;  %v601_v14 = vadd.f32 %v593_v15, %v1008_v60 }
 0x166   :  { %v527_v16 = vpop.permute.xlu0 %526 }
 0x167   :  { %v543_v17 = vadd.f32 %v527_v16, %v493_v59 }
 0x169   :  { %627 = vrot.lane.b32.xlu2 %v608_v28, %s825_s24  ;;  %689 = vrot.lane.b32.xlu1 %v673_v58, %s825_s24 }
 0x16d   :  { %635 = vrot.lane.b32.xlu0 %v612_v31, %s825_s24  ;;  %v654_v31 = vstv %s797_s5 }
 0x16e   :  { %v656_v36 = vmul.f32 %v654_v31, %v1114_v37  ;;  %v659_v37 = vmul.f32 %v654_v31, %v1136_v50  ;;  %v658_v50 = vmul.f32 %v654_v31, %v1148_v61  ;;  %v662_v0 = vmul.f32 %v654_v31, %v1153_v62 }
 0x16f   :  { %v657_v16 = vmul.f32 %v654_v31, %v1106_v46  ;;  %v600_v62 = vadd.f32 %v592_v11, %v1008_v60  ;;  %v660_v46 = vmul.f32 %v654_v31, %v1123_v51 }
 0x171   :  { %633 = vrot.lane.b32.xlu2 %v611_v34, %s825_s24  ;;  %695 = vrot.lane.b32.xlu1 %v676_v35, %s825_s24  ;;  %v587_v34 = vmul.f32 %v586_v24, %v857_v1  ;;  %v596_v35 = vadd.f32 %v588_v54, %v1008_v60  ;;  %v655_v1 = vmul.f32 %v654_v31, %v1131_v53 }
 0x172   :  { %v602_v53 = vadd.f32 %v594_v45, %v1008_v60 }
 0x173   :  { %v595_v21 = vadd.f32 %v587_v34, %v1008_v60 }
 0x175   :  { %693 = vrot.lane.b32.xlu0 %v675_v26, %s825_s24 }
 0x179   :  { %691 = vrot.lane.b32.xlu2 %v674_v39, %s825_s24  ;;  %701 = vrot.lane.b32.xlu1 %v679_v29, %s825_s24  ;;  %v591_v39 = vmul.f32 %v586_v24, %v862_v2  ;;  %v598_v2 = vadd.f32 %v590_v63, %v1008_v60 }
 0x17b   :  { %v599_v43 = vadd.f32 %v591_v39, %v1008_v60 }
 0x17d   :  { %699 = vrot.lane.b32.xlu0 %v678_v27, %s825_s24 }
 0x181   :  { %697 = vrot.lane.b32.xlu2 %v677_v57, %s825_s24  ;;  %562 = vrot.lane.b32.xlu1 %v541_v52, %s825_s24 }
 0x185   :  { %560 = vrot.lane.b32.xlu0 %v540_v5, %s825_s24 }
 0x189   :  { %703 = vrot.lane.b32.xlu2 %v680_v32, %s825_s24 }
 0x18d   :  { %566 = vrot.lane.b32.xlu0 %v543_v17, %s825_s24 }
 0x191   :  { %564 = vrot.lane.b32.xlu2 %v542_v33, %s825_s24  ;;  %v661_v33 = vmul.f32 %v654_v31, %v1164_v6 }
 0x1b3   :  { %v555_v19 = vpop.permute.xlu2 %554 }
 0x1b4   :  { %788 = vst.msk [vmem:[%s1429_s3 + $0x88] sm:$0xff] %vm222_vm0, %v555_v19 }
 0x1bb   :  { %v622_v56 = vpop.permute.xlu2 %621  ;;  %v553_v30 = vpop.permute.xlu1 %552 }
 0x1bc   :  { %787 = vst.msk [vmem:[%s1429_s3 + $0x80] sm:$0xff] %vm222_vm0, %v553_v30  ;;  %v645_v42 = vadd.f32 %v622_v56, %v595_v21 }
 0x1be   :  { %v663_v48 = vadd.f32 %v655_v1, %v645_v42 }
 0x1c3   :  { %v628_v4 = vpop.permute.xlu2 %627  ;;  %v559_v23 = vpop.permute.xlu1 %558 }
 0x1c4   :  { %790 = vst.msk [vmem:[%s1429_s3 + $0x98] sm:$0xff] %vm222_vm0, %v559_v23  ;;  %v648_v55 = vadd.f32 %v628_v4, %v598_v2 }
 0x1c6   :  { %v666_v3 = vadd.f32 %v658_v50, %v648_v55 }
 0x1c7   :  { %v557_v25 = vpop.permute.xlu0 %556 }
 0x1c8   :  { %789 = vst.msk [vmem:[%s1429_s3 + $0x90] sm:$0xff] %vm222_vm0, %v557_v25 }
 0x1cb   :  { %v634_v28 = vpop.permute.xlu2 %633  ;;  %v626_v58 = vpop.permute.xlu1 %625 }
 0x1cc   :  { %v647_v32 = vadd.f32 %v626_v58, %v597_v13  ;;  %v651_v17 = vadd.f32 %v634_v28, %v601_v14 }
 0x1ce   :  { %v665_v19 = vadd.f32 %v657_v16, %v647_v32  ;;  %v669_v9 = vadd.f32 %v661_v33, %v651_v17 }
 0x1cf   :  { %v624_v26 = vpop.permute.xlu0 %623 }
 0x1d0   :  { %v646_v38 = vadd.f32 %v624_v26, %v596_v35 }
 0x1d2   :  { %v664_v29 = vadd.f32 %v656_v36, %v646_v38 }
 0x1d3   :  { %v692_v41 = vpop.permute.xlu2 %691  ;;  %v632_v8 = vpop.permute.xlu1 %631 }
 0x1d4   :  { %v714_v27 = vadd.f32 %v692_v41, %v664_v29  ;;  %v650_v4 = vadd.f32 %v632_v8, %v600_v62 }
 0x1d6   :  { %731 = vrot.lane.b32.xlu2 %v714_v27, %s825_s24  ;;  %v668_v6 = vadd.f32 %v660_v46, %v650_v4 }
 0x1d7   :  { %v630_v44 = vpop.permute.xlu0 %629 }
 0x1d8   :  { %v649_v47 = vadd.f32 %v630_v44, %v599_v43 }
 0x1da   :  { %v667_v57 = vadd.f32 %v659_v37, %v649_v47 }
 0x1db   :  { %v698_v49 = vpop.permute.xlu2 %697  ;;  %v690_v52 = vpop.permute.xlu1 %689 }
 0x1dc   :  { %v717_v22 = vadd.f32 %v698_v49, %v667_v57  ;;  %v713_v40 = vadd.f32 %v690_v52, %v663_v48 }
 0x1de   :  { %737 = vrot.lane.b32.xlu2 %v717_v22, %s825_s24  ;;  %729 = vrot.lane.b32.xlu1 %v713_v40, %s825_s24 }
 0x1df   :  { %v636_v5 = vpop.permute.xlu0 %635 }
 0x1e0   :  { %v652_v10 = vadd.f32 %v636_v5, %v602_v53 }
 0x1e2   :  { %v670_v12 = vadd.f32 %v662_v0, %v652_v10 }
 0x1e3   :  { %v704_v61 = vpop.permute.xlu2 %703  ;;  %v696_v59 = vpop.permute.xlu1 %695 }
 0x1e4   :  { %v720_v20 = vadd.f32 %v704_v61, %v670_v12  ;;  %v716_v18 = vadd.f32 %v696_v59, %v666_v3 }
 0x1e6   :  { %743 = vrot.lane.b32.xlu2 %v720_v20, %s825_s24  ;;  %735 = vrot.lane.b32.xlu1 %v716_v18, %s825_s24 }
 0x1e7   :  { %v694_v56 = vpop.permute.xlu0 %693 }
 0x1e8   :  { %v715_v30 = vadd.f32 %v694_v56, %v665_v19 }
 0x1ea   :  { %733 = vrot.lane.b32.xlu0 %v715_v30, %s825_s24 }
 0x1eb   :  { %v565_v23 = vpop.permute.xlu2 %564  ;;  %v702_v24 = vpop.permute.xlu1 %701 }
 0x1ec   :  { %793 = vst.msk [vmem:[%s1429_s3 + $0xb0] sm:$0xff] %vm222_vm0, %v565_v23  ;;  %v719_v60 = vadd.f32 %v702_v24, %v669_v9 }
 0x1ee   :  { %741 = vrot.lane.b32.xlu1 %v719_v60, %s825_s24 }
 0x1ef   :  { %v700_v25 = vpop.permute.xlu0 %699 }
 0x1f0   :  { %v718_v54 = vadd.f32 %v700_v25, %v668_v6 }
 0x1f2   :  { %739 = vrot.lane.b32.xlu0 %v718_v54, %s825_s24 }
 0x1f3   :  { %v563_v28 = vpop.permute.xlu1 %562 }
 0x1f4   :  { %792 = vst.msk [vmem:[%s1429_s3 + $0xa8] sm:$0xff] %vm222_vm0, %v563_v28 }
 0x1f7   :  { %v561_v51 = vpop.permute.xlu0 %560 }
 0x1f8   :  { %791 = vst.msk [vmem:[%s1429_s3 + $0xa0] sm:$0xff] %vm222_vm0, %v561_v51 }
 0x1ff   :  { %v567_v58 = vpop.permute.xlu0 %566 }
 0x200   :  { %794 = vst.msk [vmem:[%s1429_s3 + $0xb8] sm:$0xff] %vm222_vm0, %v567_v58 }
 0x230   :  { %v732_v31 = vpop.permute.xlu2 %731 }
 0x231   :  { %799 = vst.msk [vmem:[%s1429_s3 + $0xc8] sm:$0xff] %vm222_vm0, %v732_v31 }
 0x238   :  { %v738_v34 = vpop.permute.xlu2 %737 }
 0x239   :  { %802 = vst.msk [vmem:[%s1429_s3 + $0xe0] sm:$0xff] %vm222_vm0, %v738_v34 }
 0x240   :  { %v744_v35 = vpop.permute.xlu2 %743 }
 0x241   :  { %805 = vst.msk [vmem:[%s1429_s3 + $0xf8] sm:$0xff] %vm222_vm0, %v744_v35 }
 0x250   :  { %v730_v36 = vpop.permute.xlu1 %729 }
 0x251   :  { %798 = vst.msk [vmem:[%s1429_s3 + $0xc0] sm:$0xff] %vm222_vm0, %v730_v36 }
 0x258   :  { %v736_v26 = vpop.permute.xlu1 %735 }
 0x259   :  { %801 = vst.msk [vmem:[%s1429_s3 + $0xd8] sm:$0xff] %vm222_vm0, %v736_v26 }
 0x25c   :  { %v734_v21 = vpop.permute.xlu0 %733 }
 0x25d   :  { %800 = vst.msk [vmem:[%s1429_s3 + $0xd0] sm:$0xff] %vm222_vm0, %v734_v21 }
 0x260   :  { %v742_v38 = vpop.permute.xlu1 %741 }
 0x261   :  { %804 = vst.msk [vmem:[%s1429_s3 + $0xf0] sm:$0xff] %vm222_vm0, %v742_v38 }
 0x264   :  { %v740_v39 = vpop.permute.xlu0 %739 }
 0x265   :  { %803 = vst.msk [vmem:[%s1429_s3 + $0xe8] sm:$0xff] %vm222_vm0, %v740_v39 }
 0x266   :  { %766 = vsyncpa [#allocation4], 1 }

</bundles_post_ra>
